<compile_context>
chip_gen: v7x
topology: tpu7x:2x2x1
jax: 0.10.0
libtpu: 0.0.40
codegen_flags: <defaults>
</compile_context>

<pallas_src>
import jax
import jax.numpy as jnp
from jax.experimental import pallas as pl
from jax.experimental.pallas import tpu as pltpu


LANE = 128  # pad every GEMM output N to a multiple of this (lane-dense stores)


# ----------------------------- Pallas kernels -------------------------------

def _conv_pool_kernel(p0_ref, p1_ref, p2_ref, p3_ref, w_ref, b_ref, o_ref):
    """Fused conv-as-GEMM + bias + ReLU + 2x2 max pool.

    p0..p3: (tm, K) bf16 im2col patch streams, one per pool-window position.
    w: (K, Npad) bf16.  b: (1, Npad) f32.  o: (tm, Npad) bf16.
    """
    w = w_ref[...]
    m01 = jnp.maximum(
        jnp.dot(p0_ref[...], w, preferred_element_type=jnp.float32),
        jnp.dot(p1_ref[...], w, preferred_element_type=jnp.float32))
    m23 = jnp.maximum(
        jnp.dot(p2_ref[...], w, preferred_element_type=jnp.float32),
        jnp.dot(p3_ref[...], w, preferred_element_type=jnp.float32))
    acc = jnp.maximum(m01, m23) + b_ref[...]          # f32 bias add
    o_ref[...] = jnp.maximum(acc, 0.0).astype(o_ref.dtype)


def _classifier_kernel(x_ref, w1_ref, b1_ref, w2_ref, b2_ref, w3_ref, b3_ref,
                       o_ref):
    """FC1+ReLU -> FC2+ReLU -> FC3 in one body; intermediates stay on-chip."""
    h = jnp.dot(x_ref[...], w1_ref[...], preferred_element_type=jnp.float32)
    h = jnp.maximum(h + b1_ref[...], 0.0).astype(jnp.bfloat16)
    h = jnp.dot(h, w2_ref[...], preferred_element_type=jnp.float32)
    h = jnp.maximum(h + b2_ref[...], 0.0).astype(jnp.bfloat16)
    out = jnp.dot(h, w3_ref[...], preferred_element_type=jnp.float32)
    o_ref[...] = (out + b3_ref[...]).astype(o_ref.dtype)


# ------------------------------ tiling helpers -------------------------------

def _row_tile(M, unit, target=1024):
    """Largest multiple of `unit` dividing M and <= target, preferring a tile
    that leaves >= 2 grid steps (v7x megacore). `unit` is a multiple of 8."""
    n = M // unit
    cands = [k * unit for k in range(1, n + 1)
             if n % k == 0 and k * unit <= target]
    if not cands:
        return M
    split = [t for t in cands if M // t >= 2]
    return max(split) if split else max(cands)


def _fc_row_tile(M, target=512):
    if M <= target:
        return M
    for tm in range(target - target % 8, 0, -8):
        if M % tm == 0:
            return tm
    return M


# ------------------------------- JAX glue ------------------------------------

def _pool_im2col(x_nhwc, compute_dtype):
    """3x3 / stride 1 / pad 1 im2col, pre-split into the four 2x2-pool-window
    streams so the conv kernel can fuse the max pool into its epilogue.
    Each stream: (B*Ho*Wo, 9*C), rows ordered (b, ho, wo), cols (dy, dx, cin)."""
    B, H, W, C = x_nhwc.shape
    Ho, Wo = H // 2, W // 2
    xp = jnp.pad(x_nhwc.astype(compute_dtype), ((0, 0), (1, 1), (1, 1), (0, 0)))
    streams = []
    for py in range(2):
        for px in range(2):
            cols = [xp[:,
                       py + dy: py + dy + 2 * Ho - 1: 2,
                       px + dx: px + dx + 2 * Wo - 1: 2, :]
                    for dy in range(3) for dx in range(3)]
            p = jnp.concatenate(cols, axis=-1)            # (B, Ho, Wo, 9C)
            streams.append(p.reshape(B * Ho * Wo, 9 * C))
    return streams


def conv_relu_pool(x_nhwc, w, b, *, compute_dtype=jnp.bfloat16):
    """Conv2d(3x3, s=1, p=1) + ReLU + MaxPool2d(2) as a single pallas_call."""
    B, H, W, C = x_nhwc.shape
    Ho, Wo = H // 2, W // 2
    K, Npad = w.shape
    assert K == 9 * C, (K, C)
    streams = _pool_im2col(x_nhwc, compute_dtype)
    M = B * Ho * Wo
    tm = _row_tile(M, Ho * Wo)                            # multiple of Ho*Wo
    out = pl.pallas_call(
        _conv_pool_kernel,
        out_shape=jax.ShapeDtypeStruct((M, Npad), compute_dtype),
        grid_spec=pltpu.PrefetchScalarGridSpec(
            num_scalar_prefetch=0,
            grid=(M // tm,),
            in_specs=[pl.BlockSpec((tm, K), lambda i: (i, 0))] * 4 + [
                pl.BlockSpec((K, Npad), lambda i: (0, 0)),    # weight (resident)
                pl.BlockSpec((1, Npad), lambda i: (0, 0)),    # bias
            ],
            out_specs=pl.BlockSpec((tm, Npad), lambda i: (i, 0)),
        ),
        compiler_params=pltpu.CompilerParams(
            dimension_semantics=("parallel",)),
    )(*streams, w.astype(compute_dtype), b.reshape(1, Npad))
    return out.reshape(B, Ho, Wo, Npad)


def classifier(feat, w1, b1, w2, b2, w3, b3):
    """Fused Linear(2048,256)+ReLU -> Linear(256,128)+ReLU -> Linear(128,Npad)."""
    M, K1 = feat.shape
    N1, N2, N3 = w1.shape[1], w2.shape[1], w3.shape[1]
    tm = _fc_row_tile(M)
    return pl.pallas_call(
        _classifier_kernel,
        out_shape=jax.ShapeDtypeStruct((M, N3), jnp.float32),
        grid_spec=pltpu.PrefetchScalarGridSpec(
            num_scalar_prefetch=0,
            grid=(M // tm,),
            in_specs=[
                pl.BlockSpec((tm, K1), lambda i: (i, 0)),
                pl.BlockSpec(w1.shape, lambda i: (0, 0)),
                pl.BlockSpec((1, N1), lambda i: (0, 0)),
                pl.BlockSpec(w2.shape, lambda i: (0, 0)),
                pl.BlockSpec((1, N2), lambda i: (0, 0)),
                pl.BlockSpec(w3.shape, lambda i: (0, 0)),
                pl.BlockSpec((1, N3), lambda i: (0, 0)),
            ],
            out_specs=pl.BlockSpec((tm, N3), lambda i: (i, 0)),
        ),
        compiler_params=pltpu.CompilerParams(
            dimension_semantics=("parallel",)),
    )(feat, w1, b1.reshape(1, N1), w2, b2.reshape(1, N2), w3, b3.reshape(1, N3))


# ------------------------------ parameters -----------------------------------

def init_params(key, num_classes=10):
    ks = jax.random.split(key, 10)

    def nrm(k, shape, scale=0.05):
        return scale * jax.random.normal(k, shape, dtype=jnp.float32)

    def pad_lanes(a, n=LANE):
        pad = [(0, 0)] * (a.ndim - 1) + [(0, n - a.shape[-1])]
        return jnp.pad(a, pad)

    # Conv weights stored (kh, kw, cin, cout) -> (9*cin, cout); cout zero-padded
    # to 128 so the fused conv kernels emit lane-dense (unmasked) stores.
    w1 = nrm(ks[0], (3, 3, 3, 64)).reshape(27, 64)
    b1 = nrm(ks[1], (64,))
    w2 = nrm(ks[2], (3, 3, 64, 32)).reshape(576, 32)
    b2 = nrm(ks[3], (32,))

    # Linear weights stored (in, out) so kernels compute x @ W + b.
    wf1 = nrm(ks[4], (32 * 8 * 8, 256))    # row j = torch channel-major index
    bf1 = nrm(ks[5], (256,))
    wf2 = nrm(ks[6], (256, 128))
    bf2 = nrm(ks[7], (128,))
    wf3 = nrm(ks[8], (128, num_classes))
    bf3 = nrm(ks[9], (num_classes,))

    # Fold torch.flatten(NCHW) channel-major order into wf1: permuted row i
    # corresponds to NHWC-flattened feature i = (ho*8 + wo)*32 + c.
    i = jnp.arange(32 * 8 * 8)
    c, wo, ho = i % 32, (i // 32) % 8, i // 256
    wf1_nhwc = wf1[c * 64 + ho * 8 + wo, :]

    bf16 = jnp.bfloat16
    return {
        "w1": pad_lanes(w1).astype(bf16), "b1": pad_lanes(b1),
        "w2": pad_lanes(w2).astype(bf16), "b2": pad_lanes(b2),
        "wf1": wf1_nhwc.astype(bf16), "bf1": bf1,
        "wf2": wf2.astype(bf16), "bf2": bf2,
        "wf3": pad_lanes(wf3).astype(bf16), "bf3": pad_lanes(bf3),
    }


# ------------------------------ forward pass ---------------------------------

def lenet5_forward(params, x_nchw, num_classes=10):
    B = x_nchw.shape[0]
    x = jnp.transpose(x_nchw, (0, 2, 3, 1))               # NHWC (B, 32, 32, 3)

    # features: two fused Conv+ReLU+MaxPool stages (outputs lane-padded to 128,
    # padded channels are exactly zero -> cheap slices recover real channels).
    y = conv_relu_pool(x, params["w1"], params["b1"])             # (B,16,16,128)
    y = conv_relu_pool(y[..., :64], params["w2"], params["b2"])   # (B, 8, 8,128)

    # torch.flatten(x, 1)'s channel-major order is baked into wf1's rows, so
    # the NHWC-flattened features feed FC1 directly (no runtime transpose).
    feat = y[..., :32].reshape(B, 8 * 8 * 32)                     # (B, 2048) bf16

    logits = classifier(feat, params["wf1"], params["bf1"],
                        params["wf2"], params["bf2"],
                        params["wf3"], params["bf3"])             # (B, 128) f32
    return logits[:, :num_classes]                                # drop pad lanes


if __name__ == "__main__":
    key = jax.random.PRNGKey(0)
    k_x, k_p = jax.random.split(key)
    # Classifier expects 32*8*8 features => 32x32 input (CIFAR-sized), batch=2.
    x = jax.random.normal(k_x, (2, 3, 32, 32), dtype=jnp.float32)
    params = init_params(k_p)

    fwd = jax.jit(lenet5_forward)
    out = jax.block_until_ready(fwd(params, x))
    assert out.shape == (2, 10), out.shape
    assert bool(jnp.all(jnp.isfinite(out)))
    print("KERNEL_OK")
</pallas_src>

<mosaic_0001>
module attributes {stable_mosaic.version = 11 : i64} {
  func.func @_conv_pool_kernel(%arg0: i32, %arg1: memref<256x27xbf16, #tpu.memory_space<vmem>>, %arg2: memref<256x27xbf16, #tpu.memory_space<vmem>>, %arg3: memref<256x27xbf16, #tpu.memory_space<vmem>>, %arg4: memref<256x27xbf16, #tpu.memory_space<vmem>>, %arg5: memref<27x128xbf16, #tpu.memory_space<vmem>>, %arg6: memref<1x128xf32, #tpu.memory_space<vmem>>, %arg7: memref<256x128xbf16, #tpu.memory_space<vmem>>) attributes {dimension_semantics = [#tpu.dimension_semantics<parallel>], iteration_bounds = array<i64: 2>, scalar_prefetch = 0 : i64, scratch_operands = 0 : i64, tpu.core_type = #tpu.core_type<tc>, window_params = [{transform_indices = @transform_0, window_bounds = array<i64: 256, 27>}, {transform_indices = @transform_1, window_bounds = array<i64: 256, 27>}, {transform_indices = @transform_2, window_bounds = array<i64: 256, 27>}, {transform_indices = @transform_3, window_bounds = array<i64: 256, 27>}, {pipeline_mode = #tpu.pipeline_mode<synchronous>, transform_indices = @transform_4, window_bounds = array<i64: 27, 128>}, {pipeline_mode = #tpu.pipeline_mode<synchronous>, transform_indices = @transform_5, window_bounds = array<i64: 1, 128>}, {transform_indices = @transform_6, window_bounds = array<i64: 256, 128>}]} {
    %c0 = arith.constant 0 : index
    %c0_0 = arith.constant 0 : index
    %0 = vector.load %arg5[%c0, %c0_0] : memref<27x128xbf16, #tpu.memory_space<vmem>>, vector<27x128xbf16>
    %c0_1 = arith.constant 0 : index
    %c0_2 = arith.constant 0 : index
    %1 = vector.load %arg1[%c0_1, %c0_2] : memref<256x27xbf16, #tpu.memory_space<vmem>>, vector<256x27xbf16>
    %cst = arith.constant dense<0.000000e+00> : vector<256x128xf32>
    %2 = tpu.matmul %1, %0, %cst {dimension_numbers = #tpu.dot_dimension_numbers<[1], [0], [0], [1], [0, 0, 1, 1], [], []>} : vector<256x27xbf16>, vector<27x128xbf16>, vector<256x128xf32> -> vector<256x128xf32>
    %c0_3 = arith.constant 0 : index
    %c0_4 = arith.constant 0 : index
    %3 = vector.load %arg2[%c0_3, %c0_4] : memref<256x27xbf16, #tpu.memory_space<vmem>>, vector<256x27xbf16>
    %cst_5 = arith.constant dense<0.000000e+00> : vector<256x128xf32>
    %4 = tpu.matmul %3, %0, %cst_5 {dimension_numbers = #tpu.dot_dimension_numbers<[1], [0], [0], [1], [0, 0, 1, 1], [], []>} : vector<256x27xbf16>, vector<27x128xbf16>, vector<256x128xf32> -> vector<256x128xf32>
    %5 = arith.maximumf %2, %4 : vector<256x128xf32>
    %c0_6 = arith.constant 0 : index
    %c0_7 = arith.constant 0 : index
    %6 = vector.load %arg3[%c0_6, %c0_7] : memref<256x27xbf16, #tpu.memory_space<vmem>>, vector<256x27xbf16>
    %cst_8 = arith.constant dense<0.000000e+00> : vector<256x128xf32>
    %7 = tpu.matmul %6, %0, %cst_8 {dimension_numbers = #tpu.dot_dimension_numbers<[1], [0], [0], [1], [0, 0, 1, 1], [], []>} : vector<256x27xbf16>, vector<27x128xbf16>, vector<256x128xf32> -> vector<256x128xf32>
    %c0_9 = arith.constant 0 : index
    %c0_10 = arith.constant 0 : index
    %8 = vector.load %arg4[%c0_9, %c0_10] : memref<256x27xbf16, #tpu.memory_space<vmem>>, vector<256x27xbf16>
    %cst_11 = arith.constant dense<0.000000e+00> : vector<256x128xf32>
    %9 = tpu.matmul %8, %0, %cst_11 {dimension_numbers = #tpu.dot_dimension_numbers<[1], [0], [0], [1], [0, 0, 1, 1], [], []>} : vector<256x27xbf16>, vector<27x128xbf16>, vector<256x128xf32> -> vector<256x128xf32>
    %10 = arith.maximumf %7, %9 : vector<256x128xf32>
    %11 = arith.maximumf %5, %10 : vector<256x128xf32>
    %c0_12 = arith.constant 0 : index
    %c0_13 = arith.constant 0 : index
    %12 = vector.load %arg6[%c0_12, %c0_13] : memref<1x128xf32, #tpu.memory_space<vmem>>, vector<1x128xf32>
    %13 = vector.broadcast %12 : vector<1x128xf32> to vector<256x128xf32>
    %14 = arith.addf %11, %13 : vector<256x128xf32>
    %cst_14 = arith.constant 0.000000e+00 : f32
    %15 = vector.broadcast %cst_14 : f32 to vector<256x128xf32>
    %16 = arith.maximumf %14, %15 : vector<256x128xf32>
    %17 = arith.truncf %16 : vector<256x128xf32> to vector<256x128xbf16>
    %c0_15 = arith.constant 0 : index
    %c0_16 = arith.constant 0 : index
    %18 = vector.load %arg7[%c0_15, %c0_16] : memref<256x128xbf16, #tpu.memory_space<vmem>>, vector<256x128xbf16>
    tpu.vector_store %arg7[%c0_15, %c0_16], %17 {strides = array<i32>} : memref<256x128xbf16, #tpu.memory_space<vmem>>, vector<256x128xbf16>,
    return
  }
  func.func @transform_0(%arg0: i32) -> (i32, i32) {
    %c0_i32 = arith.constant 0 : i32
    %c0_i32_0 = arith.constant 0 : i32
    return %arg0, %c0_i32 : i32, i32
  }
  func.func @transform_1(%arg0: i32) -> (i32, i32) {
    %c0_i32 = arith.constant 0 : i32
    %c0_i32_0 = arith.constant 0 : i32
    return %arg0, %c0_i32 : i32, i32
  }
  func.func @transform_2(%arg0: i32) -> (i32, i32) {
    %c0_i32 = arith.constant 0 : i32
    %c0_i32_0 = arith.constant 0 : i32
    return %arg0, %c0_i32 : i32, i32
  }
  func.func @transform_3(%arg0: i32) -> (i32, i32) {
    %c0_i32 = arith.constant 0 : i32
    %c0_i32_0 = arith.constant 0 : i32
    return %arg0, %c0_i32 : i32, i32
  }
  func.func @transform_4(%arg0: i32) -> (i32, i32) {
    %c0_i32 = arith.constant 0 : i32
    %c0_i32_0 = arith.constant 0 : i32
    %c0_i32_1 = arith.constant 0 : i32
    return %c0_i32, %c0_i32_0 : i32, i32
  }
  func.func @transform_5(%arg0: i32) -> (i32, i32) {
    %c0_i32 = arith.constant 0 : i32
    %c0_i32_0 = arith.constant 0 : i32
    %c0_i32_1 = arith.constant 0 : i32
    return %c0_i32, %c0_i32_0 : i32, i32
  }
  func.func @transform_6(%arg0: i32) -> (i32, i32) {
    %c0_i32 = arith.constant 0 : i32
    %c0_i32_0 = arith.constant 0 : i32
    return %arg0, %c0_i32 : i32, i32
  }
}

module attributes {stable_mosaic.version = 11 : i64} {
  func.func @_classifier_kernel(%arg0: i32, %arg1: memref<2x2048xbf16, #tpu.memory_space<vmem>>, %arg2: memref<2048x256xbf16, #tpu.memory_space<vmem>>, %arg3: memref<1x256xf32, #tpu.memory_space<vmem>>, %arg4: memref<256x128xbf16, #tpu.memory_space<vmem>>, %arg5: memref<1x128xf32, #tpu.memory_space<vmem>>, %arg6: memref<128x128xbf16, #tpu.memory_space<vmem>>, %arg7: memref<1x128xf32, #tpu.memory_space<vmem>>, %arg8: memref<2x128xf32, #tpu.memory_space<vmem>>) attributes {dimension_semantics = [#tpu.dimension_semantics<parallel>], iteration_bounds = array<i64: 1>, scalar_prefetch = 0 : i64, scratch_operands = 0 : i64, tpu.core_type = #tpu.core_type<tc>, window_params = [{transform_indices = @transform_0, window_bounds = array<i64: 2, 2048>}, {pipeline_mode = #tpu.pipeline_mode<synchronous>, transform_indices = @transform_1, window_bounds = array<i64: 2048, 256>}, {pipeline_mode = #tpu.pipeline_mode<synchronous>, transform_indices = @transform_2, window_bounds = array<i64: 1, 256>}, {pipeline_mode = #tpu.pipeline_mode<synchronous>, transform_indices = @transform_3, window_bounds = array<i64: 256, 128>}, {pipeline_mode = #tpu.pipeline_mode<synchronous>, transform_indices = @transform_4, window_bounds = array<i64: 1, 128>}, {pipeline_mode = #tpu.pipeline_mode<synchronous>, transform_indices = @transform_5, window_bounds = array<i64: 128, 128>}, {pipeline_mode = #tpu.pipeline_mode<synchronous>, transform_indices = @transform_6, window_bounds = array<i64: 1, 128>}, {transform_indices = @transform_7, window_bounds = array<i64: 2, 128>}]} {
    %c0 = arith.constant 0 : index
    %c0_0 = arith.constant 0 : index
    %0 = vector.load %arg1[%c0, %c0_0] : memref<2x2048xbf16, #tpu.memory_space<vmem>>, vector<2x2048xbf16>
    %c0_1 = arith.constant 0 : index
    %c0_2 = arith.constant 0 : index
    %1 = vector.load %arg2[%c0_1, %c0_2] : memref<2048x256xbf16, #tpu.memory_space<vmem>>, vector<2048x256xbf16>
    %cst = arith.constant dense<0.000000e+00> : vector<2x256xf32>
    %2 = tpu.matmul %0, %1, %cst {dimension_numbers = #tpu.dot_dimension_numbers<[1], [0], [0], [1], [0, 0, 1, 1], [], []>} : vector<2x2048xbf16>, vector<2048x256xbf16>, vector<2x256xf32> -> vector<2x256xf32>
    %c0_3 = arith.constant 0 : index
    %c0_4 = arith.constant 0 : index
    %3 = vector.load %arg3[%c0_3, %c0_4] : memref<1x256xf32, #tpu.memory_space<vmem>>, vector<1x256xf32>
    %4 = vector.broadcast %3 : vector<1x256xf32> to vector<2x256xf32>
    %5 = arith.addf %2, %4 : vector<2x256xf32>
    %cst_5 = arith.constant 0.000000e+00 : f32
    %6 = vector.broadcast %cst_5 : f32 to vector<2x256xf32>
    %7 = arith.maximumf %5, %6 : vector<2x256xf32>
    %8 = arith.truncf %7 : vector<2x256xf32> to vector<2x256xbf16>
    %c0_6 = arith.constant 0 : index
    %c0_7 = arith.constant 0 : index
    %9 = vector.load %arg4[%c0_6, %c0_7] : memref<256x128xbf16, #tpu.memory_space<vmem>>, vector<256x128xbf16>
    %cst_8 = arith.constant dense<0.000000e+00> : vector<2x128xf32>
    %10 = tpu.matmul %8, %9, %cst_8 {dimension_numbers = #tpu.dot_dimension_numbers<[1], [0], [0], [1], [0, 0, 1, 1], [], []>} : vector<2x256xbf16>, vector<256x128xbf16>, vector<2x128xf32> -> vector<2x128xf32>
    %c0_9 = arith.constant 0 : index
    %c0_10 = arith.constant 0 : index
    %11 = vector.load %arg5[%c0_9, %c0_10] : memref<1x128xf32, #tpu.memory_space<vmem>>, vector<1x128xf32>
    %12 = vector.broadcast %11 : vector<1x128xf32> to vector<2x128xf32>
    %13 = arith.addf %10, %12 : vector<2x128xf32>
    %cst_11 = arith.constant 0.000000e+00 : f32
    %14 = vector.broadcast %cst_11 : f32 to vector<2x128xf32>
    %15 = arith.maximumf %13, %14 : vector<2x128xf32>
    %16 = arith.truncf %15 : vector<2x128xf32> to vector<2x128xbf16>
    %c0_12 = arith.constant 0 : index
    %c0_13 = arith.constant 0 : index
    %17 = vector.load %arg6[%c0_12, %c0_13] : memref<128x128xbf16, #tpu.memory_space<vmem>>, vector<128x128xbf16>
    %cst_14 = arith.constant dense<0.000000e+00> : vector<2x128xf32>
    %18 = tpu.matmul %16, %17, %cst_14 {dimension_numbers = #tpu.dot_dimension_numbers<[1], [0], [0], [1], [0, 0, 1, 1], [], []>} : vector<2x128xbf16>, vector<128x128xbf16>, vector<2x128xf32> -> vector<2x128xf32>
    %c0_15 = arith.constant 0 : index
    %c0_16 = arith.constant 0 : index
    %19 = vector.load %arg7[%c0_15, %c0_16] : memref<1x128xf32, #tpu.memory_space<vmem>>, vector<1x128xf32>
    %20 = vector.broadcast %19 : vector<1x128xf32> to vector<2x128xf32>
    %21 = arith.addf %18, %20 : vector<2x128xf32>
    %c0_17 = arith.constant 0 : index
    %c0_18 = arith.constant 0 : index
    %22 = vector.load %arg8[%c0_17, %c0_18] : memref<2x128xf32, #tpu.memory_space<vmem>>, vector<2x128xf32>
    tpu.vector_store %arg8[%c0_17, %c0_18], %21 {strides = array<i32>} : memref<2x128xf32, #tpu.memory_space<vmem>>, vector<2x128xf32>,
    return
  }
  func.func @transform_0(%arg0: i32) -> (i32, i32) {
    %c0_i32 = arith.constant 0 : i32
    %c0_i32_0 = arith.constant 0 : i32
    return %arg0, %c0_i32 : i32, i32
  }
  func.func @transform_1(%arg0: i32) -> (i32, i32) {
    %c0_i32 = arith.constant 0 : i32
    %c0_i32_0 = arith.constant 0 : i32
    %c0_i32_1 = arith.constant 0 : i32
    return %c0_i32, %c0_i32_0 : i32, i32
  }
  func.func @transform_2(%arg0: i32) -> (i32, i32) {
    %c0_i32 = arith.constant 0 : i32
    %c0_i32_0 = arith.constant 0 : i32
    %c0_i32_1 = arith.constant 0 : i32
    return %c0_i32, %c0_i32_0 : i32, i32
  }
  func.func @transform_3(%arg0: i32) -> (i32, i32) {
    %c0_i32 = arith.constant 0 : i32
    %c0_i32_0 = arith.constant 0 : i32
    %c0_i32_1 = arith.constant 0 : i32
    return %c0_i32, %c0_i32_0 : i32, i32
  }
  func.func @transform_4(%arg0: i32) -> (i32, i32) {
    %c0_i32 = arith.constant 0 : i32
    %c0_i32_0 = arith.constant 0 : i32
    %c0_i32_1 = arith.constant 0 : i32
    return %c0_i32, %c0_i32_0 : i32, i32
  }
  func.func @transform_5(%arg0: i32) -> (i32, i32) {
    %c0_i32 = arith.constant 0 : i32
    %c0_i32_0 = arith.constant 0 : i32
    %c0_i32_1 = arith.constant 0 : i32
    return %c0_i32, %c0_i32_0 : i32, i32
  }
  func.func @transform_6(%arg0: i32) -> (i32, i32) {
    %c0_i32 = arith.constant 0 : i32
    %c0_i32_0 = arith.constant 0 : i32
    %c0_i32_1 = arith.constant 0 : i32
    return %c0_i32, %c0_i32_0 : i32, i32
  }
  func.func @transform_7(%arg0: i32) -> (i32, i32) {
    %c0_i32 = arith.constant 0 : i32
    %c0_i32_0 = arith.constant 0 : i32
    return %arg0, %c0_i32 : i32, i32
  }
}

module attributes {stable_mosaic.version = 11 : i64} {
  func.func @_conv_pool_kernel(%arg0: i32, %arg1: memref<64x576xbf16, #tpu.memory_space<vmem>>, %arg2: memref<64x576xbf16, #tpu.memory_space<vmem>>, %arg3: memref<64x576xbf16, #tpu.memory_space<vmem>>, %arg4: memref<64x576xbf16, #tpu.memory_space<vmem>>, %arg5: memref<576x128xbf16, #tpu.memory_space<vmem>>, %arg6: memref<1x128xf32, #tpu.memory_space<vmem>>, %arg7: memref<64x128xbf16, #tpu.memory_space<vmem>>) attributes {dimension_semantics = [#tpu.dimension_semantics<parallel>], iteration_bounds = array<i64: 2>, scalar_prefetch = 0 : i64, scratch_operands = 0 : i64, tpu.core_type = #tpu.core_type<tc>, window_params = [{transform_indices = @transform_0, window_bounds = array<i64: 64, 576>}, {transform_indices = @transform_1, window_bounds = array<i64: 64, 576>}, {transform_indices = @transform_2, window_bounds = array<i64: 64, 576>}, {transform_indices = @transform_3, window_bounds = array<i64: 64, 576>}, {pipeline_mode = #tpu.pipeline_mode<synchronous>, transform_indices = @transform_4, window_bounds = array<i64: 576, 128>}, {pipeline_mode = #tpu.pipeline_mode<synchronous>, transform_indices = @transform_5, window_bounds = array<i64: 1, 128>}, {transform_indices = @transform_6, window_bounds = array<i64: 64, 128>}]} {
    %c0 = arith.constant 0 : index
    %c0_0 = arith.constant 0 : index
    %0 = vector.load %arg5[%c0, %c0_0] : memref<576x128xbf16, #tpu.memory_space<vmem>>, vector<576x128xbf16>
    %c0_1 = arith.constant 0 : index
    %c0_2 = arith.constant 0 : index
    %1 = vector.load %arg1[%c0_1, %c0_2] : memref<64x576xbf16, #tpu.memory_space<vmem>>, vector<64x576xbf16>
    %cst = arith.constant dense<0.000000e+00> : vector<64x128xf32>
    %2 = tpu.matmul %1, %0, %cst {dimension_numbers = #tpu.dot_dimension_numbers<[1], [0], [0], [1], [0, 0, 1, 1], [], []>} : vector<64x576xbf16>, vector<576x128xbf16>, vector<64x128xf32> -> vector<64x128xf32>
    %c0_3 = arith.constant 0 : index
    %c0_4 = arith.constant 0 : index
    %3 = vector.load %arg2[%c0_3, %c0_4] : memref<64x576xbf16, #tpu.memory_space<vmem>>, vector<64x576xbf16>
    %cst_5 = arith.constant dense<0.000000e+00> : vector<64x128xf32>
    %4 = tpu.matmul %3, %0, %cst_5 {dimension_numbers = #tpu.dot_dimension_numbers<[1], [0], [0], [1], [0, 0, 1, 1], [], []>} : vector<64x576xbf16>, vector<576x128xbf16>, vector<64x128xf32> -> vector<64x128xf32>
    %5 = arith.maximumf %2, %4 : vector<64x128xf32>
    %c0_6 = arith.constant 0 : index
    %c0_7 = arith.constant 0 : index
    %6 = vector.load %arg3[%c0_6, %c0_7] : memref<64x576xbf16, #tpu.memory_space<vmem>>, vector<64x576xbf16>
    %cst_8 = arith.constant dense<0.000000e+00> : vector<64x128xf32>
    %7 = tpu.matmul %6, %0, %cst_8 {dimension_numbers = #tpu.dot_dimension_numbers<[1], [0], [0], [1], [0, 0, 1, 1], [], []>} : vector<64x576xbf16>, vector<576x128xbf16>, vector<64x128xf32> -> vector<64x128xf32>
    %c0_9 = arith.constant 0 : index
    %c0_10 = arith.constant 0 : index
    %8 = vector.load %arg4[%c0_9, %c0_10] : memref<64x576xbf16, #tpu.memory_space<vmem>>, vector<64x576xbf16>
    %cst_11 = arith.constant dense<0.000000e+00> : vector<64x128xf32>
    %9 = tpu.matmul %8, %0, %cst_11 {dimension_numbers = #tpu.dot_dimension_numbers<[1], [0], [0], [1], [0, 0, 1, 1], [], []>} : vector<64x576xbf16>, vector<576x128xbf16>, vector<64x128xf32> -> vector<64x128xf32>
    %10 = arith.maximumf %7, %9 : vector<64x128xf32>
    %11 = arith.maximumf %5, %10 : vector<64x128xf32>
    %c0_12 = arith.constant 0 : index
    %c0_13 = arith.constant 0 : index
    %12 = vector.load %arg6[%c0_12, %c0_13] : memref<1x128xf32, #tpu.memory_space<vmem>>, vector<1x128xf32>
    %13 = vector.broadcast %12 : vector<1x128xf32> to vector<64x128xf32>
    %14 = arith.addf %11, %13 : vector<64x128xf32>
    %cst_14 = arith.constant 0.000000e+00 : f32
    %15 = vector.broadcast %cst_14 : f32 to vector<64x128xf32>
    %16 = arith.maximumf %14, %15 : vector<64x128xf32>
    %17 = arith.truncf %16 : vector<64x128xf32> to vector<64x128xbf16>
    %c0_15 = arith.constant 0 : index
    %c0_16 = arith.constant 0 : index
    %18 = vector.load %arg7[%c0_15, %c0_16] : memref<64x128xbf16, #tpu.memory_space<vmem>>, vector<64x128xbf16>
    tpu.vector_store %arg7[%c0_15, %c0_16], %17 {strides = array<i32>} : memref<64x128xbf16, #tpu.memory_space<vmem>>, vector<64x128xbf16>,
    return
  }
  func.func @transform_0(%arg0: i32) -> (i32, i32) {
    %c0_i32 = arith.constant 0 : i32
    %c0_i32_0 = arith.constant 0 : i32
    return %arg0, %c0_i32 : i32, i32
  }
  func.func @transform_1(%arg0: i32) -> (i32, i32) {
    %c0_i32 = arith.constant 0 : i32
    %c0_i32_0 = arith.constant 0 : i32
    return %arg0, %c0_i32 : i32, i32
  }
  func.func @transform_2(%arg0: i32) -> (i32, i32) {
    %c0_i32 = arith.constant 0 : i32
    %c0_i32_0 = arith.constant 0 : i32
    return %arg0, %c0_i32 : i32, i32
  }
  func.func @transform_3(%arg0: i32) -> (i32, i32) {
    %c0_i32 = arith.constant 0 : i32
    %c0_i32_0 = arith.constant 0 : i32
    return %arg0, %c0_i32 : i32, i32
  }
  func.func @transform_4(%arg0: i32) -> (i32, i32) {
    %c0_i32 = arith.constant 0 : i32
    %c0_i32_0 = arith.constant 0 : i32
    %c0_i32_1 = arith.constant 0 : i32
    return %c0_i32, %c0_i32_0 : i32, i32
  }
  func.func @transform_5(%arg0: i32) -> (i32, i32) {
    %c0_i32 = arith.constant 0 : i32
    %c0_i32_0 = arith.constant 0 : i32
    %c0_i32_1 = arith.constant 0 : i32
    return %c0_i32, %c0_i32_0 : i32, i32
  }
  func.func @transform_6(%arg0: i32) -> (i32, i32) {
    %c0_i32 = arith.constant 0 : i32
    %c0_i32_0 = arith.constant 0 : i32
    return %arg0, %c0_i32 : i32, i32
  }
}

</mosaic_0001>

<bundles_post_ra>
// kernel: lenet5_forward.3
= control target key start
LH: loop header
LB: loop body
LE: loop exit
PB: predicated region body
PF: predicated region fallthrough
CT: control target
= control target key end

     0   :  { %s2690_s21 = smov 0   ;;  %s3208_s0 = inlined_call_operand.vmem [shape: bf16[512,27], index: 0, kind: input, shape index: {}]   ;;  %s3209_s1 = inlined_call_operand.vmem [shape: bf16[512,27], index: 1, kind: input, shape index: {}]   ;;  %s3210_s2 = inlined_call_operand.vmem [shape: bf16[512,27], index: 2, kind: input, shape index: {}]   ;;  %s3211_s3 = inlined_call_operand.vmem [shape: bf16[512,27], index: 3, kind: input, shape index: {}]   ;;  %s3212_s4 = inlined_call_operand.vmem [shape: bf16[27,128], index: 4, kind: input, shape index: {}]   ;;  %s3213_s5 = inlined_call_operand.vmem [shape: f32[1,128], index: 5, kind: input, shape index: {}]   ;;  %s3214_s6 = inlined_call_operand.vmem [shape: bf16[512,128], index: 6, kind: output, shape index: {}]  }
   0x1 LB: > { %s2048_s22 = sadd.s32 4294967295, %s2652_s21   ;;  %p2052_p0 = scmp.ge.s32.totalorder %s2652_s21, 1  ;;  %s2652_s21 = sphi %s2690_s21, %s16_s21  }
   0x2   : > { %p246_p1 = scmp.lt.s32.totalorder %s2652_s21, 3 }
   0x4   : > { %p247_p2 = pnand %p2052_p0, %p246_p1 }
   0x6   : > { %250 = sbr.rel (%p247_p2) target bundleno = 369 (0x171), region = 44 }
   0xd   : > { %v2580_v0 = vld [vmem:[%s3212_s4] sm:$0xff]   ;;  %vm498_vm0 = vcmask 1044480   ;;  %v2581_v1 = vld [vmem:[%s3212_s4 + $0x8] sm:$0x3f]   ;;  %vm499_vm1 = vcmask 1045504   ;;  %s2053_s27 = sshll.u32 %s2048_s22, 5 }
   0xe   : > { %2427 = vmatprep.subr.bf16.mxu0 %v2580_v0  ;;  %2463 = vmatprep.subr.bf16.mxu1 %v2580_v0  ;;  %v2654_v2 = vmov 65535   ;;  %p292_p3 = scmp.lt.s32.totalorder %s2053_s27, 63  ;;  %vm449_vm2 = vcmask 220160  }
   0xf   : > { %2428 = vmatpush3.bf16.msra.mxu0 %v2580_v0  ;;  %2464 = vmatpush3.bf16.msra.mxu1 %v2580_v0  ;;  %v500_v3 = vsel %vm498_vm0, 4294967295, %v2654_v2 }
  0x10   : > { %v501_v4 = vsel %vm499_vm1, %v500_v3, 0  ;;  %s3299_s27 = smov (!%p292_p3, %s2053_s27), 63 }
  0x11   : > { %v503_v5 = vand.u32 %v2581_v1, %v501_v4  ;;  %s2704_s28 = sshll.u32 %s3299_s27, 2 }
  0x12   : > { %s2710_s7 = scalar_lea.vmem %s3208_s0, %s2704_s28  ;;  %s2716_s10 = scalar_lea.vmem %s3209_s1, %s2704_s28 }
  0x13   : > { %2429 = vmatprep.subr.bf16.mxu0 %v503_v5  ;;  %2465 = vmatprep.subr.bf16.mxu1 %v503_v5  ;;  %v2582_v6 = vld [vmem:[%s2710_s7] sm:$0xff]   ;;  %v2584_v8 = vld [vmem:[%s2710_s7 + $0x8] sm:$0xff]   ;;  %v2586_v10 = vld [vmem:[%s2710_s7 + $0x10] sm:$0xff]   ;;  %s2759_s13 = scalar_lea.vmem %s3210_s2, %s2704_s28  ;;  %s2766_s16 = scalar_lea.vmem %s3211_s3, %s2704_s28 }
  0x14   : > { %2430 = vmatpush3.bf16.msra.mxu0 %v503_v5  ;;  %2466 = vmatpush3.bf16.msra.mxu1 %v503_v5  ;;  %v2583_v7 = vld [vmem:[%s2716_s10] sm:$0xff]   ;;  %v2585_v9 = vld [vmem:[%s2716_s10 + $0x8] sm:$0xff]   ;;  %v2587_v11 = vld [vmem:[%s2716_s10 + $0x10] sm:$0xff]   ;;  %s3075_s22 = scalar_lea.vmem %s3214_s6, %s2704_s28 }
  0x15   : > { %2499 = vmatprep.subr.bf16.mxu0 %v2580_v0  ;;  %2535 = vmatprep.subr.bf16.mxu1 %v2580_v0  ;;  %v2588_v12 = vld [vmem:[%s2710_s7 + $0x18] sm:$0xff]   ;;  %v2590_v14 = vld [vmem:[%s2710_s7 + $0x20] sm:$0xff]   ;;  %v2592_v16 = vld [vmem:[%s2710_s7 + $0x28] sm:$0xff]  }
  0x16   : > { %2431 = vmatprep.mubr.msk.bf16.mxu0 %vm449_vm2, %v2582_v6  ;;  %2467 = vmatprep.mubr.msk.bf16.mxu1 %vm449_vm2, %v2583_v7  ;;  %v2589_v13 = vld [vmem:[%s2716_s10 + $0x18] sm:$0xff]   ;;  %v2591_v15 = vld [vmem:[%s2716_s10 + $0x20] sm:$0xff]   ;;  %v2593_v17 = vld [vmem:[%s2716_s10 + $0x28] sm:$0xff]  }
  0x17   : > { %2432 = vmatmul.mubr.msk.bf16.vlgmr.msra.gmra.mrb[0].mxu0 %vm449_vm2, %v2584_v8  ;;  %2468 = vmatmul.mubr.msk.bf16.vlgmr.msra.gmra.mrb[0].mxu1 %vm449_vm2, %v2585_v9  ;;  %v2594_v18 = vld [vmem:[%s2710_s7 + $0x30] sm:$0xff]   ;;  %v2596_v20 = vld [vmem:[%s2710_s7 + $0x38] sm:$0xff]   ;;  %v2598_v22 = vld [vmem:[%s2710_s7 + $0x40] sm:$0xff]  }
  0x18   : > { %2500 = vmatpush3.bf16.msra.mxu0 %v2580_v0  ;;  %2536 = vmatpush3.bf16.msra.mxu1 %v2580_v0  ;;  %v2595_v19 = vld [vmem:[%s2716_s10 + $0x30] sm:$0xff]   ;;  %v2597_v21 = vld [vmem:[%s2716_s10 + $0x38] sm:$0xff]   ;;  %v2599_v23 = vld [vmem:[%s2716_s10 + $0x40] sm:$0xff]  }
  0x19   : > { %2435 = vmatprep.mubr.msk.bf16.mxu0 %vm449_vm2, %v2586_v10  ;;  %2471 = vmatprep.mubr.msk.bf16.mxu1 %vm449_vm2, %v2587_v11  ;;  %v2600_v24 = vld [vmem:[%s2710_s7 + $0x48] sm:$0xff]   ;;  %v2602_v26 = vld [vmem:[%s2710_s7 + $0x50] sm:$0xff]   ;;  %v2604_v28 = vld [vmem:[%s2710_s7 + $0x58] sm:$0xff]  }
  0x1a   : > { %2501 = vmatprep.subr.bf16.mxu0 %v503_v5  ;;  %2537 = vmatprep.subr.bf16.mxu1 %v503_v5  ;;  %v2601_v25 = vld [vmem:[%s2716_s10 + $0x48] sm:$0xff]   ;;  %v2603_v27 = vld [vmem:[%s2716_s10 + $0x50] sm:$0xff]   ;;  %v2605_v29 = vld [vmem:[%s2716_s10 + $0x58] sm:$0xff]  }
  0x1b   : > { %v2606_v30 = vld [vmem:[%s2710_s7 + $0x60] sm:$0xff]   ;;  %v2608_v32 = vld [vmem:[%s2710_s7 + $0x68] sm:$0xff]   ;;  %v2610_v34 = vld [vmem:[%s2710_s7 + $0x70] sm:$0xff]  }
  0x1c   : > { %2502 = vmatpush3.bf16.msra.mxu0 %v503_v5  ;;  %2538 = vmatpush3.bf16.msra.mxu1 %v503_v5  ;;  %v2607_v31 = vld [vmem:[%s2716_s10 + $0x60] sm:$0xff]   ;;  %v2609_v33 = vld [vmem:[%s2716_s10 + $0x68] sm:$0xff]   ;;  %v2611_v35 = vld [vmem:[%s2716_s10 + $0x70] sm:$0xff]  }
  0x1d   : > { %v2612_v36 = vld [vmem:[%s2710_s7 + $0x78] sm:$0xff]   ;;  %v2614_v38 = vld [vmem:[%s2759_s13] sm:$0xff]   ;;  %v2616_v40 = vld [vmem:[%s2759_s13 + $0x8] sm:$0xff]  }
  0x1e   : > { %v2613_v37 = vld [vmem:[%s2716_s10 + $0x78] sm:$0xff]   ;;  %v2615_v39 = vld [vmem:[%s2766_s16] sm:$0xff]   ;;  %v2617_v41 = vld [vmem:[%s2766_s16 + $0x8] sm:$0xff]  }
  0x1f   : > { %2436 = vmatmul.mubr.msk.bf16.gmra.mrb[4].mxu0 %vm449_vm2, %v2588_v12  ;;  %2472 = vmatmul.mubr.msk.bf16.gmra.mrb[4].mxu1 %vm449_vm2, %v2589_v13  ;;  %v2618_v42 = vld [vmem:[%s2759_s13 + $0x10] sm:$0xff]   ;;  %v2620_v44 = vld [vmem:[%s2759_s13 + $0x18] sm:$0xff]   ;;  %v2622_v46 = vld [vmem:[%s2759_s13 + $0x20] sm:$0xff]  }
  0x20   : > { %2439 = vmatprep.mubr.msk.bf16.mxu0 %vm449_vm2, %v2590_v14  ;;  %2475 = vmatprep.mubr.msk.bf16.mxu1 %vm449_vm2, %v2591_v15  ;;  %v2619_v43 = vld [vmem:[%s2766_s16 + $0x10] sm:$0xff]   ;;  %v2621_v45 = vld [vmem:[%s2766_s16 + $0x18] sm:$0xff]   ;;  %v2623_v47 = vld [vmem:[%s2766_s16 + $0x20] sm:$0xff]  }
  0x21   : > { %v2624_v48 = vld [vmem:[%s2759_s13 + $0x28] sm:$0xff]   ;;  %v2626_v50 = vld [vmem:[%s2759_s13 + $0x30] sm:$0xff]   ;;  %v2628_v52 = vld [vmem:[%s2759_s13 + $0x38] sm:$0xff]  }
  0x22   : > { %v2625_v49 = vld [vmem:[%s2766_s16 + $0x28] sm:$0xff]   ;;  %v2627_v51 = vld [vmem:[%s2766_s16 + $0x30] sm:$0xff]   ;;  %v2629_v53 = vld [vmem:[%s2766_s16 + $0x38] sm:$0xff]  }
  0x23   : > { %v2630_v54 = vld [vmem:[%s2759_s13 + $0x40] sm:$0xff]   ;;  %v2632_v56 = vld [vmem:[%s2759_s13 + $0x48] sm:$0xff]   ;;  %v2634_v58 = vld [vmem:[%s2759_s13 + $0x50] sm:$0xff]  }
  0x24   : > { %v2631_v55 = vld [vmem:[%s2766_s16 + $0x40] sm:$0xff]   ;;  %v2633_v57 = vld [vmem:[%s2766_s16 + $0x48] sm:$0xff]   ;;  %v2635_v59 = vld [vmem:[%s2766_s16 + $0x50] sm:$0xff]  }
  0x25   : > { %v2636_v60 = vld [vmem:[%s2759_s13 + $0x58] sm:$0xff]   ;;  %v2638_v62 = vld [vmem:[%s2759_s13 + $0x60] sm:$0xff]   ;;  %v2640_v0 = vld [vmem:[%s2759_s13 + $0x68] sm:$0xff]  }
  0x26   : > { %v2637_v61 = vld [vmem:[%s2766_s16 + $0x58] sm:$0xff]   ;;  %v2639_v63 = vld [vmem:[%s2766_s16 + $0x60] sm:$0xff]   ;;  %v2641_v1 = vld [vmem:[%s2766_s16 + $0x68] sm:$0xff]  }
  0x27   : > { %2440 = vmatmul.mubr.msk.bf16.gmra.mrb[8].mxu0 %vm449_vm2, %v2592_v16  ;;  %2476 = vmatmul.mubr.msk.bf16.gmra.mrb[8].mxu1 %vm449_vm2, %v2593_v17  ;;  %v2642_v2 = vld [vmem:[%s2759_s13 + $0x70] sm:$0xff]   ;;  %v2644_v4 = vld [vmem:[%s2759_s13 + $0x78] sm:$0xff]  }
  0x28   : > { %2443 = vmatprep.mubr.msk.bf16.mxu0 %vm449_vm2, %v2594_v18  ;;  %2479 = vmatprep.mubr.msk.bf16.mxu1 %vm449_vm2, %v2595_v19  ;;  %v2643_v3 = vld [vmem:[%s2766_s16 + $0x70] sm:$0xff]   ;;  %v2645_v5 = vld [vmem:[%s2766_s16 + $0x78] sm:$0xff]  }
  0x2f   : > { %2444 = vmatmul.mubr.msk.bf16.gmra.mrb[12].mxu0 %vm449_vm2, %v2596_v20  ;;  %2480 = vmatmul.mubr.msk.bf16.gmra.mrb[12].mxu1 %vm449_vm2, %v2597_v21 }
  0x30   : > { %2447 = vmatprep.mubr.msk.bf16.mxu0 %vm449_vm2, %v2598_v22  ;;  %2483 = vmatprep.mubr.msk.bf16.mxu1 %vm449_vm2, %v2599_v23 }
  0x37   : > { %2448 = vmatmul.mubr.msk.bf16.gmra.mrb[16].mxu0 %vm449_vm2, %v2600_v24  ;;  %2484 = vmatmul.mubr.msk.bf16.gmra.mrb[16].mxu1 %vm449_vm2, %v2601_v25 }
  0x38   : > { %2451 = vmatprep.mubr.msk.bf16.mxu0 %vm449_vm2, %v2602_v26  ;;  %2487 = vmatprep.mubr.msk.bf16.mxu1 %vm449_vm2, %v2603_v27 }
  0x3f   : > { %2452 = vmatmul.mubr.msk.bf16.gmra.mrb[20].mxu0 %vm449_vm2, %v2604_v28  ;;  %2488 = vmatmul.mubr.msk.bf16.gmra.mrb[20].mxu1 %vm449_vm2, %v2605_v29 }
  0x40   : > { %2455 = vmatprep.mubr.msk.bf16.mxu0 %vm449_vm2, %v2606_v30  ;;  %2491 = vmatprep.mubr.msk.bf16.mxu1 %vm449_vm2, %v2607_v31 }
  0x47   : > { %2456 = vmatmul.mubr.msk.bf16.gmra.mrb[24].mxu0 %vm449_vm2, %v2608_v32  ;;  %2492 = vmatmul.mubr.msk.bf16.gmra.mrb[24].mxu1 %vm449_vm2, %v2609_v33 }
  0x48   : > { %2459 = vmatprep.mubr.msk.bf16.mxu0 %vm449_vm2, %v2610_v34  ;;  %2495 = vmatprep.mubr.msk.bf16.mxu1 %vm449_vm2, %v2611_v35 }
  0x4f   : > { %2460 = vmatmul.mubr.msk.bf16.gmra.mrb[28].mxu0 %vm449_vm2, %v2612_v36  ;;  %2496 = vmatmul.mubr.msk.bf16.gmra.mrb[28].mxu1 %vm449_vm2, %v2613_v37 }
  0x50   : > { %2503 = vmatprep.mubr.msk.bf16.mxu0 %vm449_vm2, %v2614_v38  ;;  %2539 = vmatprep.mubr.msk.bf16.mxu1 %vm449_vm2, %v2615_v39 }
  0x57   : > { %2504 = vmatmul.mubr.msk.bf16.vlgmr.msra.gmra.mrb[32].mxu0 %vm449_vm2, %v2616_v40  ;;  %2540 = vmatmul.mubr.msk.bf16.vlgmr.msra.gmra.mrb[32].mxu1 %vm449_vm2, %v2617_v41 }
  0x58   : > { %2507 = vmatprep.mubr.msk.bf16.mxu0 %vm449_vm2, %v2618_v42  ;;  %2543 = vmatprep.mubr.msk.bf16.mxu1 %vm449_vm2, %v2619_v43 }
  0x5f   : > { %2508 = vmatmul.mubr.msk.bf16.gmra.mrb[36].mxu0 %vm449_vm2, %v2620_v44  ;;  %2544 = vmatmul.mubr.msk.bf16.gmra.mrb[36].mxu1 %vm449_vm2, %v2621_v45  ;;  %v3053_v45 = vld [vmem:[%s3213_s5] ss:$0 sm:$0xff] }
  0x60   : > { %2511 = vmatprep.mubr.msk.bf16.mxu0 %vm449_vm2, %v2622_v46  ;;  %2547 = vmatprep.mubr.msk.bf16.mxu1 %vm449_vm2, %v2623_v47 }
  0x67   : > { %2512 = vmatmul.mubr.msk.bf16.gmra.mrb[40].mxu0 %vm449_vm2, %v2624_v48  ;;  %2548 = vmatmul.mubr.msk.bf16.gmra.mrb[40].mxu1 %vm449_vm2, %v2625_v49 }
  0x68   : > { %2515 = vmatprep.mubr.msk.bf16.mxu0 %vm449_vm2, %v2626_v50  ;;  %2551 = vmatprep.mubr.msk.bf16.mxu1 %vm449_vm2, %v2627_v51 }
  0x6f   : > { %2516 = vmatmul.mubr.msk.bf16.gmra.mrb[44].mxu0 %vm449_vm2, %v2628_v52  ;;  %2552 = vmatmul.mubr.msk.bf16.gmra.mrb[44].mxu1 %vm449_vm2, %v2629_v53 }
  0x70   : > { %2519 = vmatprep.mubr.msk.bf16.mxu0 %vm449_vm2, %v2630_v54  ;;  %2555 = vmatprep.mubr.msk.bf16.mxu1 %vm449_vm2, %v2631_v55 }
  0x77   : > { %2520 = vmatmul.mubr.msk.bf16.gmra.mrb[48].mxu0 %vm449_vm2, %v2632_v56  ;;  %2556 = vmatmul.mubr.msk.bf16.gmra.mrb[48].mxu1 %vm449_vm2, %v2633_v57 }
  0x78   : > { %2523 = vmatprep.mubr.msk.bf16.mxu0 %vm449_vm2, %v2634_v58  ;;  %2559 = vmatprep.mubr.msk.bf16.mxu1 %vm449_vm2, %v2635_v59 }
  0x7f   : > { %2524 = vmatmul.mubr.msk.bf16.gmra.mrb[52].mxu0 %vm449_vm2, %v2636_v60  ;;  %2560 = vmatmul.mubr.msk.bf16.gmra.mrb[52].mxu1 %vm449_vm2, %v2637_v61 }
  0x80   : > { %2527 = vmatprep.mubr.msk.bf16.mxu0 %vm449_vm2, %v2638_v62  ;;  %2563 = vmatprep.mubr.msk.bf16.mxu1 %vm449_vm2, %v2639_v63 }
  0x87   : > { %2528 = vmatmul.mubr.msk.bf16.gmra.mrb[56].mxu0 %vm449_vm2, %v2640_v0  ;;  %2564 = vmatmul.mubr.msk.bf16.gmra.mrb[56].mxu1 %vm449_vm2, %v2641_v1 }
  0x88   : > { %2531 = vmatprep.mubr.msk.bf16.mxu0 %vm449_vm2, %v2642_v2  ;;  %2567 = vmatprep.mubr.msk.bf16.mxu1 %vm449_vm2, %v2643_v3 }
  0x8f   : > { %2532 = vmatmul.mubr.msk.bf16.gmra.mrb[60].mxu0 %vm449_vm2, %v2644_v4  ;;  %2568 = vmatmul.mubr.msk.bf16.gmra.mrb[60].mxu1 %vm449_vm2, %v2645_v5 }
  0xea   : > { %v2858_v6 = vpop.f32.mrb[0].mxu0  ;;  %v2860_v7 = vpop.f32.mrb[0].mxu1 }
  0xeb   : > { %v2862_v8 = vpop.f32.mrb[1].mxu0  ;;  %v2866_v10 = vpop.f32.mrb[1].mxu1  ;;  %v3249_v21 = vmax.f32 %v2858_v6, %v2860_v7 }
  0xec   : > { %v2868_v11 = vpop.f32.mrb[2].mxu0  ;;  %v2872_v13 = vpop.f32.mrb[2].mxu1 }
  0xed   : > { %v2874_v14 = vpop.f32.mrb[3].mxu0  ;;  %v2878_v16 = vpop.f32.mrb[3].mxu1 }
  0xee   : > { %v3252_v6 = vmax.f32 %v2874_v14, %v2878_v16 }
  0xf2   : > { %v2882_v18 = vpop.f32.mrb[4].mxu0  ;;  %v2884_v19 = vpop.f32.mrb[4].mxu1 }
  0xf3   : > { %v2886_v20 = vpop.f32.mrb[5].mxu0  ;;  %v2890_v22 = vpop.f32.mrb[5].mxu1 }
  0xf4   : > { %v2892_v23 = vpop.f32.mrb[6].mxu0  ;;  %v2896_v25 = vpop.f32.mrb[6].mxu1 }
  0xf5   : > { %v2898_v26 = vpop.f32.mrb[7].mxu0  ;;  %v2902_v28 = vpop.f32.mrb[7].mxu1 }
  0xfa   : > { %v2906_v30 = vpop.f32.mrb[8].mxu0  ;;  %v2908_v31 = vpop.f32.mrb[8].mxu1 }
  0xfb   : > { %v2910_v32 = vpop.f32.mrb[9].mxu0  ;;  %v2914_v34 = vpop.f32.mrb[9].mxu1 }
  0xfc   : > { %v2916_v35 = vpop.f32.mrb[10].mxu0  ;;  %v2920_v37 = vpop.f32.mrb[10].mxu1 }
  0xfd   : > { %v2922_v38 = vpop.f32.mrb[11].mxu0  ;;  %v2926_v40 = vpop.f32.mrb[11].mxu1 }
 0x102   : > { %v2930_v42 = vpop.f32.mrb[12].mxu0  ;;  %v2932_v43 = vpop.f32.mrb[12].mxu1 }
 0x103   : > { %v2934_v44 = vpop.f32.mrb[13].mxu0  ;;  %v2938_v46 = vpop.f32.mrb[13].mxu1 }
 0x104   : > { %v2940_v47 = vpop.f32.mrb[14].mxu0  ;;  %v2944_v49 = vpop.f32.mrb[14].mxu1 }
 0x105   : > { %v2946_v50 = vpop.f32.mrb[15].mxu0  ;;  %v2950_v52 = vpop.f32.mrb[15].mxu1 }
 0x10a   : > { %v2954_v54 = vpop.f32.mrb[16].mxu0  ;;  %v2956_v55 = vpop.f32.mrb[16].mxu1 }
 0x10b   : > { %v2958_v56 = vpop.f32.mrb[17].mxu0  ;;  %v2962_v58 = vpop.f32.mrb[17].mxu1 }
 0x10c   : > { %v2964_v59 = vpop.f32.mrb[18].mxu0  ;;  %v2968_v61 = vpop.f32.mrb[18].mxu1 }
 0x10d   : > { %v2970_v62 = vpop.f32.mrb[19].mxu0  ;;  %v2974_v0 = vpop.f32.mrb[19].mxu1 }
 0x112   : > { %v2978_v2 = vpop.f32.mrb[20].mxu0  ;;  %v2980_v3 = vpop.f32.mrb[20].mxu1 }
 0x113   : > { %v2982_v4 = vpop.f32.mrb[21].mxu0  ;;  %v2986_v60 = vpop.f32.mrb[21].mxu1 }
 0x114   : > { %v2988_v57 = vpop.f32.mrb[22].mxu0  ;;  %v2992_v53 = vpop.f32.mrb[22].mxu1 }
 0x115   : > { %v2994_v51 = vpop.f32.mrb[23].mxu0  ;;  %v2998_v48 = vpop.f32.mrb[23].mxu1 }
 0x116   : > { %3232 = vst [vmem:[#allocation2_spill] sm:$0xff] %v2998_v48  ;;  %v3251_v48 = vmax.f32 %v2868_v11, %v2872_v13 }
 0x11a   : > { %v3002_v5 = vpop.f32.mrb[24].mxu0  ;;  %v3004_v41 = vpop.f32.mrb[24].mxu1 }
 0x11b   : > { %3233 = vst [vmem:[#allocation3_spill] sm:$0xff] %v3002_v5  ;;  %3234 = vst [vmem:[#allocation4_spill] sm:$0xff] %v3004_v41  ;;  %v3006_v39 = vpop.f32.mrb[25].mxu0  ;;  %v3010_v36 = vpop.f32.mrb[25].mxu1 }
 0x11c   : > { %3235 = vst [vmem:[#allocation5_spill] sm:$0xff] %v3006_v39  ;;  %3236 = vst [vmem:[#allocation6_spill] sm:$0xff] %v3010_v36  ;;  %v3012_v33 = vpop.f32.mrb[26].mxu0  ;;  %v3016_v29 = vpop.f32.mrb[26].mxu1 }
 0x11d   : > { %3237 = vst [vmem:[#allocation7_spill] sm:$0xff] %v3012_v33  ;;  %3238 = vst [vmem:[#allocation8_spill] sm:$0xff] %v3016_v29  ;;  %v3018_v27 = vpop.f32.mrb[27].mxu0  ;;  %v3022_v24 = vpop.f32.mrb[27].mxu1 }
 0x11e   : > { %3239 = vst [vmem:[#allocation9_spill] sm:$0xff] %v3018_v27  ;;  %3240 = vst [vmem:[#allocation10_spill] sm:$0xff] %v3022_v24 }
 0x122   : > { %v3026_v63 = vpop.f32.mrb[28].mxu0  ;;  %v3028_v17 = vpop.f32.mrb[28].mxu1 }
 0x123   : > { %3241 = vst [vmem:[#allocation11_spill] sm:$0xff] %v3026_v63  ;;  %3242 = vst [vmem:[#allocation12_spill] sm:$0xff] %v3028_v17  ;;  %v3030_v15 = vpop.f32.mrb[29].mxu0  ;;  %v3034_v12 = vpop.f32.mrb[29].mxu1 }
 0x124   : > { %3243 = vst [vmem:[#allocation13_spill] sm:$0xff] %v3030_v15  ;;  %3244 = vst [vmem:[#allocation14_spill] sm:$0xff] %v3034_v12  ;;  %v3036_v9 = vpop.f32.mrb[30].mxu0  ;;  %v3040_v29 = vpop.f32.mrb[30].mxu1 }
 0x125   : > { %3245 = vst [vmem:[#allocation15_spill] sm:$0xff] %v3036_v9  ;;  %3246 = vst [vmem:[#allocation16_spill] sm:$0xff] %v3040_v29  ;;  %v3042_v33 = vpop.f32.mrb[31].mxu0  ;;  %v3046_v24 = vpop.f32.mrb[31].mxu1 }
 0x126   : > { %3247 = vst [vmem:[#allocation17_spill] sm:$0xff] %v3042_v33  ;;  %3248 = vst [vmem:[#allocation18_spill] sm:$0xff] %v3046_v24  ;;  %v3250_v24 = vmax.f32 %v2862_v8, %v2866_v10 }
 0x12a   : > { %v2505_v1 = vpop.f32.mrb[32].mxu0  ;;  %v2541_v17 = vpop.f32.mrb[32].mxu1 }
 0x12b   : > { %v1213_v63 = vpop.f32.mrb[33].mxu0  ;;  %v1663_v36 = vmax.f32 %v2505_v1, %v2541_v17  ;;  %v1534_v39 = vpop.f32.mrb[33].mxu1 }
 0x12c   : > { %v2506_v41 = vpop.f32.mrb[34].mxu0  ;;  %v1661_v12 = vmax.f32 %v1213_v63, %v1534_v39  ;;  %v2542_v15 = vpop.f32.mrb[34].mxu1 }
 0x12d   : > { %v1216_v5 = vpop.f32.mrb[35].mxu0  ;;  %v1695_v29 = vmax.f32 %v3249_v21, %v1663_v36  ;;  %v1664_v9 = vmax.f32 %v2506_v41, %v2542_v15  ;;  %v1537_v27 = vpop.f32.mrb[35].mxu1 }
 0x12e   : > { %v1693_v17 = vmax.f32 %v3250_v24, %v1661_v12  ;;  %v1662_v1 = vmax.f32 %v1216_v5, %v1537_v27 }
 0x12f   : > { %v1734_v33 = vadd.f32 %v3053_v45, %v1695_v29  ;;  %v1696_v39 = vmax.f32 %v3251_v48, %v1664_v9 }
 0x130   : > { %v1732_v63 = vadd.f32 %v3053_v45, %v1693_v17  ;;  %v1694_v7 = vmax.f32 %v3252_v6, %v1662_v1 }
 0x131   : > { %v1735_v15 = vadd.f32 %v3053_v45, %v1696_v39  ;;  %v1766_v24 = vmax.f32 %v1734_v33, 0.0  ;;  %v3253_v33 = vmax.f32 %v2882_v18, %v2884_v19  ;;  %v3256_v18 = vmax.f32 %v2898_v26, %v2902_v28 }
 0x132   : > { %v2509_v21 = vpop.f32.mrb[36].mxu0  ;;  %v1733_v8 = vadd.f32 %v3053_v45, %v1694_v7  ;;  %v2545_v10 = vpop.f32.mrb[36].mxu1  ;;  %v1764_v11 = vmax.f32 %v1732_v63, 0.0  ;;  %v3254_v63 = vmax.f32 %v2886_v20, %v2890_v22 }
 0x133   : > { %v1229_v12 = vpop.f32.mrb[37].mxu0  ;;  %v1767_v27 = vmax.f32 %v1735_v15, 0.0  ;;  %v1667_v29 = vmax.f32 %v2509_v21, %v2545_v10  ;;  %v1550_v36 = vpop.f32.mrb[37].mxu1  ;;  %v3255_v21 = vmax.f32 %v2892_v23, %v2896_v25 }
 0x134   : > { %v2510_v41 = vpop.f32.mrb[38].mxu0  ;;  %v1765_v9 = vmax.f32 %v1733_v8, 0.0  ;;  %v1665_v13 = vmax.f32 %v1229_v12, %v1550_v36  ;;  %v2546_v14 = vpop.f32.mrb[38].mxu1 }
 0x135   : > { %v1232_v16 = vpop.f32.mrb[39].mxu0  ;;  %v2268_v48 = vpack.c.bf16 %v1767_v27, %v1766_v24  ;;  %v1699_v5 = vmax.f32 %v3253_v33, %v1667_v29  ;;  %v1668_v17 = vmax.f32 %v2510_v41, %v2546_v14  ;;  %v1553_v1 = vpop.f32.mrb[39].mxu1 }
 0x136   : > { %v2263_v39 = vpack.c.bf16 %v1765_v9, %v1764_v11  ;;  %v1697_v6 = vmax.f32 %v3254_v63, %v1665_v13  ;;  %v1666_v7 = vmax.f32 %v1232_v16, %v1553_v1  ;;  %v3257_v16 = vmax.f32 %v2906_v30, %v2908_v31 }
 0x137   : > { %2340 = vst [vmem:[%s3075_s22 + $0x8] sm:$0xff] %v2268_v48   ;;  %v1738_v15 = vadd.f32 %v3053_v45, %v1699_v5  ;;  %v1700_v8 = vmax.f32 %v3255_v21, %v1668_v17  ;;  %v3258_v1 = vmax.f32 %v2910_v32, %v2914_v34  ;;  %v3260_v30 = vmax.f32 %v2922_v38, %v2926_v40 }
 0x138   : > { %2264 = vst [vmem:[%s3075_s22] sm:$0xff] %v2263_v39   ;;  %v1736_v10 = vadd.f32 %v3053_v45, %v1697_v6  ;;  %v1698_v19 = vmax.f32 %v3256_v18, %v1666_v7  ;;  %v3259_v7 = vmax.f32 %v2916_v35, %v2920_v37 }
 0x139   : > { %v1739_v12 = vadd.f32 %v3053_v45, %v1700_v8  ;;  %v1770_v29 = vmax.f32 %v1738_v15, 0.0 }
 0x13a   : > { %v2513_v24 = vpop.f32.mrb[40].mxu0  ;;  %v1737_v20 = vadd.f32 %v3053_v45, %v1698_v19  ;;  %v2549_v22 = vpop.f32.mrb[40].mxu1  ;;  %v1768_v11 = vmax.f32 %v1736_v10, 0.0 }
 0x13b   : > { %v1245_v27 = vpop.f32.mrb[41].mxu0  ;;  %v1771_v36 = vmax.f32 %v1739_v12, 0.0  ;;  %v1671_v41 = vmax.f32 %v2513_v24, %v2549_v22  ;;  %v1566_v23 = vpop.f32.mrb[41].mxu1 }
 0x13c   : > { %v2514_v25 = vpop.f32.mrb[42].mxu0  ;;  %v1769_v9 = vmax.f32 %v1737_v20, 0.0  ;;  %v1669_v13 = vmax.f32 %v1245_v27, %v1566_v23  ;;  %v2550_v14 = vpop.f32.mrb[42].mxu1 }
 0x13d   : > { %v1248_v26 = vpop.f32.mrb[43].mxu0  ;;  %v2278_v28 = vpack.c.bf16 %v1771_v36, %v1770_v29  ;;  %v1703_v48 = vmax.f32 %v3257_v16, %v1671_v41  ;;  %v1672_v33 = vmax.f32 %v2514_v25, %v2550_v14  ;;  %v1569_v5 = vpop.f32.mrb[43].mxu1  ;;  %v3261_v36 = vmax.f32 %v2930_v42, %v2932_v43 }
 0x13e   : > { %v2273_v17 = vpack.c.bf16 %v1769_v9, %v1768_v11  ;;  %v1701_v39 = vmax.f32 %v3258_v1, %v1669_v13  ;;  %v1670_v63 = vmax.f32 %v1248_v26, %v1569_v5  ;;  %v3262_v9 = vmax.f32 %v2934_v44, %v2938_v46 }
 0x13f   : > { %2342 = vst [vmem:[%s3075_s22 + $0x18] sm:$0xff] %v2278_v28   ;;  %v1742_v6 = vadd.f32 %v3053_v45, %v1703_v48  ;;  %v1704_v15 = vmax.f32 %v3259_v7, %v1672_v33  ;;  %v3263_v28 = vmax.f32 %v2940_v47, %v2944_v49  ;;  %v3264_v42 = vmax.f32 %v2946_v50, %v2950_v52 }
 0x140   : > { %2341 = vst [vmem:[%s3075_s22 + $0x10] sm:$0xff] %v2273_v17   ;;  %v1740_v21 = vadd.f32 %v3053_v45, %v1701_v39  ;;  %v1702_v31 = vmax.f32 %v3260_v30, %v1670_v63  ;;  %v3265_v30 = vmax.f32 %v2954_v54, %v2956_v55  ;;  %v3268_v54 = vmax.f32 %v2970_v62, %v2974_v0 }
 0x141   : > { %v1743_v8 = vadd.f32 %v3053_v45, %v1704_v15  ;;  %v1774_v19 = vmax.f32 %v1742_v6, 0.0 }
 0x142   : > { %v2517_v10 = vpop.f32.mrb[44].mxu0  ;;  %v1741_v32 = vadd.f32 %v3053_v45, %v1702_v31  ;;  %v2553_v34 = vpop.f32.mrb[44].mxu1  ;;  %v1772_v20 = vmax.f32 %v1740_v21, 0.0 }
 0x143   : > { %v1261_v18 = vpop.f32.mrb[45].mxu0  ;;  %v1775_v12 = vmax.f32 %v1743_v8, 0.0  ;;  %v1675_v24 = vmax.f32 %v2517_v10, %v2553_v34  ;;  %v1582_v35 = vpop.f32.mrb[45].mxu1  ;;  %v3266_v34 = vmax.f32 %v2958_v56, %v2962_v58 }
 0x144   : > { %v2518_v37 = vpop.f32.mrb[46].mxu0  ;;  %v1773_v22 = vmax.f32 %v1741_v32, 0.0  ;;  %v1673_v27 = vmax.f32 %v1261_v18, %v1582_v35  ;;  %v2554_v29 = vpop.f32.mrb[46].mxu1 }
 0x145   : > { %v1264_v38 = vpop.f32.mrb[47].mxu0  ;;  %v2288_v40 = vpack.c.bf16 %v1775_v12, %v1774_v19  ;;  %v1707_v41 = vmax.f32 %v3261_v36, %v1675_v24  ;;  %v1676_v23 = vmax.f32 %v2518_v37, %v2554_v29  ;;  %v1585_v25 = vpop.f32.mrb[47].mxu1  ;;  %v3267_v24 = vmax.f32 %v2964_v59, %v2968_v61 }
 0x146   : > { %v2283_v11 = vpack.c.bf16 %v1773_v22, %v1772_v20  ;;  %v1705_v13 = vmax.f32 %v3262_v9, %v1673_v27  ;;  %v1674_v14 = vmax.f32 %v1264_v38, %v1585_v25 }
 0x147   : > { %2344 = vst [vmem:[%s3075_s22 + $0x28] sm:$0xff] %v2288_v40   ;;  %v1746_v26 = vadd.f32 %v3053_v45, %v1707_v41  ;;  %v1708_v16 = vmax.f32 %v3263_v28, %v1676_v23  ;;  %v3270_v28 = vmax.f32 %v2982_v4, %v2986_v60 }
 0x148   : > { %2343 = vst [vmem:[%s3075_s22 + $0x20] sm:$0xff] %v2283_v11   ;;  %v1744_v48 = vadd.f32 %v3053_v45, %v1705_v13  ;;  %v1706_v43 = vmax.f32 %v3264_v42, %v1674_v14  ;;  %v3269_v11 = vmax.f32 %v2978_v2, %v2980_v3  ;;  %v3272_v2 = vld [vmem:[#allocation2_spill] sm:$0xff] }
 0x149   : > { %v1747_v33 = vadd.f32 %v3053_v45, %v1708_v16  ;;  %v1778_v1 = vmax.f32 %v1746_v26, 0.0  ;;  %v3273_v3 = vmax.f32 %v2994_v51, %v3272_v2 }
 0x14a   : > { %v2521_v5 = vpop.f32.mrb[48].mxu0  ;;  %v1745_v44 = vadd.f32 %v3053_v45, %v1706_v43  ;;  %v2557_v46 = vpop.f32.mrb[48].mxu1  ;;  %v1776_v6 = vmax.f32 %v1744_v48, 0.0  ;;  %v3271_v43 = vmax.f32 %v2988_v57, %v2992_v53 }
 0x14b   : > { %v1277_v17 = vpop.f32.mrb[49].mxu0  ;;  %v1779_v39 = vmax.f32 %v1747_v33, 0.0  ;;  %v1679_v63 = vmax.f32 %v2521_v5, %v2557_v46  ;;  %v1598_v47 = vpop.f32.mrb[49].mxu1 }
 0x14c   : > { %v2522_v49 = vpop.f32.mrb[50].mxu0  ;;  %v1777_v7 = vmax.f32 %v1745_v44, 0.0  ;;  %v1677_v15 = vmax.f32 %v1277_v17, %v1598_v47  ;;  %v2558_v21 = vpop.f32.mrb[50].mxu1 }
 0x14d   : > { %v1280_v50 = vpop.f32.mrb[51].mxu0  ;;  %v2298_v52 = vpack.c.bf16 %v1779_v39, %v1778_v1  ;;  %v1711_v31 = vmax.f32 %v3265_v30, %v1679_v63  ;;  %v1680_v8 = vmax.f32 %v2522_v49, %v2558_v21  ;;  %v1601_v10 = vpop.f32.mrb[51].mxu1 }
 0x14e   : > { %v2293_v32 = vpack.c.bf16 %v1777_v7, %v1776_v6  ;;  %v1709_v18 = vmax.f32 %v3266_v34, %v1677_v15  ;;  %v1678_v19 = vmax.f32 %v1280_v50, %v1601_v10  ;;  %v3274_v50 = vld [vmem:[#allocation3_spill] sm:$0xff]  ;;  %v3277_v34 = vld [vmem:[#allocation5_spill] sm:$0xff] }
 0x14f   : > { %2346 = vst [vmem:[%s3075_s22 + $0x38] sm:$0xff] %v2298_v52   ;;  %v1750_v12 = vadd.f32 %v3053_v45, %v1711_v31  ;;  %v1712_v35 = vmax.f32 %v3267_v24, %v1680_v8  ;;  %v3275_v52 = vld [vmem:[#allocation4_spill] sm:$0xff] }
 0x150   : > { %2345 = vst [vmem:[%s3075_s22 + $0x30] sm:$0xff] %v2293_v32   ;;  %v1748_v37 = vadd.f32 %v3053_v45, %v1709_v18  ;;  %v1710_v55 = vmax.f32 %v3268_v54, %v1678_v19  ;;  %v3276_v30 = vmax.f32 %v3274_v50, %v3275_v52  ;;  %v3278_v18 = vld [vmem:[#allocation6_spill] sm:$0xff]  ;;  %v3281_v54 = vld [vmem:[#allocation8_spill] sm:$0xff] }
 0x151   : > { %v1751_v20 = vadd.f32 %v3053_v45, %v1712_v35  ;;  %v1782_v29 = vmax.f32 %v1750_v12, 0.0  ;;  %v3279_v19 = vmax.f32 %v3277_v34, %v3278_v18 }
 0x152   : > { %v2525_v22 = vpop.f32.mrb[52].mxu0  ;;  %v1749_v56 = vadd.f32 %v3053_v45, %v1710_v55  ;;  %v2561_v58 = vpop.f32.mrb[52].mxu1  ;;  %v1780_v36 = vmax.f32 %v1748_v37, 0.0  ;;  %v3280_v37 = vld [vmem:[#allocation7_spill] sm:$0xff] }
 0x153   : > { %v1293_v27 = vpop.f32.mrb[53].mxu0  ;;  %v1783_v38 = vmax.f32 %v1751_v20, 0.0  ;;  %v1683_v40 = vmax.f32 %v2525_v22, %v2561_v58  ;;  %v1614_v59 = vpop.f32.mrb[53].mxu1  ;;  %v3282_v55 = vmax.f32 %v3280_v37, %v3281_v54  ;;  %v3284_v58 = vld [vmem:[#allocation10_spill] sm:$0xff] }
 0x154   : > { %v2526_v61 = vpop.f32.mrb[54].mxu0  ;;  %v1781_v41 = vmax.f32 %v1749_v56, 0.0  ;;  %v1681_v23 = vmax.f32 %v1293_v27, %v1614_v59  ;;  %v2562_v25 = vpop.f32.mrb[54].mxu1  ;;  %v3283_v56 = vld [vmem:[#allocation9_spill] sm:$0xff] }
 0x155   : > { %v1296_v62 = vpop.f32.mrb[55].mxu0  ;;  %v2308_v0 = vpack.c.bf16 %v1783_v38, %v1782_v29  ;;  %v1715_v9 = vmax.f32 %v3269_v11, %v1683_v40  ;;  %v1684_v13 = vmax.f32 %v2526_v61, %v2562_v25  ;;  %v1617_v14 = vpop.f32.mrb[55].mxu1  ;;  %v3285_v27 = vmax.f32 %v3283_v56, %v3284_v58 }
 0x156   : > { %v2303_v26 = vpack.c.bf16 %v1781_v41, %v1780_v36  ;;  %v1713_v16 = vmax.f32 %v3270_v28, %v1681_v23  ;;  %v1682_v48 = vmax.f32 %v1296_v62, %v1617_v14 }
 0x157   : > { %2348 = vst [vmem:[%s3075_s22 + $0x48] sm:$0xff] %v2308_v0   ;;  %v1754_v42 = vadd.f32 %v3053_v45, %v1715_v9  ;;  %v1716_v33 = vmax.f32 %v3271_v43, %v1684_v13 }
 0x158   : > { %2347 = vst [vmem:[%s3075_s22 + $0x40] sm:$0xff] %v2303_v26   ;;  %v1752_v5 = vadd.f32 %v3053_v45, %v1713_v16  ;;  %v1714_v44 = vmax.f32 %v3273_v3, %v1682_v48  ;;  %v3286_v16 = vld [vmem:[#allocation11_spill] sm:$0xff]  ;;  %v3287_v48 = vld [vmem:[#allocation12_spill] sm:$0xff]  ;;  %v3289_v3 = vld [vmem:[#allocation13_spill] sm:$0xff] }
 0x159   : > { %v1755_v46 = vadd.f32 %v3053_v45, %v1716_v33  ;;  %v1786_v39 = vmax.f32 %v1754_v42, 0.0  ;;  %v3288_v42 = vmax.f32 %v3286_v16, %v3287_v48 }
 0x15a   : > { %v2529_v17 = vpop.f32.mrb[56].mxu0  ;;  %v1753_v60 = vadd.f32 %v3053_v45, %v1714_v44  ;;  %v2565_v4 = vpop.f32.mrb[56].mxu1  ;;  %v1784_v49 = vmax.f32 %v1752_v5, 0.0  ;;  %v3290_v44 = vld [vmem:[#allocation14_spill] sm:$0xff] }
 0x15b   : > { %v1309_v1 = vpop.f32.mrb[57].mxu0  ;;  %v1787_v63 = vmax.f32 %v1755_v46, 0.0  ;;  %v1687_v47 = vmax.f32 %v2529_v17, %v2565_v4  ;;  %v1630_v53 = vpop.f32.mrb[57].mxu1  ;;  %v3291_v46 = vmax.f32 %v3289_v3, %v3290_v44 }
 0x15c   : > { %v2530_v57 = vpop.f32.mrb[58].mxu0  ;;  %v1785_v6 = vmax.f32 %v1753_v60, 0.0  ;;  %v1685_v7 = vmax.f32 %v1309_v1, %v1630_v53  ;;  %v2566_v15 = vpop.f32.mrb[58].mxu1  ;;  %v3292_v1 = vld [vmem:[#allocation15_spill] sm:$0xff] }
 0x15d   : > { %v1312_v51 = vpop.f32.mrb[59].mxu0  ;;  %v2318_v21 = vpack.c.bf16 %v1787_v63, %v1786_v39  ;;  %v1719_v31 = vmax.f32 %v3276_v30, %v1687_v47  ;;  %v1688_v8 = vmax.f32 %v2530_v57, %v2566_v15  ;;  %v1633_v10 = vpop.f32.mrb[59].mxu1  ;;  %v3293_v39 = vld [vmem:[#allocation16_spill] sm:$0xff]  ;;  %v3295_v57 = vld [vmem:[#allocation17_spill] sm:$0xff] }
 0x15e   : > { %v2313_v32 = vpack.c.bf16 %v1785_v6, %v1784_v49  ;;  %v1717_v12 = vmax.f32 %v3279_v19, %v1685_v7  ;;  %v1686_v24 = vmax.f32 %v1312_v51, %v1633_v10  ;;  %v3294_v63 = vmax.f32 %v3292_v1, %v3293_v39  ;;  %v3296_v49 = vld [vmem:[#allocation18_spill] sm:$0xff] }
 0x15f   : > { %2350 = vst [vmem:[%s3075_s22 + $0x58] sm:$0xff] %v2318_v21   ;;  %v1758_v35 = vadd.f32 %v3053_v45, %v1719_v31  ;;  %v1720_v20 = vmax.f32 %v3282_v55, %v1688_v8  ;;  %v3297_v6 = vmax.f32 %v3295_v57, %v3296_v49 }
 0x160   : > { %2349 = vst [vmem:[%s3075_s22 + $0x50] sm:$0xff] %v2313_v32   ;;  %v1756_v22 = vadd.f32 %v3053_v45, %v1717_v12  ;;  %v1718_v29 = vmax.f32 %v3285_v27, %v1686_v24 }
 0x161   : > { %v1759_v38 = vadd.f32 %v3053_v45, %v1720_v20  ;;  %v1790_v41 = vmax.f32 %v1758_v35, 0.0 }
 0x162   : > { %v2533_v40 = vpop.f32.mrb[60].mxu0  ;;  %v1757_v59 = vadd.f32 %v3053_v45, %v1718_v29  ;;  %v2569_v61 = vpop.f32.mrb[60].mxu1  ;;  %v1788_v11 = vmax.f32 %v1756_v22, 0.0 }
 0x163   : > { %v1325_v36 = vpop.f32.mrb[61].mxu0  ;;  %v1791_v23 = vmax.f32 %v1759_v38, 0.0  ;;  %v1691_v25 = vmax.f32 %v2533_v40, %v2569_v61  ;;  %v1646_v62 = vpop.f32.mrb[61].mxu1 }
 0x164   : > { %v2534_v0 = vpop.f32.mrb[62].mxu0  ;;  %v1789_v9 = vmax.f32 %v1757_v59, 0.0  ;;  %v1689_v13 = vmax.f32 %v1325_v36, %v1646_v62  ;;  %v2570_v14 = vpop.f32.mrb[62].mxu1 }
 0x165   : > { %v1328_v26 = vpop.f32.mrb[63].mxu0  ;;  %v2328_v28 = vpack.c.bf16 %v1791_v23, %v1790_v41  ;;  %v1723_v43 = vmax.f32 %v3288_v42, %v1691_v25  ;;  %v1692_v33 = vmax.f32 %v2534_v0, %v2570_v14  ;;  %v1649_v5 = vpop.f32.mrb[63].mxu1 }
 0x166   : > { %v2323_v2 = vpack.c.bf16 %v1789_v9, %v1788_v11  ;;  %v1721_v17 = vmax.f32 %v3291_v46, %v1689_v13  ;;  %v1690_v60 = vmax.f32 %v1328_v26, %v1649_v5 }
 0x167   : > { %2352 = vst [vmem:[%s3075_s22 + $0x68] sm:$0xff] %v2328_v28   ;;  %v1762_v4 = vadd.f32 %v3053_v45, %v1723_v43  ;;  %v1724_v47 = vmax.f32 %v3294_v63, %v1692_v33 }
 0x168   : > { %2351 = vst [vmem:[%s3075_s22 + $0x60] sm:$0xff] %v2323_v2   ;;  %v1760_v53 = vadd.f32 %v3053_v45, %v1721_v17  ;;  %v1722_v7 = vmax.f32 %v3297_v6, %v1690_v60 }
 0x169   : > { %v1763_v15 = vadd.f32 %v3053_v45, %v1724_v47  ;;  %v1794_v21 = vmax.f32 %v1762_v4, 0.0 }
 0x16a   : > { %v1761_v51 = vadd.f32 %v3053_v45, %v1722_v7  ;;  %v1792_v52 = vmax.f32 %v1760_v53, 0.0 }
 0x16b   : > { %v1795_v50 = vmax.f32 %v1763_v15, 0.0 }
 0x16c   : > { %v1793_v30 = vmax.f32 %v1761_v51, 0.0 }
 0x16d   : > { %v2338_v31 = vpack.c.bf16 %v1795_v50, %v1794_v21 }
 0x16e   : > { %v2333_v8 = vpack.c.bf16 %v1793_v30, %v1792_v52 }
 0x16f   : > { %2354 = vst [vmem:[%s3075_s22 + $0x78] sm:$0xff] %v2338_v31  }
 0x170   : > { %2353 = vst [vmem:[%s3075_s22 + $0x70] sm:$0xff] %v2333_v8  }
 0x171 PF: > { %s16_s21 = sadd.s32 1, %s2652_s21  }
 0x172   : > { %p13_p4 = scmp.ge.s32.totalorder %s16_s21, 4  }
 0x174   :  { %15 = sbr.rel (!%p13_p4) target bundleno = 1 (0x1), region = 83 }

// kernel: lenet5_forward.4
= control target key start
LH: loop header
LB: loop body
LE: loop exit
PB: predicated region body
PF: predicated region fallthrough
CT: control target
= control target key end

     0   :  { %s2931_s21 = smov 0   ;;  %s3528_s0 = inlined_call_operand.vmem [shape: bf16[128,576], index: 0, kind: input, shape index: {}]   ;;  %s3529_s1 = inlined_call_operand.vmem [shape: bf16[128,576], index: 1, kind: input, shape index: {}]   ;;  %s3530_s2 = inlined_call_operand.vmem [shape: bf16[128,576], index: 2, kind: input, shape index: {}]   ;;  %s3531_s3 = inlined_call_operand.vmem [shape: bf16[128,576], index: 3, kind: input, shape index: {}]   ;;  %s3532_s4 = inlined_call_operand.vmem [shape: bf16[576,128], index: 4, kind: input, shape index: {}]   ;;  %s3533_s5 = inlined_call_operand.vmem [shape: f32[1,128], index: 5, kind: input, shape index: {}]   ;;  %s3534_s6 = inlined_call_operand.vmem [shape: bf16[128,128], index: 6, kind: output, shape index: {}]  }
   0x1 LB: > { %s2126_s22 = sadd.s32 4294967295, %s2894_s21   ;;  %p2130_p0 = scmp.ge.s32.totalorder %s2894_s21, 1  ;;  %s2894_s21 = sphi %s2931_s21, %s16_s21  }
   0x2   : > { %p250_p1 = scmp.lt.s32.totalorder %s2894_s21, 3 }
   0x4   : > { %p251_p2 = pnand %p2130_p0, %p250_p1 }
   0x5   : > { %v2942_v0 = vld [vmem:[%s3532_s4 + $0x40] sm:$0xff] (!%p251_p2)   ;;  %v2965_v4 = vld [vmem:[%s3532_s4 + $0x48] sm:$0xff] (!%p251_p2)   ;;  %v2989_v8 = vld [vmem:[%s3532_s4 + $0x50] sm:$0xff] (!%p251_p2)   ;;  %s2131_s7 = sshll.u32 (!%p251_p2), %s2126_s22, 3  ;;  %vm746_vm0 = vcmask (!%p251_p2), 523264  }
   0x6   : > { %254 = sbr.rel (%p251_p2) target bundleno = 455 (0x1c7), region = 44  ;;  %v2947_v1 = vld [vmem:[%s3532_s4 + $0xc0] sm:$0xff] (!%p251_p2)   ;;  %2315 = vmatprep.subr.bf16.mxu0 (!%p251_p2), %v2942_v0  ;;  %v2971_v5 = vld [vmem:[%s3532_s4 + $0xc8] sm:$0xff] (!%p251_p2)   ;;  %v2995_v9 = vld [vmem:[%s3532_s4 + $0xd0] sm:$0xff] (!%p251_p2)   ;;  %p300_p3 = scmp.lt.s32.totalorder (!%p251_p2), %s2131_s7, 15 }
   0x7   : > { %v2953_v2 = vld [vmem:[%s3532_s4] sm:$0xff] (!%p251_p2)   ;;  %2355 = vmatprep.subr.bf16.mxu1 (!%p251_p2), %v2947_v1  ;;  %v2977_v6 = vld [vmem:[%s3532_s4 + $0x8] sm:$0xff] (!%p251_p2)   ;;  %v3001_v10 = vld [vmem:[%s3532_s4 + $0x10] sm:$0xff] (!%p251_p2)  }
   0x8   : > { %v2959_v3 = vld [vmem:[%s3532_s4 + $0x80] sm:$0xff] (!%p251_p2)   ;;  %2316 = vmatpush3.bf16.msra.mxu0 (!%p251_p2), %v2953_v2  ;;  %v2983_v7 = vld [vmem:[%s3532_s4 + $0x88] sm:$0xff] (!%p251_p2)   ;;  %v3007_v11 = vld [vmem:[%s3532_s4 + $0x90] sm:$0xff] (!%p251_p2)  }
   0x9   : > { %2356 = vmatpush3.bf16.msra.mxu1 (!%p251_p2), %v2959_v3  ;;  %2317 = vmatprep.subr.bf16.mxu0 (!%p251_p2), %v2965_v4  ;;  %v3013_v12 = vld [vmem:[%s3532_s4 + $0x58] sm:$0xff] (!%p251_p2)   ;;  %v3039_v16 = vld [vmem:[%s3532_s4 + $0x60] sm:$0xff] (!%p251_p2)   ;;  %v3063_v20 = vld [vmem:[%s3532_s4 + $0x68] sm:$0xff] (!%p251_p2)  }
   0xa   : > { %2357 = vmatprep.subr.bf16.mxu1 (!%p251_p2), %v2971_v5  ;;  %v3019_v13 = vld [vmem:[%s3532_s4 + $0xd8] sm:$0xff] (!%p251_p2)   ;;  %v3045_v17 = vld [vmem:[%s3532_s4 + $0xe0] sm:$0xff] (!%p251_p2)   ;;  %v3069_v21 = vld [vmem:[%s3532_s4 + $0xe8] sm:$0xff] (!%p251_p2)  }
   0xb   : > { %v3025_v14 = vld [vmem:[%s3532_s4 + $0x18] sm:$0xff] (!%p251_p2)   ;;  %v3051_v18 = vld [vmem:[%s3532_s4 + $0x20] sm:$0xff] (!%p251_p2)   ;;  %v3077_v22 = vld [vmem:[%s3532_s4 + $0x28] sm:$0xff] (!%p251_p2)  }
   0xc   : > { %2318 = vmatpush3.bf16.msra.mxu0 (!%p251_p2), %v2977_v6  ;;  %v3033_v15 = vld [vmem:[%s3532_s4 + $0x98] sm:$0xff] (!%p251_p2)   ;;  %v3057_v19 = vld [vmem:[%s3532_s4 + $0xa0] sm:$0xff] (!%p251_p2)   ;;  %v3083_v23 = vld [vmem:[%s3532_s4 + $0xa8] sm:$0xff] (!%p251_p2)  }
   0xd   : > { %2358 = vmatpush3.bf16.msra.mxu1 %v2983_v7  ;;  %2319 = vmatprep.subr.bf16.mxu0 %v2989_v8  ;;  %s3536_s7 = smov (!%p300_p3, %s2131_s7), 15  ;;  %v3089_v24 = vld [vmem:[%s3532_s4 + $0x70] sm:$0xff]   ;;  %v3116_v28 = vld [vmem:[%s3532_s4 + $0x78] sm:$0xff]   ;;  %v3152_v36 = vld [vmem:[%s3532_s4 + $0x100] sm:$0xff]  }
   0xe   : > { %2359 = vmatprep.subr.bf16.mxu1 %v2995_v9  ;;  %v3095_v25 = vld [vmem:[%s3532_s4 + $0xf0] sm:$0xff]   ;;  %s3098_s8 = smul.u32 20, %s3536_s7  ;;  %v3122_v29 = vld [vmem:[%s3532_s4 + $0xf8] sm:$0xff]   ;;  %v3163_v39 = vld [vmem:[%s3532_s4 + $0x108] sm:$0xff]   ;;  %s2140_s20 = sshll.u32 %s3536_s7, 2 }
   0xf   : > { %v3104_v26 = vld [vmem:[%s3532_s4 + $0x30] sm:$0xff]   ;;  %v3134_v30 = vld [vmem:[%s3532_s4 + $0x38] sm:$0xff]   ;;  %s3488_s25 = scalar_lea.vmem %s3534_s6, %s2140_s20 }
  0x10   : > { %2320 = vmatpush3.bf16.msra.mxu0 %v3001_v10  ;;  %v3110_v27 = vld [vmem:[%s3532_s4 + $0xb0] sm:$0xff]   ;;  %s3128_s18 = scalar_lea.vmem %s3528_s0, %s3098_s8  ;;  %v3140_v31 = vld [vmem:[%s3532_s4 + $0xb8] sm:$0xff]   ;;  %s3189_s13 = scalar_lea.vmem %s3529_s1, %s3098_s8 }
  0x11   : > { %2360 = vmatpush3.bf16.msra.mxu1 %v3007_v11  ;;  %2321 = vmatprep.subr.bf16.mxu0 %v3013_v12  ;;  %v2772_v32 = vld [vmem:[%s3128_s18] ss:$20 sps:$4 sm:$0xff]   ;;  %v2774_v33 = vld [vmem:[%s3128_s18 + $0x4] ss:$20 sps:$4 sm:$0xff]   ;;  %v2775_v34 = vld [vmem:[%s3128_s18 + $0x8] ss:$20 sps:$4 sm:$0xff]   ;;  %s3218_s15 = scalar_lea.vmem %s3530_s2, %s3098_s8 }
  0x12   : > { %2361 = vmatprep.subr.bf16.mxu1 %v3019_v13  ;;  %v2777_v35 = vld [vmem:[%s3128_s18 + $0xc] ss:$20 sps:$4 sm:$0xff]   ;;  %791 = vmatprep.mubr.bf16.mxu0 %v2774_v33  ;;  %v2781_v38 = vld [vmem:[%s3128_s18 + $0x34] ss:$20 sps:$4 sm:$0xff]   ;;  %v2784_v41 = vld [vmem:[%s3128_s18 + $0x30] ss:$20 sps:$4 sm:$0xff]  }
  0x13   : > { %856 = vmatprep.mubr.bf16.mxu1 %v2777_v35  ;;  %v2779_v37 = vld [vmem:[%s3128_s18 + $0x2c] ss:$20 sps:$4 sm:$0xff]   ;;  %v2783_v40 = vld [vmem:[%s3128_s18 + $0x28] ss:$20 sps:$4 sm:$0xff]   ;;  %v3175_v44 = vld [vmem:[%s3532_s4 + $0x110] sm:$0xff]  }
  0x14   : > { %2322 = vmatpush3.bf16.msra.mxu0 %v3025_v14  ;;  %v2786_v42 = vld [vmem:[%s3128_s18 + $0x54] ss:$20 sps:$4 sm:$0xff]   ;;  %v2788_v43 = vld [vmem:[%s3128_s18 + $0x5c] ss:$20 sps:$4 sm:$0xff]   ;;  %v2791_v47 = vld [vmem:[%s3128_s18 + $0x58] ss:$20 sps:$4 sm:$0xff]  }
  0x15   : > { %2362 = vmatpush3.bf16.msra.mxu1 %v3033_v15  ;;  %2323 = vmatprep.subr.bf16.mxu0 %v3039_v16  ;;  %v3183_v45 = vld [vmem:[%s3532_s4 + $0x118] sm:$0xff]   ;;  %v2790_v46 = vld [vmem:[%s3128_s18 + $0x50] ss:$20 sps:$4 sm:$0xff]   ;;  %v2798_v51 = vld [vmem:[%s3128_s18 + $0x80] ss:$20 sps:$4 sm:$0xff]  }
  0x16   : > { %2363 = vmatprep.subr.bf16.mxu1 %v3045_v17  ;;  %v2793_v48 = vld [vmem:[%s3128_s18 + $0x7c] ss:$20 sps:$4 sm:$0xff]   ;;  %v2795_v49 = vld [vmem:[%s3128_s18 + $0x84] ss:$20 sps:$4 sm:$0xff]   ;;  %v2801_v55 = vld [vmem:[%s3189_s13] ss:$20 sps:$4 sm:$0xff]  }
  0x17   : > { %v2797_v50 = vld [vmem:[%s3128_s18 + $0x78] ss:$20 sps:$4 sm:$0xff]   ;;  %v2800_v52 = vld [vmem:[%s3128_s18 + $0x10] ss:$20 sps:$4 sm:$0xff]   ;;  %v2805_v56 = vld [vmem:[%s3128_s18 + $0x60] ss:$20 sps:$4 sm:$0xff]  }
  0x18   : > { %2324 = vmatpush3.bf16.msra.mxu0 %v3051_v18  ;;  %v2803_v53 = vld [vmem:[%s3189_s13 + $0x4] ss:$20 sps:$4 sm:$0xff]   ;;  %v2806_v57 = vld [vmem:[%s3189_s13 + $0x2c] ss:$20 sps:$4 sm:$0xff]   ;;  %v2808_v58 = vld [vmem:[%s3128_s18 + $0x88] ss:$20 sps:$4 sm:$0xff]  }
  0x19   : > { %2364 = vmatpush3.bf16.msra.mxu1 %v3057_v19  ;;  %2325 = vmatprep.subr.bf16.mxu0 %v3063_v20  ;;  %v2804_v54 = vld [vmem:[%s3128_s18 + $0x38] ss:$20 sps:$4 sm:$0xff]   ;;  %v2809_v59 = vld [vmem:[%s3189_s13 + $0x28] ss:$20 sps:$4 sm:$0xff]   ;;  %s3245_s18 = scalar_lea.vmem %s3531_s3, %s3098_s8  ;;  %v2812_v62 = vld [vmem:[%s3189_s13 + $0x50] ss:$20 sps:$4 sm:$0xff]  }
  0x1a   : > { %2365 = vmatprep.subr.bf16.mxu1 %v3069_v21  ;;  %v2810_v60 = vld [vmem:[%s3189_s13 + $0x54] ss:$20 sps:$4 sm:$0xff]   ;;  %v2818_v61 = vld [vmem:[%s3189_s13 + $0xc] ss:$20 sps:$4 sm:$0xff]   ;;  %v2813_v63 = vld [vmem:[%s3189_s13 + $0x7c] ss:$20 sps:$4 sm:$0xff]  }
  0x1b   : > { %v2819_v33 = vld [vmem:[%s3189_s13 + $0x10] ss:$20 sps:$4 sm:$0xff]   ;;  %v2820_v35 = vld [vmem:[%s3189_s13 + $0x38] ss:$20 sps:$4 sm:$0xff]  }
  0x1c   : > { %2326 = vmatpush3.bf16.msra.mxu0 %v3077_v22 }
  0x1d   : > { %2366 = vmatpush3.bf16.msra.mxu1 %v3083_v23  ;;  %2327 = vmatprep.subr.bf16.mxu0 %v3089_v24 }
  0x1e   : > { %2367 = vmatprep.subr.bf16.mxu1 %v3095_v25 }
  0x20   : > { %2328 = vmatpush3.bf16.msra.mxu0 %v3104_v26 }
  0x21   : > { %2368 = vmatpush3.bf16.msra.mxu1 %v3110_v27  ;;  %2329 = vmatprep.subr.bf16.mxu0 %v3116_v28 }
  0x22   : > { %2369 = vmatprep.subr.bf16.mxu1 %v3122_v29 }
  0x24   : > { %2330 = vmatpush3.bf16.msra.mxu0 %v3134_v30 }
  0x25   : > { %2370 = vmatpush3.bf16.msra.mxu1 %v3140_v31  ;;  %2667 = vmatprep.subr.bf16.mxu0 %v3152_v36 }
  0x26   : > { %2403 = vmatprep.subr.bf16.mxu1 %v2942_v0 }
  0x27   : > { %792 = vmatmul.mubr.bf16.vlgmr.msra.gmra.mrb[0].mxu0 %v2772_v32  ;;  %v2815_v32 = vld [vmem:[%s3189_s13 + $0x78] ss:$20 sps:$4 sm:$0xff]  }
  0x28   : > { %857 = vmatmul.mubr.bf16.vlgmr.msra.gmra.mrb[0].mxu1 %v2775_v34  ;;  %2668 = vmatpush3.bf16.msra.mxu0 %v3152_v36  ;;  %v2816_v34 = vld [vmem:[%s3189_s13 + $0x8] ss:$20 sps:$4 sm:$0xff]  }
  0x29   : > { %2404 = vmatpush3.bf16.msra.mxu1 %v2953_v2  ;;  %799 = vmatprep.mubr.bf16.mxu0 %v2779_v37  ;;  %v2821_v37 = vld [vmem:[%s3189_s13 + $0x34] ss:$20 sps:$4 sm:$0xff]  }
  0x2a   : > { %2405 = vmatprep.subr.bf16.mxu1 %v2965_v4  ;;  %864 = vmatprep.mubr.bf16.mxu1 %v2781_v38  ;;  %v2827_v38 = vld [vmem:[%s3189_s13 + $0x60] ss:$20 sps:$4 sm:$0xff]  }
  0x2b   : > { %2669 = vmatprep.subr.bf16.mxu0 %v3163_v39 }
  0x2c   : > { %2670 = vmatpush3.bf16.msra.mxu0 %v3163_v39 }
  0x2d   : > { %2406 = vmatpush3.bf16.msra.mxu1 %v2977_v6  ;;  %2671 = vmatprep.subr.bf16.mxu0 %v3175_v44 }
  0x2e   : > { %2407 = vmatprep.subr.bf16.mxu1 %v2989_v8 }
  0x2f   : > { %800 = vmatmul.mubr.bf16.gmra.mrb[4].mxu0 %v2783_v40  ;;  %v2823_v40 = vld [vmem:[%s3189_s13 + $0x30] ss:$20 sps:$4 sm:$0xff]  }
  0x30   : > { %865 = vmatmul.mubr.bf16.gmra.mrb[4].mxu1 %v2784_v41  ;;  %807 = vmatprep.mubr.bf16.mxu0 %v2786_v42  ;;  %v2824_v41 = vld [vmem:[%s3189_s13 + $0x5c] ss:$20 sps:$4 sm:$0xff]  }
  0x31   : > { %2408 = vmatpush3.bf16.msra.mxu1 %v3001_v10  ;;  %872 = vmatprep.mubr.bf16.mxu1 %v2788_v43  ;;  %v2828_v42 = vld [vmem:[%s3189_s13 + $0x88] ss:$20 sps:$4 sm:$0xff]   ;;  %v2837_v43 = vld [vmem:[%s3218_s15 + $0xc] ss:$20 sps:$4 sm:$0xff]  }
  0x32   : > { %2409 = vmatprep.subr.bf16.mxu1 %v3013_v12  ;;  %2672 = vmatpush3.bf16.msra.mxu0 %v3175_v44 }
  0x33   : > { %2673 = vmatprep.subr.bf16.mxu0 %v3183_v45 }
  0x35   : > { %2410 = vmatpush3.bf16.msra.mxu1 %v3025_v14 }
  0x36   : > { %2411 = vmatprep.subr.bf16.mxu1 %v3039_v16  ;;  %2674 = vmatpush3.bf16.msra.mxu0 %v3183_v45 }
  0x37   : > { %808 = vmatmul.mubr.bf16.gmra.mrb[8].mxu0 %v2790_v46  ;;  %2443 = vmatprep.subr.bf16.mxu0 %v2947_v1  ;;  %v2826_v46 = vld [vmem:[%s3189_s13 + $0x58] ss:$20 sps:$4 sm:$0xff]  }
  0x38   : > { %873 = vmatmul.mubr.bf16.gmra.mrb[8].mxu1 %v2791_v47  ;;  %815 = vmatprep.mubr.bf16.mxu0 %v2793_v48  ;;  %v2829_v47 = vld [vmem:[%s3189_s13 + $0x84] ss:$20 sps:$4 sm:$0xff]   ;;  %v2831_v48 = vld [vmem:[%s3189_s13 + $0x80] ss:$20 sps:$4 sm:$0xff]  }
  0x39   : > { %2412 = vmatpush3.bf16.msra.mxu1 %v3051_v18  ;;  %880 = vmatprep.mubr.bf16.mxu1 %v2795_v49  ;;  %v2834_v49 = vld [vmem:[%s3218_s15 + $0x4] ss:$20 sps:$4 sm:$0xff]  }
  0x3a   : > { %2413 = vmatprep.subr.bf16.mxu1 %v3063_v20 }
  0x3d   : > { %2414 = vmatpush3.bf16.msra.mxu1 %v3077_v22 }
  0x3e   : > { %2415 = vmatprep.subr.bf16.mxu1 %v3089_v24 }
  0x3f   : > { %816 = vmatmul.mubr.bf16.gmra.mrb[12].mxu0 %v2797_v50  ;;  %v2832_v50 = vld [vmem:[%s3218_s15] ss:$20 sps:$4 sm:$0xff]  }
  0x40   : > { %881 = vmatmul.mubr.bf16.gmra.mrb[12].mxu1 %v2798_v51  ;;  %2675 = vmatprep.mubr.msk.bf16.mxu0 %vm746_vm0, %v2800_v52  ;;  %v2835_v51 = vld [vmem:[%s3218_s15 + $0x8] ss:$20 sps:$4 sm:$0xff]   ;;  %v2838_v52 = vld [vmem:[%s3218_s15 + $0x2c] ss:$20 sps:$4 sm:$0xff]  }
  0x41   : > { %2416 = vmatpush3.bf16.msra.mxu1 %v3104_v26  ;;  %1122 = vmatprep.mubr.bf16.mxu1 %v2803_v53  ;;  %v2840_v53 = vld [vmem:[%s3218_s15 + $0x34] ss:$20 sps:$4 sm:$0xff]  }
  0x42   : > { %2417 = vmatprep.subr.bf16.mxu1 %v3116_v28 }
  0x45   : > { %2418 = vmatpush3.bf16.msra.mxu1 %v3134_v30 }
  0x46   : > { %2683 = vmatprep.subr.bf16.mxu1 %v3152_v36 }
  0x47   : > { %2676 = vmatmul.mubr.msk.bf16.vlgmr.msra.gmra.mrb[16].mxu0 %vm746_vm0, %v2804_v54  ;;  %v2842_v54 = vld [vmem:[%s3218_s15 + $0x28] ss:$20 sps:$4 sm:$0xff]  }
  0x48   : > { %1123 = vmatmul.mubr.bf16.vlgmr.msra.gmra.mrb[16].mxu1 %v2801_v55  ;;  %2444 = vmatpush3.bf16.msra.mxu0 %v2959_v3  ;;  %v2843_v55 = vld [vmem:[%s3218_s15 + $0x30] ss:$20 sps:$4 sm:$0xff]  }
  0x49   : > { %2445 = vmatprep.subr.bf16.mxu0 %v2971_v5  ;;  %2679 = vmatprep.mubr.msk.bf16.mxu0 %vm746_vm0, %v2805_v56  ;;  %v2846_v56 = vld [vmem:[%s3218_s15 + $0x5c] ss:$20 sps:$4 sm:$0xff]  }
  0x4a   : > { %1130 = vmatprep.mubr.bf16.mxu1 %v2806_v57  ;;  %2684 = vmatpush3.bf16.msra.mxu1 %v3152_v36 }
  0x4b   : > { %2685 = vmatprep.subr.bf16.mxu1 %v3163_v39 }
  0x4c   : > { %2446 = vmatpush3.bf16.msra.mxu0 %v2983_v7 }
  0x4d   : > { %2447 = vmatprep.subr.bf16.mxu0 %v2995_v9 }
  0x4e   : > { %2686 = vmatpush3.bf16.msra.mxu1 %v3163_v39 }
  0x4f   : > { %2680 = vmatmul.mubr.msk.bf16.gmra.mrb[20].mxu0 %vm746_vm0, %v2808_v58  ;;  %2687 = vmatprep.subr.bf16.mxu1 %v3175_v44 }
  0x50   : > { %1131 = vmatmul.mubr.bf16.gmra.mrb[20].mxu1 %v2809_v59  ;;  %2448 = vmatpush3.bf16.msra.mxu0 %v3007_v11 }
  0x51   : > { %2449 = vmatprep.subr.bf16.mxu0 %v3019_v13  ;;  %1138 = vmatprep.mubr.bf16.mxu1 %v2810_v60 }
  0x52   : > { %2688 = vmatpush3.bf16.msra.mxu1 %v3175_v44  ;;  %1187 = vmatprep.mubr.bf16.mxu0 %v2818_v61 }
  0x53   : > { %2689 = vmatprep.subr.bf16.mxu1 %v3183_v45 }
  0x54   : > { %2450 = vmatpush3.bf16.msra.mxu0 %v3033_v15 }
  0x55   : > { %2451 = vmatprep.subr.bf16.mxu0 %v3045_v17 }
  0x56   : > { %2690 = vmatpush3.bf16.msra.mxu1 %v3183_v45 }
  0x57   : > { %2531 = vmatprep.subr.bf16.mxu1 %v2947_v1 }
  0x58   : > { %1139 = vmatmul.mubr.bf16.gmra.mrb[24].mxu1 %v2812_v62  ;;  %2452 = vmatpush3.bf16.msra.mxu0 %v3057_v19 }
  0x59   : > { %2453 = vmatprep.subr.bf16.mxu0 %v3069_v21  ;;  %1146 = vmatprep.mubr.bf16.mxu1 %v2813_v63 }
  0x5c   : > { %2454 = vmatpush3.bf16.msra.mxu0 %v3083_v23 }
  0x5d   : > { %2455 = vmatprep.subr.bf16.mxu0 %v3095_v25 }
  0x60   : > { %1147 = vmatmul.mubr.bf16.gmra.mrb[28].mxu1 %v2815_v32  ;;  %2456 = vmatpush3.bf16.msra.mxu0 %v3110_v27 }
  0x61   : > { %2457 = vmatprep.subr.bf16.mxu0 %v3122_v29  ;;  %2691 = vmatprep.mubr.msk.bf16.mxu1 %vm746_vm0, %v2819_v33 }
  0x64   : > { %2458 = vmatpush3.bf16.msra.mxu0 %v3140_v31 }
  0x65   : > { %2491 = vmatprep.subr.bf16.mxu0 %v2942_v0 }
  0x67   : > { %1188 = vmatmul.mubr.bf16.vlgmr.msra.gmra.mrb[24].mxu0 %v2816_v34 }
  0x68   : > { %2692 = vmatmul.mubr.msk.bf16.vlgmr.msra.gmra.mrb[32].mxu1 %vm746_vm0, %v2820_v35  ;;  %2492 = vmatpush3.bf16.msra.mxu0 %v2953_v2 }
  0x69   : > { %2532 = vmatpush3.bf16.msra.mxu1 %v2959_v3  ;;  %2493 = vmatprep.subr.bf16.mxu0 %v2965_v4 }
  0x6a   : > { %2533 = vmatprep.subr.bf16.mxu1 %v2971_v5  ;;  %1195 = vmatprep.mubr.bf16.mxu0 %v2821_v37 }
  0x6b   : > { %2695 = vmatprep.mubr.msk.bf16.mxu1 %vm746_vm0, %v2827_v38 }
  0x6c   : > { %2494 = vmatpush3.bf16.msra.mxu0 %v2977_v6 }
  0x6d   : > { %2534 = vmatpush3.bf16.msra.mxu1 %v2983_v7  ;;  %2495 = vmatprep.subr.bf16.mxu0 %v2989_v8 }
  0x6e   : > { %2535 = vmatprep.subr.bf16.mxu1 %v2995_v9 }
  0x6f   : > { %1196 = vmatmul.mubr.bf16.gmra.mrb[28].mxu0 %v2823_v40 }
  0x70   : > { %2496 = vmatpush3.bf16.msra.mxu0 %v3001_v10  ;;  %1203 = vmatprep.mubr.bf16.mxu0 %v2824_v41 }
  0x71   : > { %2536 = vmatpush3.bf16.msra.mxu1 %v3007_v11  ;;  %2497 = vmatprep.subr.bf16.mxu0 %v3013_v12 }
  0x72   : > { %2537 = vmatprep.subr.bf16.mxu1 %v3019_v13  ;;  %2696 = vmatmul.mubr.msk.bf16.gmra.mrb[36].mxu1 %vm746_vm0, %v2828_v42 }
  0x73   : > { %1526 = vmatprep.mubr.bf16.mxu1 %v2837_v43 }
  0x74   : > { %2498 = vmatpush3.bf16.msra.mxu0 %v3025_v14 }
  0x75   : > { %2538 = vmatpush3.bf16.msra.mxu1 %v3033_v15  ;;  %2499 = vmatprep.subr.bf16.mxu0 %v3039_v16 }
  0x76   : > { %2539 = vmatprep.subr.bf16.mxu1 %v3045_v17 }
  0x77   : > { %1204 = vmatmul.mubr.bf16.gmra.mrb[32].mxu0 %v2826_v46 }
  0x78   : > { %2500 = vmatpush3.bf16.msra.mxu0 %v3051_v18  ;;  %1211 = vmatprep.mubr.bf16.mxu0 %v2829_v47 }
  0x79   : > { %2540 = vmatpush3.bf16.msra.mxu1 %v3057_v19  ;;  %2501 = vmatprep.subr.bf16.mxu0 %v3063_v20 }
  0x7a   : > { %2541 = vmatprep.subr.bf16.mxu1 %v3069_v21 }
  0x7c   : > { %2502 = vmatpush3.bf16.msra.mxu0 %v3077_v22 }
  0x7d   : > { %2542 = vmatpush3.bf16.msra.mxu1 %v3083_v23  ;;  %2503 = vmatprep.subr.bf16.mxu0 %v3089_v24 }
  0x7e   : > { %2543 = vmatprep.subr.bf16.mxu1 %v3095_v25 }
  0x7f   : > { %1212 = vmatmul.mubr.bf16.gmra.mrb[36].mxu0 %v2831_v48 }
  0x80   : > { %2504 = vmatpush3.bf16.msra.mxu0 %v3104_v26  ;;  %1461 = vmatprep.mubr.bf16.mxu0 %v2834_v49 }
  0x81   : > { %2544 = vmatpush3.bf16.msra.mxu1 %v3110_v27  ;;  %2505 = vmatprep.subr.bf16.mxu0 %v3116_v28 }
  0x82   : > { %2545 = vmatprep.subr.bf16.mxu1 %v3122_v29 }
  0x84   : > { %2506 = vmatpush3.bf16.msra.mxu0 %v3134_v30 }
  0x85   : > { %2546 = vmatpush3.bf16.msra.mxu1 %v3140_v31  ;;  %2699 = vmatprep.subr.bf16.mxu0 %v3152_v36 }
  0x86   : > { %2579 = vmatprep.subr.bf16.mxu1 %v2942_v0  ;;  %v2844_v0 = vld [vmem:[%s3218_s15 + $0x54] ss:$20 sps:$4 sm:$0xff]  }
  0x87   : > { %1462 = vmatmul.mubr.bf16.vlgmr.msra.gmra.mrb[40].mxu0 %v2832_v50 }
  0x88   : > { %1527 = vmatmul.mubr.bf16.vlgmr.msra.gmra.mrb[40].mxu1 %v2835_v51  ;;  %2700 = vmatpush3.bf16.msra.mxu0 %v3152_v36 }
  0x89   : > { %2580 = vmatpush3.bf16.msra.mxu1 %v2953_v2  ;;  %1469 = vmatprep.mubr.bf16.mxu0 %v2838_v52  ;;  %v2848_v2 = vld [vmem:[%s3218_s15 + $0x50] ss:$20 sps:$4 sm:$0xff]  }
  0x8a   : > { %1534 = vmatprep.mubr.bf16.mxu1 %v2840_v53  ;;  %2581 = vmatprep.subr.bf16.mxu1 %v2965_v4  ;;  %v2849_v4 = vld [vmem:[%s3218_s15 + $0x58] ss:$20 sps:$4 sm:$0xff]  }
  0x8b   : > { %2701 = vmatprep.subr.bf16.mxu0 %v3163_v39 }
  0x8c   : > { %2702 = vmatpush3.bf16.msra.mxu0 %v3163_v39 }
  0x8d   : > { %2582 = vmatpush3.bf16.msra.mxu1 %v2977_v6  ;;  %2703 = vmatprep.subr.bf16.mxu0 %v3175_v44  ;;  %v2850_v6 = vld [vmem:[%s3218_s15 + $0x7c] ss:$20 sps:$4 sm:$0xff]  }
  0x8e   : > { %2583 = vmatprep.subr.bf16.mxu1 %v2989_v8  ;;  %v2852_v8 = vld [vmem:[%s3218_s15 + $0x84] ss:$20 sps:$4 sm:$0xff]  }
  0x8f   : > { %1470 = vmatmul.mubr.bf16.gmra.mrb[44].mxu0 %v2842_v54 }
  0x90   : > { %1535 = vmatmul.mubr.bf16.gmra.mrb[44].mxu1 %v2843_v55  ;;  %1477 = vmatprep.mubr.bf16.mxu0 %v2844_v0 }
  0x91   : > { %2584 = vmatpush3.bf16.msra.mxu1 %v3001_v10  ;;  %1542 = vmatprep.mubr.bf16.mxu1 %v2846_v56  ;;  %v2854_v10 = vld [vmem:[%s3218_s15 + $0x78] ss:$20 sps:$4 sm:$0xff]  }
  0x92   : > { %2585 = vmatprep.subr.bf16.mxu1 %v3013_v12  ;;  %2704 = vmatpush3.bf16.msra.mxu0 %v3175_v44  ;;  %v2855_v12 = vld [vmem:[%s3218_s15 + $0x80] ss:$20 sps:$4 sm:$0xff]  }
  0x93   : > { %2705 = vmatprep.subr.bf16.mxu0 %v3183_v45 }
  0x95   : > { %2586 = vmatpush3.bf16.msra.mxu1 %v3025_v14  ;;  %v2856_v14 = vld [vmem:[%s3218_s15 + $0x10] ss:$20 sps:$4 sm:$0xff]  }
  0x96   : > { %2587 = vmatprep.subr.bf16.mxu1 %v3039_v16  ;;  %2706 = vmatpush3.bf16.msra.mxu0 %v3183_v45  ;;  %v2860_v16 = vld [vmem:[%s3245_s18 + $0x4] ss:$20 sps:$4 sm:$0xff]  }
  0x97   : > { %1478 = vmatmul.mubr.bf16.gmra.mrb[48].mxu0 %v2848_v2  ;;  %2619 = vmatprep.subr.bf16.mxu0 %v2947_v1  ;;  %v2857_v1 = vld [vmem:[%s3218_s15 + $0x38] ss:$20 sps:$4 sm:$0xff]  }
  0x98   : > { %1543 = vmatmul.mubr.bf16.gmra.mrb[48].mxu1 %v2849_v4  ;;  %1485 = vmatprep.mubr.bf16.mxu0 %v2850_v6 }
  0x99   : > { %2588 = vmatpush3.bf16.msra.mxu1 %v3051_v18  ;;  %1550 = vmatprep.mubr.bf16.mxu1 %v2852_v8  ;;  %v2858_v18 = vld [vmem:[%s3245_s18] ss:$20 sps:$4 sm:$0xff]  }
  0x9a   : > { %2589 = vmatprep.subr.bf16.mxu1 %v3063_v20  ;;  %v2861_v20 = vld [vmem:[%s3218_s15 + $0x60] ss:$20 sps:$4 sm:$0xff]  }
  0x9d   : > { %2590 = vmatpush3.bf16.msra.mxu1 %v3077_v22  ;;  %v2863_v22 = vld [vmem:[%s3245_s18 + $0x2c] ss:$20 sps:$4 sm:$0xff]  }
  0x9e   : > { %2591 = vmatprep.subr.bf16.mxu1 %v3089_v24  ;;  %v2862_v24 = vld [vmem:[%s3218_s15 + $0x88] ss:$20 sps:$4 sm:$0xff]  }
  0x9f   : > { %1486 = vmatmul.mubr.bf16.gmra.mrb[52].mxu0 %v2854_v10 }
  0xa0   : > { %1551 = vmatmul.mubr.bf16.gmra.mrb[52].mxu1 %v2855_v12  ;;  %2707 = vmatprep.mubr.msk.bf16.mxu0 %vm746_vm0, %v2856_v14 }
  0xa1   : > { %2592 = vmatpush3.bf16.msra.mxu1 %v3104_v26  ;;  %1792 = vmatprep.mubr.bf16.mxu1 %v2860_v16  ;;  %v2865_v26 = vld [vmem:[%s3245_s18 + $0x28] ss:$20 sps:$4 sm:$0xff]  }
  0xa2   : > { %2593 = vmatprep.subr.bf16.mxu1 %v3116_v28  ;;  %v2866_v28 = vld [vmem:[%s3245_s18 + $0x54] ss:$20 sps:$4 sm:$0xff]  }
  0xa5   : > { %2594 = vmatpush3.bf16.msra.mxu1 %v3134_v30  ;;  %v2887_v30 = vld [vmem:[%s3245_s18 + $0x80] ss:$20 sps:$4 sm:$0xff]  }
  0xa6   : > { %2715 = vmatprep.subr.bf16.mxu1 %v3152_v36 }
  0xa7   : > { %2708 = vmatmul.mubr.msk.bf16.vlgmr.msra.gmra.mrb[56].mxu0 %vm746_vm0, %v2857_v1 }
  0xa8   : > { %2620 = vmatpush3.bf16.msra.mxu0 %v2959_v3  ;;  %1793 = vmatmul.mubr.bf16.vlgmr.msra.gmra.mrb[56].mxu1 %v2858_v18  ;;  %v2874_v3 = vld [vmem:[%s3245_s18 + $0xc] ss:$20 sps:$4 sm:$0xff]  }
  0xa9   : > { %2621 = vmatprep.subr.bf16.mxu0 %v2971_v5  ;;  %2711 = vmatprep.mubr.msk.bf16.mxu0 %vm746_vm0, %v2861_v20  ;;  %v2868_v5 = vld [vmem:[%s3245_s18 + $0x50] ss:$20 sps:$4 sm:$0xff]  }
  0xaa   : > { %1800 = vmatprep.mubr.bf16.mxu1 %v2863_v22  ;;  %2716 = vmatpush3.bf16.msra.mxu1 %v3152_v36 }
  0xab   : > { %2717 = vmatprep.subr.bf16.mxu1 %v3163_v39 }
  0xac   : > { %2622 = vmatpush3.bf16.msra.mxu0 %v2983_v7  ;;  %v2869_v7 = vld [vmem:[%s3245_s18 + $0x7c] ss:$20 sps:$4 sm:$0xff]  }
  0xad   : > { %2623 = vmatprep.subr.bf16.mxu0 %v2995_v9  ;;  %v2871_v9 = vld [vmem:[%s3245_s18 + $0x78] ss:$20 sps:$4 sm:$0xff]  }
  0xae   : > { %2718 = vmatpush3.bf16.msra.mxu1 %v3163_v39 }
  0xaf   : > { %2712 = vmatmul.mubr.msk.bf16.gmra.mrb[60].mxu0 %vm746_vm0, %v2862_v24  ;;  %2719 = vmatprep.subr.bf16.mxu1 %v3175_v44 }
  0xb0   : > { %2624 = vmatpush3.bf16.msra.mxu0 %v3007_v11  ;;  %1801 = vmatmul.mubr.bf16.gmra.mrb[60].mxu1 %v2865_v26  ;;  %v2875_v11 = vld [vmem:[%s3245_s18 + $0x10] ss:$20 sps:$4 sm:$0xff]  }
  0xb1   : > { %2625 = vmatprep.subr.bf16.mxu0 %v3019_v13  ;;  %1808 = vmatprep.mubr.bf16.mxu1 %v2866_v28  ;;  %v2872_v13 = vld [vmem:[%s3245_s18 + $0x8] ss:$20 sps:$4 sm:$0xff]  }
  0xb2   : > { %2720 = vmatpush3.bf16.msra.mxu1 %v3175_v44  ;;  %1857 = vmatprep.mubr.bf16.mxu0 %v2874_v3 }
  0xb3   : > { %2721 = vmatprep.subr.bf16.mxu1 %v3183_v45 }
  0xb4   : > { %2626 = vmatpush3.bf16.msra.mxu0 %v3033_v15  ;;  %v2876_v15 = vld [vmem:[%s3245_s18 + $0x38] ss:$20 sps:$4 sm:$0xff]  }
  0xb5   : > { %2627 = vmatprep.subr.bf16.mxu0 %v3045_v17  ;;  %v2877_v17 = vld [vmem:[%s3245_s18 + $0x34] ss:$20 sps:$4 sm:$0xff]  }
  0xb6   : > { %2722 = vmatpush3.bf16.msra.mxu1 %v3183_v45 }
  0xb8   : > { %2628 = vmatpush3.bf16.msra.mxu0 %v3057_v19  ;;  %1809 = vmatmul.mubr.bf16.gmra.mrb[64].mxu1 %v2868_v5  ;;  %v2883_v19 = vld [vmem:[%s3245_s18 + $0x60] ss:$20 sps:$4 sm:$0xff]  }
  0xb9   : > { %2629 = vmatprep.subr.bf16.mxu0 %v3069_v21  ;;  %1816 = vmatprep.mubr.bf16.mxu1 %v2869_v7  ;;  %v2879_v21 = vld [vmem:[%s3245_s18 + $0x30] ss:$20 sps:$4 sm:$0xff]  }
  0xbc   : > { %2630 = vmatpush3.bf16.msra.mxu0 %v3083_v23  ;;  %v2880_v23 = vld [vmem:[%s3245_s18 + $0x5c] ss:$20 sps:$4 sm:$0xff]  }
  0xbd   : > { %2631 = vmatprep.subr.bf16.mxu0 %v3095_v25  ;;  %v2884_v25 = vld [vmem:[%s3245_s18 + $0x88] ss:$20 sps:$4 sm:$0xff]  }
  0xc0   : > { %2632 = vmatpush3.bf16.msra.mxu0 %v3110_v27  ;;  %1817 = vmatmul.mubr.bf16.gmra.mrb[68].mxu1 %v2871_v9  ;;  %v2882_v27 = vld [vmem:[%s3245_s18 + $0x58] ss:$20 sps:$4 sm:$0xff]  }
  0xc1   : > { %2633 = vmatprep.subr.bf16.mxu0 %v3122_v29  ;;  %2723 = vmatprep.mubr.msk.bf16.mxu1 %vm746_vm0, %v2875_v11  ;;  %v2885_v29 = vld [vmem:[%s3245_s18 + $0x84] ss:$20 sps:$4 sm:$0xff]  }
  0xc4   : > { %2634 = vmatpush3.bf16.msra.mxu0 %v3140_v31 }
  0xc7   : > { %1858 = vmatmul.mubr.bf16.vlgmr.msra.gmra.mrb[64].mxu0 %v2872_v13 }
  0xc8   : > { %2724 = vmatmul.mubr.msk.bf16.vlgmr.msra.gmra.mrb[72].mxu1 %vm746_vm0, %v2876_v15  ;;  %1865 = vmatprep.mubr.bf16.mxu0 %v2877_v17 }
  0xc9   : > { %2727 = vmatprep.mubr.msk.bf16.mxu1 %vm746_vm0, %v2883_v19 }
  0xcf   : > { %1866 = vmatmul.mubr.bf16.gmra.mrb[68].mxu0 %v2879_v21 }
  0xd0   : > { %1873 = vmatprep.mubr.bf16.mxu0 %v2880_v23  ;;  %2728 = vmatmul.mubr.msk.bf16.gmra.mrb[76].mxu1 %vm746_vm0, %v2884_v25 }
  0xd7   : > { %1874 = vmatmul.mubr.bf16.gmra.mrb[72].mxu0 %v2882_v27 }
  0xd8   : > { %1881 = vmatprep.mubr.bf16.mxu0 %v2885_v29 }
  0xdf   : > { %1882 = vmatmul.mubr.bf16.gmra.mrb[76].mxu0 %v2887_v30 }
  0xfa   : > { %v2331_v31 = vpop.f32.mrb[0].mxu0 }
  0xfb   : > { %v2371_v36 = vpop.f32.mrb[0].mxu1  ;;  %v2332_v39 = vpop.f32.mrb[1].mxu0 }
  0xfc   : > { %v2333_v44 = vadd.f32 %v2332_v39, %v2331_v31  ;;  %v2372_v45 = vpop.f32.mrb[1].mxu1  ;;  %v2334_v57 = vpop.f32.mrb[2].mxu0 }
  0xfd   : > { %v2373_v58 = vadd.f32 %v2372_v45, %v2371_v36  ;;  %v2374_v59 = vpop.f32.mrb[2].mxu1  ;;  %v2335_v60 = vpop.f32.mrb[3].mxu0 }
  0xfe   : > { %v2336_v61 = vadd.f32 %v2335_v60, %v2334_v57  ;;  %v2375_v62 = vpop.f32.mrb[3].mxu1 }
  0xff   : > { %v2376_v63 = vadd.f32 %v2375_v62, %v2374_v59  ;;  %v859_v32 = vadd.f32 %v2373_v58, %v2333_v44 }
 0x101   : > { %v862_v33 = vadd.f32 %v2376_v63, %v2336_v61 }
 0x102   : > { %v2337_v34 = vpop.f32.mrb[4].mxu0 }
 0x103   : > { %v2377_v35 = vpop.f32.mrb[4].mxu1  ;;  %v2338_v37 = vpop.f32.mrb[5].mxu0 }
 0x104   : > { %v2339_v38 = vadd.f32 %v2338_v37, %v2337_v34  ;;  %v2378_v40 = vpop.f32.mrb[5].mxu1  ;;  %v2340_v41 = vpop.f32.mrb[6].mxu0 }
 0x105   : > { %v2379_v42 = vadd.f32 %v2378_v40, %v2377_v35  ;;  %v2380_v43 = vpop.f32.mrb[6].mxu1  ;;  %v2341_v46 = vpop.f32.mrb[7].mxu0 }
 0x106   : > { %v2342_v47 = vadd.f32 %v2341_v46, %v2340_v41  ;;  %v2381_v48 = vpop.f32.mrb[7].mxu1 }
 0x107   : > { %v2382_v49 = vadd.f32 %v2381_v48, %v2380_v43  ;;  %v867_v50 = vadd.f32 %v2379_v42, %v2339_v38 }
 0x109   : > { %v870_v51 = vadd.f32 %v2382_v49, %v2342_v47 }
 0x10a   : > { %v2343_v52 = vpop.f32.mrb[8].mxu0 }
 0x10b   : > { %v2383_v53 = vpop.f32.mrb[8].mxu1  ;;  %v2344_v54 = vpop.f32.mrb[9].mxu0 }
 0x10c   : > { %v2345_v55 = vadd.f32 %v2344_v54, %v2343_v52  ;;  %v2384_v0 = vpop.f32.mrb[9].mxu1  ;;  %v2346_v56 = vpop.f32.mrb[10].mxu0 }
 0x10d   : > { %v2385_v2 = vadd.f32 %v2384_v0, %v2383_v53  ;;  %v2386_v4 = vpop.f32.mrb[10].mxu1  ;;  %v2347_v6 = vpop.f32.mrb[11].mxu0 }
 0x10e   : > { %v2348_v8 = vadd.f32 %v2347_v6, %v2346_v56  ;;  %v2387_v10 = vpop.f32.mrb[11].mxu1 }
 0x10f   : > { %v2388_v12 = vadd.f32 %v2387_v10, %v2386_v4  ;;  %v875_v14 = vadd.f32 %v2385_v2, %v2345_v55 }
 0x111   : > { %v878_v16 = vadd.f32 %v2388_v12, %v2348_v8 }
 0x112   : > { %v2349_v1 = vpop.f32.mrb[12].mxu0 }
 0x113   : > { %v2389_v18 = vpop.f32.mrb[12].mxu1  ;;  %v2350_v20 = vpop.f32.mrb[13].mxu0 }
 0x114   : > { %v2351_v22 = vadd.f32 %v2350_v20, %v2349_v1  ;;  %v2390_v24 = vpop.f32.mrb[13].mxu1  ;;  %v2352_v26 = vpop.f32.mrb[14].mxu0 }
 0x115   : > { %v2391_v28 = vadd.f32 %v2390_v24, %v2389_v18  ;;  %v2392_v3 = vpop.f32.mrb[14].mxu1  ;;  %v2353_v5 = vpop.f32.mrb[15].mxu0 }
 0x116   : > { %v2354_v7 = vadd.f32 %v2353_v5, %v2352_v26  ;;  %v2393_v9 = vpop.f32.mrb[15].mxu1 }
 0x117   : > { %v2394_v11 = vadd.f32 %v2393_v9, %v2392_v3  ;;  %v883_v13 = vadd.f32 %v2391_v28, %v2351_v22 }
 0x119   : > { %v886_v15 = vadd.f32 %v2394_v11, %v2354_v7 }
 0x11a   : > { %v2677_v17 = vpop.f32.mrb[16].mxu0 }
 0x11b   : > { %v3406_v19 = vadd.f32 %v2677_v17, %v867_v50  ;;  %v923_v21 = vpop.f32.mrb[17].mxu0  ;;  %v2419_v23 = vpop.f32.mrb[16].mxu1 }
 0x11c   : > { %v3408_v25 = vadd.f32 %v923_v21, %v859_v32  ;;  %v2678_v27 = vpop.f32.mrb[18].mxu0  ;;  %v2420_v29 = vpop.f32.mrb[17].mxu1 }
 0x11d   : > { %v3410_v30 = vadd.f32 %v2678_v27, %v870_v51  ;;  %v926_v31 = vpop.f32.mrb[19].mxu0  ;;  %v2421_v36 = vadd.f32 %v2420_v29, %v2419_v23  ;;  %v2422_v39 = vpop.f32.mrb[18].mxu1 }
 0x11e   : > { %v3412_v44 = vadd.f32 %v926_v31, %v862_v33  ;;  %v2423_v45 = vpop.f32.mrb[19].mxu1 }
 0x11f   : > { %v2424_v57 = vadd.f32 %v2423_v45, %v2422_v39 }
 0x122   : > { %v2681_v58 = vpop.f32.mrb[20].mxu0 }
 0x123   : > { %v3414_v59 = vadd.f32 %v2681_v58, %v883_v13  ;;  %v939_v60 = vpop.f32.mrb[21].mxu0  ;;  %v2425_v61 = vpop.f32.mrb[20].mxu1 }
 0x124   : > { %v3416_v62 = vadd.f32 %v939_v60, %v875_v14  ;;  %v2682_v63 = vpop.f32.mrb[22].mxu0  ;;  %v2426_v32 = vpop.f32.mrb[21].mxu1 }
 0x125   : > { %v3418_v34 = vadd.f32 %v2682_v63, %v886_v15  ;;  %v942_v35 = vpop.f32.mrb[23].mxu0  ;;  %v2427_v37 = vadd.f32 %v2426_v32, %v2425_v61  ;;  %v2428_v38 = vpop.f32.mrb[22].mxu1 }
 0x126   : > { %v3420_v40 = vadd.f32 %v942_v35, %v878_v16  ;;  %v2429_v33 = vpop.f32.mrb[23].mxu1 }
 0x127   : > { %v2430_v41 = vadd.f32 %v2429_v33, %v2428_v38 }
 0x12b   : > { %v2431_v42 = vpop.f32.mrb[24].mxu1 }
 0x12c   : > { %v2432_v43 = vpop.f32.mrb[25].mxu1 }
 0x12d   : > { %v2433_v46 = vadd.f32 %v2432_v43, %v2431_v42  ;;  %v2434_v47 = vpop.f32.mrb[26].mxu1 }
 0x12e   : > { %v2435_v48 = vpop.f32.mrb[27].mxu1 }
 0x12f   : > { %v2436_v49 = vadd.f32 %v2435_v48, %v2434_v47 }
 0x133   : > { %v2437_v50 = vpop.f32.mrb[28].mxu1 }
 0x134   : > { %v2438_v51 = vpop.f32.mrb[29].mxu1 }
 0x135   : > { %v2439_v52 = vadd.f32 %v2438_v51, %v2437_v50  ;;  %v2440_v53 = vpop.f32.mrb[30].mxu1 }
 0x136   : > { %v2441_v54 = vpop.f32.mrb[31].mxu1 }
 0x137   : > { %v2442_v55 = vadd.f32 %v2441_v54, %v2440_v53 }
 0x13a   : > { %v2459_v0 = vpop.f32.mrb[24].mxu0 }
 0x13b   : > { %v2460_v56 = vpop.f32.mrb[25].mxu0  ;;  %v2693_v2 = vpop.f32.mrb[32].mxu1 }
 0x13c   : > { %v2461_v4 = vadd.f32 %v2460_v56, %v2459_v0  ;;  %v2462_v6 = vpop.f32.mrb[26].mxu0  ;;  %v1254_v8 = vpop.f32.mrb[33].mxu1 }
 0x13d   : > { %v2463_v10 = vpop.f32.mrb[27].mxu0  ;;  %v2694_v12 = vpop.f32.mrb[34].mxu1 }
 0x13e   : > { %v2464_v14 = vadd.f32 %v2463_v10, %v2462_v6  ;;  %v1190_v16 = vadd.f32 %v2461_v4, %v2421_v36  ;;  %v1257_v1 = vpop.f32.mrb[35].mxu1 }
 0x140   : > { %v3422_v18 = vadd.f32 %v1254_v8, %v1190_v16  ;;  %v1193_v20 = vadd.f32 %v2464_v14, %v2424_v57 }
 0x142   : > { %v1285_v22 = vmax.f32 %v3408_v25, %v3422_v18  ;;  %v3426_v24 = vadd.f32 %v1257_v1, %v1193_v20  ;;  %v2465_v26 = vpop.f32.mrb[28].mxu0 }
 0x143   : > { %v2466_v28 = vpop.f32.mrb[29].mxu0 }
 0x144   : > { %v1286_v3 = vmax.f32 %v3412_v44, %v3426_v24  ;;  %v2467_v5 = vadd.f32 %v2466_v28, %v2465_v26  ;;  %v2468_v7 = vpop.f32.mrb[30].mxu0 }
 0x145   : > { %v2469_v9 = vpop.f32.mrb[31].mxu0  ;;  %v2697_v11 = vpop.f32.mrb[36].mxu1 }
 0x146   : > { %v1198_v13 = vadd.f32 %v2467_v5, %v2427_v37  ;;  %v2470_v15 = vadd.f32 %v2469_v9, %v2468_v7  ;;  %v1270_v17 = vpop.f32.mrb[37].mxu1 }
 0x147   : > { %v2698_v21 = vpop.f32.mrb[38].mxu1 }
 0x148   : > { %v3430_v23 = vadd.f32 %v2693_v2, %v1198_v13  ;;  %v1201_v27 = vadd.f32 %v2470_v15, %v2430_v41  ;;  %v1273_v29 = vpop.f32.mrb[39].mxu1 }
 0x14a   : > { %v1287_v31 = vmax.f32 %v3406_v19, %v3430_v23  ;;  %v3434_v36 = vadd.f32 %v2694_v12, %v1201_v27  ;;  %v2471_v39 = vpop.f32.mrb[32].mxu0 }
 0x14b   : > { %v2472_v45 = vpop.f32.mrb[33].mxu0 }
 0x14c   : > { %v1288_v57 = vmax.f32 %v3410_v30, %v3434_v36  ;;  %v2473_v58 = vadd.f32 %v2472_v45, %v2471_v39  ;;  %v2474_v60 = vpop.f32.mrb[34].mxu0 }
 0x14d   : > { %v2475_v61 = vpop.f32.mrb[35].mxu0 }
 0x14e   : > { %v2476_v63 = vadd.f32 %v2475_v61, %v2474_v60  ;;  %v1206_v32 = vadd.f32 %v2473_v58, %v2433_v46 }
 0x150   : > { %v3438_v35 = vadd.f32 %v1270_v17, %v1206_v32  ;;  %v1209_v37 = vadd.f32 %v2476_v63, %v2436_v49 }
 0x152   : > { %v1289_v38 = vmax.f32 %v3416_v62, %v3438_v35  ;;  %v3442_v33 = vadd.f32 %v1273_v29, %v1209_v37  ;;  %v2477_v41 = vpop.f32.mrb[36].mxu0 }
 0x153   : > { %v2478_v42 = vpop.f32.mrb[37].mxu0 }
 0x154   : > { %v1290_v43 = vmax.f32 %v3420_v40, %v3442_v33  ;;  %v2479_v47 = vadd.f32 %v2478_v42, %v2477_v41  ;;  %v2480_v48 = vpop.f32.mrb[38].mxu0 }
 0x155   : > { %v2481_v50 = vpop.f32.mrb[39].mxu0 }
 0x156   : > { %v1214_v51 = vadd.f32 %v2479_v47, %v2439_v52  ;;  %v2482_v53 = vadd.f32 %v2481_v50, %v2480_v48 }
 0x158   : > { %v3446_v54 = vadd.f32 %v2697_v11, %v1214_v51  ;;  %v1217_v46 = vadd.f32 %v2482_v53, %v2442_v55 }
 0x15a   : > { %v1291_v49 = vmax.f32 %v3414_v59, %v3446_v54  ;;  %v3450_v0 = vadd.f32 %v2698_v21, %v1217_v46  ;;  %v2507_v56 = vpop.f32.mrb[40].mxu0 }
 0x15b   : > { %v2547_v2 = vpop.f32.mrb[40].mxu1  ;;  %v2508_v4 = vpop.f32.mrb[41].mxu0 }
 0x15c   : > { %v1292_v6 = vmax.f32 %v3418_v34, %v3450_v0  ;;  %v2509_v8 = vadd.f32 %v2508_v4, %v2507_v56  ;;  %v2548_v10 = vpop.f32.mrb[41].mxu1  ;;  %v2510_v12 = vpop.f32.mrb[42].mxu0 }
 0x15d   : > { %v2549_v14 = vadd.f32 %v2548_v10, %v2547_v2  ;;  %v2550_v52 = vpop.f32.mrb[42].mxu1  ;;  %v2511_v16 = vpop.f32.mrb[43].mxu0 }
 0x15e   : > { %v2512_v1 = vadd.f32 %v2511_v16, %v2510_v12  ;;  %v2551_v20 = vpop.f32.mrb[43].mxu1 }
 0x15f   : > { %v2552_v55 = vadd.f32 %v2551_v20, %v2550_v52  ;;  %v1529_v26 = vadd.f32 %v2549_v14, %v2509_v8 }
 0x161   : > { %v1532_v28 = vadd.f32 %v2552_v55, %v2512_v1 }
 0x162   : > { %v2513_v5 = vpop.f32.mrb[44].mxu0 }
 0x163   : > { %v2553_v7 = vpop.f32.mrb[44].mxu1  ;;  %v2514_v9 = vpop.f32.mrb[45].mxu0 }
 0x164   : > { %v2515_v11 = vadd.f32 %v2514_v9, %v2513_v5  ;;  %v2554_v13 = vpop.f32.mrb[45].mxu1  ;;  %v2516_v15 = vpop.f32.mrb[46].mxu0 }
 0x165   : > { %v2555_v17 = vadd.f32 %v2554_v13, %v2553_v7  ;;  %v2556_v21 = vpop.f32.mrb[46].mxu1  ;;  %v2517_v27 = vpop.f32.mrb[47].mxu0 }
 0x166   : > { %v2518_v29 = vadd.f32 %v2517_v27, %v2516_v15  ;;  %v2557_v39 = vpop.f32.mrb[47].mxu1 }
 0x167   : > { %v2558_v45 = vadd.f32 %v2557_v39, %v2556_v21  ;;  %v1537_v58 = vadd.f32 %v2555_v17, %v2515_v11 }
 0x169   : > { %v1540_v60 = vadd.f32 %v2558_v45, %v2518_v29 }
 0x16a   : > { %v2519_v61 = vpop.f32.mrb[48].mxu0 }
 0x16b   : > { %v2559_v63 = vpop.f32.mrb[48].mxu1  ;;  %v2520_v32 = vpop.f32.mrb[49].mxu0 }
 0x16c   : > { %v2521_v37 = vadd.f32 %v2520_v32, %v2519_v61  ;;  %v2560_v41 = vpop.f32.mrb[49].mxu1  ;;  %v2522_v42 = vpop.f32.mrb[50].mxu0 }
 0x16d   : > { %v2561_v47 = vadd.f32 %v2560_v41, %v2559_v63  ;;  %v2562_v48 = vpop.f32.mrb[50].mxu1  ;;  %v2523_v50 = vpop.f32.mrb[51].mxu0 }
 0x16e   : > { %v2524_v51 = vadd.f32 %v2523_v50, %v2522_v42  ;;  %v2563_v53 = vpop.f32.mrb[51].mxu1 }
 0x16f   : > { %v2564_v46 = vadd.f32 %v2563_v53, %v2562_v48  ;;  %v1545_v56 = vadd.f32 %v2561_v47, %v2521_v37 }
 0x171   : > { %v1548_v2 = vadd.f32 %v2564_v46, %v2524_v51 }
 0x172   : > { %v2525_v4 = vpop.f32.mrb[52].mxu0 }
 0x173   : > { %v2565_v8 = vpop.f32.mrb[52].mxu1  ;;  %v2526_v10 = vpop.f32.mrb[53].mxu0 }
 0x174   : > { %v2527_v12 = vadd.f32 %v2526_v10, %v2525_v4  ;;  %v2566_v14 = vpop.f32.mrb[53].mxu1  ;;  %v2528_v52 = vpop.f32.mrb[54].mxu0 }
 0x175   : > { %v2567_v16 = vadd.f32 %v2566_v14, %v2565_v8  ;;  %v2568_v1 = vpop.f32.mrb[54].mxu1  ;;  %v2529_v20 = vpop.f32.mrb[55].mxu0 }
 0x176   : > { %v2530_v55 = vadd.f32 %v2529_v20, %v2528_v52  ;;  %v2569_v5 = vpop.f32.mrb[55].mxu1 }
 0x177   : > { %v2570_v7 = vadd.f32 %v2569_v5, %v2568_v1  ;;  %v1553_v9 = vadd.f32 %v2567_v16, %v2527_v12 }
 0x179   : > { %v1556_v11 = vadd.f32 %v2570_v7, %v2530_v55 }
 0x17a   : > { %v2709_v13 = vpop.f32.mrb[56].mxu0 }
 0x17b   : > { %v3454_v15 = vadd.f32 %v2709_v13, %v1537_v58  ;;  %v1593_v17 = vpop.f32.mrb[57].mxu0  ;;  %v2595_v21 = vpop.f32.mrb[56].mxu1 }
 0x17c   : > { %v1594_v27 = vadd.f32 %v1593_v17, %v1529_v26  ;;  %v2710_v29 = vpop.f32.mrb[58].mxu0  ;;  %v2596_v39 = vpop.f32.mrb[57].mxu1 }
 0x17d   : > { %v3456_v45 = vadd.f32 %v2710_v29, %v1540_v60  ;;  %v1596_v61 = vpop.f32.mrb[59].mxu0  ;;  %v2597_v63 = vadd.f32 %v2596_v39, %v2595_v21  ;;  %v2598_v32 = vpop.f32.mrb[58].mxu1 }
 0x17e   : > { %v1597_v37 = vadd.f32 %v1596_v61, %v1532_v28  ;;  %v2599_v41 = vpop.f32.mrb[59].mxu1 }
 0x17f   : > { %v2600_v42 = vadd.f32 %v2599_v41, %v2598_v32 }
 0x182   : > { %v2713_v47 = vpop.f32.mrb[60].mxu0 }
 0x183   : > { %v3458_v48 = vadd.f32 %v2713_v47, %v1553_v9  ;;  %v1609_v50 = vpop.f32.mrb[61].mxu0  ;;  %v2601_v51 = vpop.f32.mrb[60].mxu1 }
 0x184   : > { %v3460_v58 = vadd.f32 %v1609_v50, %v1545_v56  ;;  %v2714_v53 = vpop.f32.mrb[62].mxu0  ;;  %v2602_v46 = vpop.f32.mrb[61].mxu1 }
 0x185   : > { %v3462_v26 = vadd.f32 %v2714_v53, %v1556_v11  ;;  %v1612_v4 = vpop.f32.mrb[63].mxu0  ;;  %v2603_v60 = vadd.f32 %v2602_v46, %v2601_v51  ;;  %v2604_v8 = vpop.f32.mrb[62].mxu1 }
 0x186   : > { %v3464_v10 = vadd.f32 %v1612_v4, %v1548_v2  ;;  %v2605_v12 = vpop.f32.mrb[63].mxu1 }
 0x187   : > { %v2606_v28 = vadd.f32 %v2605_v12, %v2604_v8 }
 0x18b   : > { %v2607_v14 = vpop.f32.mrb[64].mxu1 }
 0x18c   : > { %v2608_v52 = vpop.f32.mrb[65].mxu1 }
 0x18d   : > { %v2609_v16 = vadd.f32 %v2608_v52, %v2607_v14  ;;  %v2610_v1 = vpop.f32.mrb[66].mxu1  ;;  %v3473_v14 = vld [vmem:[%s3533_s5] ss:$0 sm:$0xff] }
 0x18e   : > { %v2611_v20 = vpop.f32.mrb[67].mxu1 }
 0x18f   : > { %v2612_v55 = vadd.f32 %v2611_v20, %v2610_v1 }
 0x193   : > { %v2613_v5 = vpop.f32.mrb[68].mxu1 }
 0x194   : > { %v2614_v56 = vpop.f32.mrb[69].mxu1 }
 0x195   : > { %v3466_v7 = vadd.f32 %v2614_v56, %v2613_v5  ;;  %v2616_v9 = vpop.f32.mrb[70].mxu1 }
 0x196   : > { %v2617_v11 = vpop.f32.mrb[71].mxu1 }
 0x197   : > { %v3468_v13 = vadd.f32 %v2617_v11, %v2616_v9 }
 0x19a   : > { %v2635_v17 = vpop.f32.mrb[64].mxu0 }
 0x19b   : > { %v2636_v21 = vpop.f32.mrb[65].mxu0  ;;  %v2725_v2 = vpop.f32.mrb[72].mxu1 }
 0x19c   : > { %v2637_v29 = vadd.f32 %v2636_v21, %v2635_v17  ;;  %v2638_v39 = vpop.f32.mrb[66].mxu0  ;;  %v1924_v61 = vpop.f32.mrb[73].mxu1 }
 0x19d   : > { %v2639_v32 = vpop.f32.mrb[67].mxu0  ;;  %v2726_v41 = vpop.f32.mrb[74].mxu1 }
 0x19e   : > { %v2640_v47 = vadd.f32 %v2639_v32, %v2638_v39  ;;  %v1860_v50 = vadd.f32 %v2637_v29, %v2597_v63  ;;  %v1927_v51 = vpop.f32.mrb[75].mxu1 }
 0x1a0   : > { %v1925_v53 = vadd.f32 %v1924_v61, %v1860_v50  ;;  %v1863_v46 = vadd.f32 %v2640_v47, %v2600_v42 }
 0x1a2   : > { %v1955_v4 = vmax.f32 %v1594_v27, %v1925_v53  ;;  %v1928_v8 = vadd.f32 %v1927_v51, %v1863_v46  ;;  %v2641_v12 = vpop.f32.mrb[68].mxu0 }
 0x1a3   : > { %v2642_v52 = vpop.f32.mrb[69].mxu0  ;;  %v2729_v1 = vpop.f32.mrb[76].mxu1 }
 0x1a4   : > { %v1963_v20 = vmax.f32 %v1285_v22, %v1955_v4  ;;  %v1956_v5 = vmax.f32 %v1597_v37, %v1928_v8  ;;  %v2643_v63 = vadd.f32 %v2642_v52, %v2641_v12  ;;  %v2644_v56 = vpop.f32.mrb[70].mxu0  ;;  %v1940_v9 = vpop.f32.mrb[77].mxu1 }
 0x1a5   : > { %v2645_v42 = vpop.f32.mrb[71].mxu0  ;;  %v2730_v27 = vpop.f32.mrb[78].mxu1 }
 0x1a6   : > { %v1978_v11 = vadd.f32 %v3473_v14, %v1963_v20  ;;  %v1964_v17 = vmax.f32 %v1286_v3, %v1956_v5  ;;  %v1868_v21 = vadd.f32 %v2643_v63, %v2603_v60  ;;  %v2646_v29 = vadd.f32 %v2645_v42, %v2644_v56  ;;  %v1943_v39 = vpop.f32.mrb[79].mxu1 }
 0x1a8   : > { %v1979_v61 = vadd.f32 %v3473_v14, %v1964_v17  ;;  %v1933_v25 = vadd.f32 %v2725_v2, %v1868_v21  ;;  %v1871_v18 = vadd.f32 %v2646_v29, %v2606_v28  ;;  %v1986_v22 = vmax.f32 %v1978_v11, 0.0 }
 0x1aa   : > { %v1987_v37 = vmax.f32 %v1979_v61, 0.0  ;;  %v1957_v32 = vmax.f32 %v3454_v15, %v1933_v25  ;;  %v1936_v47 = vadd.f32 %v2726_v41, %v1871_v18  ;;  %v2647_v50 = vpop.f32.mrb[72].mxu0 }
 0x1ab   : > { %v2648_v44 = vpop.f32.mrb[73].mxu0 }
 0x1ac   : > { %v2295_v24 = vpack.c.bf16 %v1987_v37, %v1986_v22  ;;  %v1965_v3 = vmax.f32 %v1287_v31, %v1957_v32  ;;  %v1958_v60 = vmax.f32 %v3456_v45, %v1936_v47  ;;  %v2649_v28 = vadd.f32 %v2648_v44, %v2647_v50  ;;  %v2650_v2 = vpop.f32.mrb[74].mxu0 }
 0x1ad   : > { %v2651_v51 = vpop.f32.mrb[75].mxu0 }
 0x1ae   : > { %2296 = vst [vmem:[%s3488_s25] sm:$0xff] %v2295_v24   ;;  %v1980_v15 = vadd.f32 %v3473_v14, %v1965_v3  ;;  %v1966_v41 = vmax.f32 %v1288_v57, %v1958_v60  ;;  %v2652_v53 = vadd.f32 %v2651_v51, %v2650_v2  ;;  %v1876_v46 = vadd.f32 %v2649_v28, %v2609_v16 }
 0x1b0   : > { %v1981_v4 = vadd.f32 %v3473_v14, %v1966_v41  ;;  %v1941_v8 = vadd.f32 %v1940_v9, %v1876_v46  ;;  %v1879_v19 = vadd.f32 %v2652_v53, %v2612_v55  ;;  %v1988_v23 = vmax.f32 %v1980_v15, 0.0 }
 0x1b2   : > { %v1989_v31 = vmax.f32 %v1981_v4, 0.0  ;;  %v1959_v45 = vmax.f32 %v3460_v58, %v1941_v8  ;;  %v1944_v12 = vadd.f32 %v1943_v39, %v1879_v19  ;;  %v2653_v52 = vpop.f32.mrb[76].mxu0 }
 0x1b3   : > { %v2654_v20 = vpop.f32.mrb[77].mxu0 }
 0x1b4   : > { %v2300_v5 = vpack.c.bf16 %v1989_v31, %v1988_v23  ;;  %v1967_v30 = vmax.f32 %v1289_v38, %v1959_v45  ;;  %v1960_v36 = vmax.f32 %v3464_v10, %v1944_v12  ;;  %v2655_v57 = vadd.f32 %v2654_v20, %v2653_v52  ;;  %v2656_v16 = vpop.f32.mrb[78].mxu0 }
 0x1b5   : > { %v2657_v63 = vpop.f32.mrb[79].mxu0 }
 0x1b6   : > { %2312 = vst [vmem:[%s3488_s25 + $0x8] sm:$0xff] %v2300_v5   ;;  %v1982_v55 = vadd.f32 %v3473_v14, %v1967_v30  ;;  %v1968_v58 = vmax.f32 %v1290_v43, %v1960_v36  ;;  %v1884_v56 = vadd.f32 %v2655_v57, %v3466_v7  ;;  %v2658_v9 = vadd.f32 %v2657_v63, %v2656_v16 }
 0x1b8   : > { %v1983_v42 = vadd.f32 %v3473_v14, %v1968_v58  ;;  %v1949_v62 = vadd.f32 %v2729_v1, %v1884_v56  ;;  %v1887_v35 = vadd.f32 %v2658_v9, %v3468_v13  ;;  %v1990_v38 = vmax.f32 %v1982_v55, 0.0 }
 0x1ba   : > { %v1991_v10 = vmax.f32 %v1983_v42, 0.0  ;;  %v1961_v11 = vmax.f32 %v3458_v48, %v1949_v62  ;;  %v1952_v17 = vadd.f32 %v2730_v27, %v1887_v35 }
 0x1bc   : > { %v2305_v21 = vpack.c.bf16 %v1991_v10, %v1990_v38  ;;  %v1969_v40 = vmax.f32 %v1291_v49, %v1961_v11  ;;  %v1962_v33 = vmax.f32 %v3462_v26, %v1952_v17 }
 0x1be   : > { %2313 = vst [vmem:[%s3488_s25 + $0x10] sm:$0xff] %v2305_v21   ;;  %v1984_v43 = vadd.f32 %v3473_v14, %v1969_v40  ;;  %v1970_v7 = vmax.f32 %v1292_v6, %v1962_v33 }
 0x1c0   : > { %v1985_v13 = vadd.f32 %v3473_v14, %v1970_v7  ;;  %v1992_v1 = vmax.f32 %v1984_v43, 0.0 }
 0x1c2   : > { %v1993_v29 = vmax.f32 %v1985_v13, 0.0 }
 0x1c4   : > { %v2310_v48 = vpack.c.bf16 %v1993_v29, %v1992_v1 }
 0x1c6   : > { %2314 = vst [vmem:[%s3488_s25 + $0x18] sm:$0xff] %v2310_v48  }
 0x1c7 PF: > { %s16_s21 = sadd.s32 1, %s2894_s21  }
 0x1c8   : > { %p13_p4 = scmp.ge.s32.totalorder %s16_s21, 4  }
 0x1ca   :  { %15 = sbr.rel (!%p13_p4) target bundleno = 1 (0x1), region = 83 }

// kernel: lenet5_forward.5
= control target key start
LH: loop header
LB: loop body
LE: loop exit
PB: predicated region body
PF: predicated region fallthrough
CT: control target
= control target key end

     0   :  { %v288_v38 = vlaneseq  ;;  %v3128_v39 = vmov 1966171168   ;;  %s4108_s0 = inlined_call_operand.vmem [shape: bf16[2,2048], index: 0, kind: input, shape index: {}]   ;;  %s4109_s1 = inlined_call_operand.vmem [shape: bf16[2048,256], index: 1, kind: input, shape index: {}]   ;;  %s4110_s2 = inlined_call_operand.vmem [shape: f32[1,256], index: 2, kind: input, shape index: {}]   ;;  %s4111_s3 = inlined_call_operand.vmem [shape: bf16[256,128], index: 3, kind: input, shape index: {}]   ;;  %s4112_s4 = inlined_call_operand.vmem [shape: f32[1,128], index: 4, kind: input, shape index: {}]   ;;  %s4113_s5 = inlined_call_operand.vmem [shape: bf16[128,128], index: 5, kind: input, shape index: {}]   ;;  %s4114_s6 = inlined_call_operand.vmem [shape: f32[1,128], index: 6, kind: input, shape index: {}]   ;;  %s4115_s7 = inlined_call_operand.hbm [shape: f32[2,128], index: 7, kind: output, shape index: {}]  }
   0x1   :  { %v2694_v0 = vld [vmem:[%s4109_s1 + $0x4] ss:$8 sps:$4 sm:$0xff]   ;;  %v2698_v2 = vld [vmem:[%s4109_s1] ss:$8 sps:$4 sm:$0xff]   ;;  %v2700_v4 = vld [vmem:[%s4109_s1 + $0x14] ss:$8 sps:$4 sm:$0xff]   ;;  %v302_v40 = vunpack.c.l.s4 %v3128_v39 }
   0x2   :  { %v2696_v1 = vld [vmem:[%s4109_s1 + $0x304] ss:$8 sps:$4 sm:$0xff]   ;;  %1694 = vmatprep.subr.bf16.mxu1 %v2694_v0  ;;  %v2699_v3 = vld [vmem:[%s4109_s1 + $0x300] ss:$8 sps:$4 sm:$0xff]   ;;  %v2702_v5 = vld [vmem:[%s4109_s1 + $0x314] ss:$8 sps:$4 sm:$0xff]  }
   0x3   :  { %1817 = vmatprep.subr.bf16.mxu0 %v2696_v1  ;;  %1695 = vmatpush1.bf16.msra.mxu1 %v2698_v2  ;;  %v2704_v6 = vld [vmem:[%s4109_s1 + $0x10] ss:$8 sps:$4 sm:$0xff]   ;;  %v2706_v8 = vld [vmem:[%s4109_s1 + $0x24] ss:$8 sps:$4 sm:$0xff]   ;;  %v2710_v10 = vld [vmem:[%s4109_s1 + $0x20] ss:$8 sps:$4 sm:$0xff]   ;;  %v303_v46 = vunpack.c.0.s8 %v302_v40 }
   0x4   :  { %1818 = vmatpush1.bf16.msra.mxu0 %v2699_v3  ;;  %1696 = vmatprep.subr.bf16.mxu1 %v2700_v4  ;;  %v2705_v7 = vld [vmem:[%s4109_s1 + $0x310] ss:$8 sps:$4 sm:$0xff]   ;;  %v2708_v9 = vld [vmem:[%s4109_s1 + $0x324] ss:$8 sps:$4 sm:$0xff]   ;;  %v2711_v11 = vld [vmem:[%s4109_s1 + $0x320] ss:$8 sps:$4 sm:$0xff]  }
   0x5   :  { %1819 = vmatprep.subr.bf16.mxu0 %v2702_v5  ;;  %v2712_v12 = vld [vmem:[%s4109_s1 + $0x34] ss:$8 sps:$4 sm:$0xff]   ;;  %v2716_v14 = vld [vmem:[%s4109_s1 + $0x30] ss:$8 sps:$4 sm:$0xff]   ;;  %v2718_v16 = vld [vmem:[%s4109_s1 + $0x44] ss:$8 sps:$4 sm:$0xff]  }
   0x6   :  { %v2714_v13 = vld [vmem:[%s4109_s1 + $0x334] ss:$8 sps:$4 sm:$0xff]   ;;  %v2717_v15 = vld [vmem:[%s4109_s1 + $0x330] ss:$8 sps:$4 sm:$0xff]   ;;  %v2720_v17 = vld [vmem:[%s4109_s1 + $0x344] ss:$8 sps:$4 sm:$0xff]  }
   0x7   :  { %1697 = vmatpush1.bf16.msra.mxu1 %v2704_v6  ;;  %v2722_v18 = vld [vmem:[%s4109_s1 + $0x40] ss:$8 sps:$4 sm:$0xff]   ;;  %v2724_v20 = vld [vmem:[%s4109_s1 + $0x54] ss:$8 sps:$4 sm:$0xff]   ;;  %v2728_v22 = vld [vmem:[%s4109_s1 + $0x50] ss:$8 sps:$4 sm:$0xff]  }
   0x8   :  { %1820 = vmatpush1.bf16.msra.mxu0 %v2705_v7  ;;  %1698 = vmatprep.subr.bf16.mxu1 %v2706_v8  ;;  %v2723_v19 = vld [vmem:[%s4109_s1 + $0x340] ss:$8 sps:$4 sm:$0xff]   ;;  %v2726_v21 = vld [vmem:[%s4109_s1 + $0x354] ss:$8 sps:$4 sm:$0xff]   ;;  %v2729_v23 = vld [vmem:[%s4109_s1 + $0x350] ss:$8 sps:$4 sm:$0xff]  }
   0x9   :  { %1821 = vmatprep.subr.bf16.mxu0 %v2708_v9  ;;  %v2730_v24 = vld [vmem:[%s4109_s1 + $0x64] ss:$8 sps:$4 sm:$0xff]   ;;  %v2734_v26 = vld [vmem:[%s4109_s1 + $0x60] ss:$8 sps:$4 sm:$0xff]   ;;  %v2736_v28 = vld [vmem:[%s4109_s1 + $0x74] ss:$8 sps:$4 sm:$0xff]  }
   0xa   :  { %v2732_v25 = vld [vmem:[%s4109_s1 + $0x364] ss:$8 sps:$4 sm:$0xff]   ;;  %v2735_v27 = vld [vmem:[%s4109_s1 + $0x360] ss:$8 sps:$4 sm:$0xff]   ;;  %v2738_v29 = vld [vmem:[%s4109_s1 + $0x374] ss:$8 sps:$4 sm:$0xff]  }
   0xb   :  { %1699 = vmatpush1.bf16.msra.mxu1 %v2710_v10  ;;  %v2740_v30 = vld [vmem:[%s4109_s1 + $0x70] ss:$8 sps:$4 sm:$0xff]   ;;  %v2742_v32 = vld [vmem:[%s4109_s1 + $0x84] ss:$8 sps:$4 sm:$0xff]   ;;  %v2746_v34 = vld [vmem:[%s4109_s1 + $0x80] ss:$8 sps:$4 sm:$0xff]  }
   0xc   :  { %1822 = vmatpush1.bf16.msra.mxu0 %v2711_v11  ;;  %1700 = vmatprep.subr.bf16.mxu1 %v2712_v12  ;;  %v2741_v31 = vld [vmem:[%s4109_s1 + $0x370] ss:$8 sps:$4 sm:$0xff]   ;;  %v2744_v33 = vld [vmem:[%s4109_s1 + $0x384] ss:$8 sps:$4 sm:$0xff]   ;;  %v2747_v35 = vld [vmem:[%s4109_s1 + $0x380] ss:$8 sps:$4 sm:$0xff]  }
   0xd   :  { %1823 = vmatprep.subr.bf16.mxu0 %v2714_v13  ;;  %v2748_v36 = vld [vmem:[%s4109_s1 + $0x94] ss:$8 sps:$4 sm:$0xff]   ;;  %v2752_v41 = vld [vmem:[%s4109_s1 + $0x90] ss:$8 sps:$4 sm:$0xff]   ;;  %v2754_v43 = vld [vmem:[%s4109_s1 + $0xa4] ss:$8 sps:$4 sm:$0xff]  }
   0xe   :  { %v2750_v37 = vld [vmem:[%s4109_s1 + $0x394] ss:$8 sps:$4 sm:$0xff]   ;;  %v2753_v42 = vld [vmem:[%s4109_s1 + $0x390] ss:$8 sps:$4 sm:$0xff]   ;;  %v2756_v44 = vld [vmem:[%s4109_s1 + $0x3a4] ss:$8 sps:$4 sm:$0xff]  }
   0xf   :  { %1701 = vmatpush1.bf16.msra.mxu1 %v2716_v14  ;;  %v3298_v45 = vshrl.u32 %v288_v38, 7  ;;  %v2758_v47 = vld [vmem:[%s4109_s1 + $0xa0] ss:$8 sps:$4 sm:$0xff]   ;;  %v2760_v49 = vld [vmem:[%s4109_s1 + $0xb4] ss:$8 sps:$4 sm:$0xff]  }
  0x10   :  { %1824 = vmatpush1.bf16.msra.mxu0 %v2717_v15  ;;  %1702 = vmatprep.subr.bf16.mxu1 %v2718_v16  ;;  %v2759_v48 = vld [vmem:[%s4109_s1 + $0x3a0] ss:$8 sps:$4 sm:$0xff]   ;;  %v2762_v50 = vld [vmem:[%s4109_s1 + $0x3b4] ss:$8 sps:$4 sm:$0xff]   ;;  %v2764_v53 = vld [vmem:[%s4109_s1 + $0xb0] ss:$8 sps:$4 sm:$0xff]  }
  0x11   :  { %1825 = vmatprep.subr.bf16.mxu0 %v2720_v17  ;;  %v3313_v51 = vsub.s32 %v303_v46, %v3298_v45  ;;  %v28_v52 = vld [vmem:[%s4108_s0] sm:$0xff]  ;;  %v2765_v56 = vld [vmem:[%s4109_s1 + $0x3b0] ss:$8 sps:$4 sm:$0xff]   ;;  %v2772_v1 = vld [vmem:[%s4109_s1 + $0xd4] ss:$8 sps:$4 sm:$0xff]  }
  0x12   :  { %v300_v54 = vcombine.high %v28_v52, %v28_v52  ;;  %v2766_v57 = vld [vmem:[%s4109_s1 + $0xc4] ss:$8 sps:$4 sm:$0xff]   ;;  %v2770_v61 = vld [vmem:[%s4109_s1 + $0xc0] ss:$8 sps:$4 sm:$0xff]   ;;  %v2774_v2 = vld [vmem:[%s4109_s1 + $0x3d4] ss:$8 sps:$4 sm:$0xff]  }
  0x13   :  { %1703 = vmatpush1.bf16.msra.mxu1 %v2722_v18  ;;  %v307_v55 = vrot.slane %v28_v52, %v3313_v51  ;;  %v2768_v58 = vld [vmem:[%s4109_s1 + $0x3c4] ss:$8 sps:$4 sm:$0xff]   ;;  %v2771_v0 = vld [vmem:[%s4109_s1 + $0x3c0] ss:$8 sps:$4 sm:$0xff]   ;;  %v2776_v4 = vld [vmem:[%s4109_s1 + $0xd0] ss:$8 sps:$4 sm:$0xff]  }
  0x14   :  { %1826 = vmatpush1.bf16.msra.mxu0 %v2723_v19  ;;  %1704 = vmatprep.subr.bf16.mxu1 %v2724_v20  ;;  %v314_v60 = vrot.slane %v300_v54, %v3313_v51  ;;  %v2777_v6 = vld [vmem:[%s4109_s1 + $0x3d0] ss:$8 sps:$4 sm:$0xff]   ;;  %v2778_v7 = vld [vmem:[%s4109_s1 + $0xe4] ss:$8 sps:$4 sm:$0xff]   ;;  %v2782_v9 = vld [vmem:[%s4109_s1 + $0xe0] ss:$8 sps:$4 sm:$0xff]  }
  0x15   :  { %1827 = vmatprep.subr.bf16.mxu0 %v2726_v21  ;;  %v315_v59 = vcombine.high %v307_v55, %v307_v55  ;;  %v2780_v8 = vld [vmem:[%s4109_s1 + $0x3e4] ss:$8 sps:$4 sm:$0xff]   ;;  %v2783_v10 = vld [vmem:[%s4109_s1 + $0x3e0] ss:$8 sps:$4 sm:$0xff]   ;;  %v2784_v11 = vld [vmem:[%s4109_s1 + $0xf4] ss:$8 sps:$4 sm:$0xff]   ;;  %v3393_v19 = vrot.slane %v307_v55, %v3313_v51 }
  0x16   :  { %v316_v63 = vcombine.high %v314_v60, %v314_v60  ;;  %v2786_v12 = vld [vmem:[%s4109_s1 + $0x3f4] ss:$8 sps:$4 sm:$0xff]   ;;  %v2788_v13 = vld [vmem:[%s4109_s1 + $0xf0] ss:$8 sps:$4 sm:$0xff]   ;;  %v3378_v14 = vrot.slane %v314_v60, %v3313_v51  ;;  %v2793_v16 = vld [vmem:[%s4109_s1 + $0x104] ss:$8 sps:$4 sm:$0xff]  }
  0x17   :  { %1705 = vmatpush1.bf16.msra.mxu1 %v2728_v22  ;;  %v337_v62 = vrot.slane %v315_v59, %v3313_v51  ;;  %v2789_v15 = vld [vmem:[%s4109_s1 + $0x3f0] ss:$8 sps:$4 sm:$0xff]   ;;  %v2796_v17 = vld [vmem:[%s4109_s1 + $0x404] ss:$8 sps:$4 sm:$0xff]   ;;  %v2791_v18 = vld [vmem:[%s4109_s1 + $0x100] ss:$8 sps:$4 sm:$0xff]  }
  0x18   :  { %1828 = vmatpush1.bf16.msra.mxu0 %v2729_v23  ;;  %1706 = vmatprep.subr.bf16.mxu1 %v2730_v24  ;;  %v3346_v3 = vrot.slane %v316_v63, %v3313_v51  ;;  %v346_v20 = vcombine.high %v3378_v14, %v3378_v14  ;;  %v2794_v21 = vld [vmem:[%s4109_s1 + $0x400] ss:$8 sps:$4 sm:$0xff]   ;;  %v2799_v22 = vld [vmem:[%s4109_s1 + $0x114] ss:$8 sps:$4 sm:$0xff]   ;;  %v2833_v54 = vld [vmem:[%s4109_s1 + $0x170] ss:$8 sps:$4 sm:$0xff]  }
  0x19   :  { %1829 = vmatprep.subr.bf16.mxu0 %v2732_v25  ;;  %1726 = vmatprep.mubr.bf16.mxu1 %v337_v62  ;;  %v2802_v23 = vld [vmem:[%s4109_s1 + $0x414] ss:$8 sps:$4 sm:$0xff]   ;;  %v347_v24 = vcombine.high %v337_v62, %v337_v62  ;;  %v2797_v25 = vld [vmem:[%s4109_s1 + $0x110] ss:$8 sps:$4 sm:$0xff]   ;;  %v2818_v38 = vld [vmem:[%s4109_s1 + $0x440] ss:$8 sps:$4 sm:$0xff]  }
  0x1a   :  { %v348_v5 = vcombine.high %v3346_v3, %v3346_v3  ;;  %v2823_v39 = vld [vmem:[%s4109_s1 + $0x154] ss:$8 sps:$4 sm:$0xff]   ;;  %v3470_v46 = vld [vmem:[%s4108_s0 + $0x8] sm:$0xff]  ;;  %v2836_v55 = vld [vmem:[%s4109_s1 + $0x470] ss:$8 sps:$4 sm:$0xff]  }
  0x1b   :  { %1707 = vmatpush1.bf16.msra.mxu1 %v2734_v26  ;;  %v2800_v26 = vld [vmem:[%s4109_s1 + $0x410] ss:$8 sps:$4 sm:$0xff]   ;;  %v2826_v40 = vld [vmem:[%s4109_s1 + $0x454] ss:$8 sps:$4 sm:$0xff]   ;;  %v2839_v59 = vld [vmem:[%s4109_s1 + $0x180] ss:$8 sps:$4 sm:$0xff]  }
  0x1c   :  { %1830 = vmatpush1.bf16.msra.mxu0 %v2735_v27  ;;  %1708 = vmatprep.subr.bf16.mxu1 %v2736_v28  ;;  %v2805_v27 = vld [vmem:[%s4109_s1 + $0x124] ss:$8 sps:$4 sm:$0xff]   ;;  %v2838_v52 = vld [vmem:[%s4109_s1 + $0x474] ss:$8 sps:$4 sm:$0xff]   ;;  %v2842_v60 = vld [vmem:[%s4109_s1 + $0x480] ss:$8 sps:$4 sm:$0xff]  }
  0x1d   :  { %1831 = vmatprep.subr.bf16.mxu0 %v2738_v29  ;;  %1849 = vmatprep.mubr.bf16.mxu0 %v348_v5  ;;  %v2808_v28 = vld [vmem:[%s4109_s1 + $0x424] ss:$8 sps:$4 sm:$0xff]   ;;  %v2803_v29 = vld [vmem:[%s4109_s1 + $0x120] ss:$8 sps:$4 sm:$0xff]   ;;  %v2850_v62 = vld [vmem:[%s4109_s1 + $0x494] ss:$8 sps:$4 sm:$0xff]  }
  0x1e   :  { %v2845_v63 = vld [vmem:[%s4109_s1 + $0x190] ss:$8 sps:$4 sm:$0xff]   ;;  %v2854_v5 = vld [vmem:[%s4109_s1 + $0x4a0] ss:$8 sps:$4 sm:$0xff]  }
  0x1f   :  { %1709 = vmatpush1.bf16.msra.mxu1 %v2740_v30  ;;  %v2806_v30 = vld [vmem:[%s4109_s1 + $0x420] ss:$8 sps:$4 sm:$0xff]  }
  0x20   :  { %1832 = vmatpush1.bf16.msra.mxu0 %v2741_v31  ;;  %1710 = vmatprep.subr.bf16.mxu1 %v2742_v32  ;;  %v2811_v31 = vld [vmem:[%s4109_s1 + $0x134] ss:$8 sps:$4 sm:$0xff]  }
  0x21   :  { %1833 = vmatprep.subr.bf16.mxu0 %v2744_v33  ;;  %v2814_v32 = vld [vmem:[%s4109_s1 + $0x434] ss:$8 sps:$4 sm:$0xff]   ;;  %v2809_v33 = vld [vmem:[%s4109_s1 + $0x130] ss:$8 sps:$4 sm:$0xff]  }
  0x23   :  { %1711 = vmatpush1.bf16.msra.mxu1 %v2746_v34  ;;  %v2812_v34 = vld [vmem:[%s4109_s1 + $0x430] ss:$8 sps:$4 sm:$0xff]  }
  0x24   :  { %1834 = vmatpush1.bf16.msra.mxu0 %v2747_v35  ;;  %1712 = vmatprep.subr.bf16.mxu1 %v2748_v36  ;;  %v2817_v35 = vld [vmem:[%s4109_s1 + $0x144] ss:$8 sps:$4 sm:$0xff]  }
  0x25   :  { %1835 = vmatprep.subr.bf16.mxu0 %v2750_v37  ;;  %v2820_v36 = vld [vmem:[%s4109_s1 + $0x444] ss:$8 sps:$4 sm:$0xff]   ;;  %v2815_v37 = vld [vmem:[%s4109_s1 + $0x140] ss:$8 sps:$4 sm:$0xff]  }
  0x27   :  { %1713 = vmatpush1.bf16.msra.mxu1 %v2752_v41  ;;  %v2821_v41 = vld [vmem:[%s4109_s1 + $0x150] ss:$8 sps:$4 sm:$0xff]  }
  0x28   :  { %1836 = vmatpush1.bf16.msra.mxu0 %v2753_v42  ;;  %1714 = vmatprep.subr.bf16.mxu1 %v2754_v43  ;;  %v2824_v42 = vld [vmem:[%s4109_s1 + $0x450] ss:$8 sps:$4 sm:$0xff]   ;;  %v2829_v43 = vld [vmem:[%s4109_s1 + $0x164] ss:$8 sps:$4 sm:$0xff]  }
  0x29   :  { %1837 = vmatprep.subr.bf16.mxu0 %v2756_v44  ;;  %v2832_v44 = vld [vmem:[%s4109_s1 + $0x464] ss:$8 sps:$4 sm:$0xff]  }
  0x2b   :  { %1715 = vmatpush1.bf16.msra.mxu1 %v2758_v47  ;;  %v2827_v47 = vld [vmem:[%s4109_s1 + $0x160] ss:$8 sps:$4 sm:$0xff]  }
  0x2c   :  { %1838 = vmatpush1.bf16.msra.mxu0 %v2759_v48  ;;  %1716 = vmatprep.subr.bf16.mxu1 %v2760_v49  ;;  %v2830_v48 = vld [vmem:[%s4109_s1 + $0x460] ss:$8 sps:$4 sm:$0xff]   ;;  %v3480_v49 = vrot.slane %v3470_v46, %v3313_v51 }
  0x2d   :  { %1839 = vmatprep.subr.bf16.mxu0 %v2762_v50  ;;  %v2835_v50 = vld [vmem:[%s4109_s1 + $0x174] ss:$8 sps:$4 sm:$0xff]  }
  0x2f   :  { %1717 = vmatpush1.bf16.msra.mxu1 %v2764_v53  ;;  %v364_v53 = vcombine.high %v3480_v49, %v3480_v49 }
  0x30   :  { %1840 = vmatpush1.bf16.msra.mxu0 %v2765_v56  ;;  %1718 = vmatprep.subr.bf16.mxu1 %v2766_v57  ;;  %v2841_v57 = vld [vmem:[%s4109_s1 + $0x184] ss:$8 sps:$4 sm:$0xff]  }
  0x31   :  { %1841 = vmatprep.subr.bf16.mxu0 %v2768_v58  ;;  %v3497_v56 = vrot.slane %v364_v53, %v3313_v51  ;;  %v2844_v58 = vld [vmem:[%s4109_s1 + $0x484] ss:$8 sps:$4 sm:$0xff]   ;;  %v2922_v53 = vld [vmem:[%s4109_s1 + $0x554] ss:$8 sps:$4 sm:$0xff]  }
  0x33   :  { %1719 = vmatpush1.bf16.msra.mxu1 %v2770_v61  ;;  %v2847_v61 = vld [vmem:[%s4109_s1 + $0x194] ss:$8 sps:$4 sm:$0xff]  }
  0x34   :  { %1842 = vmatpush1.bf16.msra.mxu0 %v2771_v0  ;;  %1720 = vmatprep.subr.bf16.mxu1 %v2772_v1  ;;  %v2848_v0 = vld [vmem:[%s4109_s1 + $0x490] ss:$8 sps:$4 sm:$0xff]   ;;  %v2853_v1 = vld [vmem:[%s4109_s1 + $0x1a4] ss:$8 sps:$4 sm:$0xff]  }
  0x35   :  { %1843 = vmatprep.subr.bf16.mxu0 %v2774_v2  ;;  %v2856_v2 = vld [vmem:[%s4109_s1 + $0x4a4] ss:$8 sps:$4 sm:$0xff]  }
  0x37   :  { %1721 = vmatpush1.bf16.msra.mxu1 %v2776_v4  ;;  %v2851_v4 = vld [vmem:[%s4109_s1 + $0x1a0] ss:$8 sps:$4 sm:$0xff]  }
  0x38   :  { %1844 = vmatpush1.bf16.msra.mxu0 %v2777_v6  ;;  %1722 = vmatprep.subr.bf16.mxu1 %v2778_v7  ;;  %v2859_v6 = vld [vmem:[%s4109_s1 + $0x1b4] ss:$8 sps:$4 sm:$0xff]  }
  0x39   :  { %1845 = vmatprep.subr.bf16.mxu0 %v2780_v8  ;;  %v2862_v7 = vld [vmem:[%s4109_s1 + $0x4b4] ss:$8 sps:$4 sm:$0xff]   ;;  %v2857_v8 = vld [vmem:[%s4109_s1 + $0x1b0] ss:$8 sps:$4 sm:$0xff]  }
  0x3b   :  { %1723 = vmatpush1.bf16.msra.mxu1 %v2782_v9  ;;  %v2860_v9 = vld [vmem:[%s4109_s1 + $0x4b0] ss:$8 sps:$4 sm:$0xff]  }
  0x3c   :  { %1846 = vmatpush1.bf16.msra.mxu0 %v2783_v10  ;;  %1724 = vmatprep.subr.bf16.mxu1 %v2784_v11  ;;  %v2865_v10 = vld [vmem:[%s4109_s1 + $0x1c4] ss:$8 sps:$4 sm:$0xff]  }
  0x3d   :  { %1847 = vmatprep.subr.bf16.mxu0 %v2786_v12  ;;  %v2868_v11 = vld [vmem:[%s4109_s1 + $0x4c4] ss:$8 sps:$4 sm:$0xff]   ;;  %v2863_v12 = vld [vmem:[%s4109_s1 + $0x1c0] ss:$8 sps:$4 sm:$0xff]  }
  0x3f   :  { %1725 = vmatpush1.bf16.msra.mxu1 %v2788_v13  ;;  %v2866_v13 = vld [vmem:[%s4109_s1 + $0x4c0] ss:$8 sps:$4 sm:$0xff]  }
  0x40   :  { %1848 = vmatpush1.bf16.msra.mxu0 %v2789_v15  ;;  %1735 = vmatprep.subr.bf16.mxu1 %v2793_v16  ;;  %v2871_v15 = vld [vmem:[%s4109_s1 + $0x1d4] ss:$8 sps:$4 sm:$0xff]  }
  0x41   :  { %1858 = vmatprep.subr.bf16.mxu0 %v2796_v17  ;;  %v2874_v16 = vld [vmem:[%s4109_s1 + $0x4d4] ss:$8 sps:$4 sm:$0xff]   ;;  %v2869_v17 = vld [vmem:[%s4109_s1 + $0x1d0] ss:$8 sps:$4 sm:$0xff]  }
  0x42   :  { %1727 = vmatmul.mubr.bf16.vlgmr.msra.gmra.mrb[0].mxu1 %v3393_v19 }
  0x43   :  { %1850 = vmatmul.mubr.bf16.vlgmr.msra.gmra.mrb[0].mxu0 %v346_v20  ;;  %1736 = vmatpush1.bf16.msra.mxu1 %v2791_v18  ;;  %v2872_v18 = vld [vmem:[%s4109_s1 + $0x4d0] ss:$8 sps:$4 sm:$0xff]   ;;  %v2877_v20 = vld [vmem:[%s4109_s1 + $0x1e4] ss:$8 sps:$4 sm:$0xff]  }
  0x44   :  { %1859 = vmatpush1.bf16.msra.mxu0 %v2794_v21  ;;  %1737 = vmatprep.subr.bf16.mxu1 %v2799_v22  ;;  %v2880_v21 = vld [vmem:[%s4109_s1 + $0x4e4] ss:$8 sps:$4 sm:$0xff]   ;;  %v2875_v22 = vld [vmem:[%s4109_s1 + $0x1e0] ss:$8 sps:$4 sm:$0xff]  }
  0x45   :  { %1860 = vmatprep.subr.bf16.mxu0 %v2802_v23  ;;  %1767 = vmatprep.mubr.bf16.mxu1 %v347_v24  ;;  %v2878_v23 = vld [vmem:[%s4109_s1 + $0x4e0] ss:$8 sps:$4 sm:$0xff]   ;;  %v2883_v24 = vld [vmem:[%s4109_s1 + $0x1f4] ss:$8 sps:$4 sm:$0xff]  }
  0x46   :  { %1890 = vmatprep.mubr.bf16.mxu0 %v3497_v56 }
  0x47   :  { %1738 = vmatpush1.bf16.msra.mxu1 %v2797_v25  ;;  %v2886_v25 = vld [vmem:[%s4109_s1 + $0x4f4] ss:$8 sps:$4 sm:$0xff]  }
  0x48   :  { %1861 = vmatpush1.bf16.msra.mxu0 %v2800_v26  ;;  %1739 = vmatprep.subr.bf16.mxu1 %v2805_v27  ;;  %v2881_v26 = vld [vmem:[%s4109_s1 + $0x1f0] ss:$8 sps:$4 sm:$0xff]  }
  0x49   :  { %1862 = vmatprep.subr.bf16.mxu0 %v2808_v28  ;;  %v2884_v27 = vld [vmem:[%s4109_s1 + $0x4f0] ss:$8 sps:$4 sm:$0xff]   ;;  %v2889_v28 = vld [vmem:[%s4109_s1 + $0x204] ss:$8 sps:$4 sm:$0xff]  }
  0x4b   :  { %1740 = vmatpush1.bf16.msra.mxu1 %v2803_v29  ;;  %v2892_v29 = vld [vmem:[%s4109_s1 + $0x504] ss:$8 sps:$4 sm:$0xff]  }
  0x4c   :  { %1863 = vmatpush1.bf16.msra.mxu0 %v2806_v30  ;;  %1741 = vmatprep.subr.bf16.mxu1 %v2811_v31  ;;  %v345_v30 = vcombine.high %v3393_v19, %v3393_v19  ;;  %v3606_v31 = vrot.slane %v3480_v49, %v3313_v51  ;;  %v2895_v19 = vld [vmem:[%s4109_s1 + $0x214] ss:$8 sps:$4 sm:$0xff]   ;;  %v2911_v49 = vld [vmem:[%s4109_s1 + $0x240] ss:$8 sps:$4 sm:$0xff]  }
  0x4d   :  { %1864 = vmatprep.subr.bf16.mxu0 %v2814_v32  ;;  %v2887_v32 = vld [vmem:[%s4109_s1 + $0x200] ss:$8 sps:$4 sm:$0xff]  }
  0x4f   :  { %1742 = vmatpush1.bf16.msra.mxu1 %v2809_v33  ;;  %v2890_v33 = vld [vmem:[%s4109_s1 + $0x500] ss:$8 sps:$4 sm:$0xff]  }
  0x50   :  { %1865 = vmatpush1.bf16.msra.mxu0 %v2812_v34  ;;  %1743 = vmatprep.subr.bf16.mxu1 %v2817_v35  ;;  %v2898_v34 = vld [vmem:[%s4109_s1 + $0x514] ss:$8 sps:$4 sm:$0xff]   ;;  %v396_v35 = vcombine.high %v3497_v56, %v3497_v56  ;;  %v2925_v56 = vld [vmem:[%s4109_s1 + $0x264] ss:$8 sps:$4 sm:$0xff]  }
  0x51   :  { %1866 = vmatprep.subr.bf16.mxu0 %v2820_v36  ;;  %v2893_v36 = vld [vmem:[%s4109_s1 + $0x210] ss:$8 sps:$4 sm:$0xff]  }
  0x53   :  { %1744 = vmatpush1.bf16.msra.mxu1 %v2815_v37  ;;  %v2896_v37 = vld [vmem:[%s4109_s1 + $0x510] ss:$8 sps:$4 sm:$0xff]  }
  0x54   :  { %1867 = vmatpush1.bf16.msra.mxu0 %v2818_v38  ;;  %1745 = vmatprep.subr.bf16.mxu1 %v2823_v39  ;;  %v2901_v38 = vld [vmem:[%s4109_s1 + $0x224] ss:$8 sps:$4 sm:$0xff]  }
  0x55   :  { %1868 = vmatprep.subr.bf16.mxu0 %v2826_v40  ;;  %v2904_v39 = vld [vmem:[%s4109_s1 + $0x524] ss:$8 sps:$4 sm:$0xff]   ;;  %v2899_v40 = vld [vmem:[%s4109_s1 + $0x220] ss:$8 sps:$4 sm:$0xff]  }
  0x57   :  { %1746 = vmatpush1.bf16.msra.mxu1 %v2821_v41  ;;  %v2902_v41 = vld [vmem:[%s4109_s1 + $0x520] ss:$8 sps:$4 sm:$0xff]  }
  0x58   :  { %1869 = vmatpush1.bf16.msra.mxu0 %v2824_v42  ;;  %1747 = vmatprep.subr.bf16.mxu1 %v2829_v43  ;;  %v2907_v42 = vld [vmem:[%s4109_s1 + $0x234] ss:$8 sps:$4 sm:$0xff]   ;;  %v2905_v43 = vld [vmem:[%s4109_s1 + $0x230] ss:$8 sps:$4 sm:$0xff]  }
  0x59   :  { %1870 = vmatprep.subr.bf16.mxu0 %v2832_v44  ;;  %v2908_v44 = vld [vmem:[%s4109_s1 + $0x530] ss:$8 sps:$4 sm:$0xff]  }
  0x5b   :  { %1748 = vmatpush1.bf16.msra.mxu1 %v2827_v47  ;;  %v2913_v47 = vld [vmem:[%s4109_s1 + $0x244] ss:$8 sps:$4 sm:$0xff]  }
  0x5c   :  { %1871 = vmatpush1.bf16.msra.mxu0 %v2830_v48  ;;  %1749 = vmatprep.subr.bf16.mxu1 %v2835_v50  ;;  %v2916_v48 = vld [vmem:[%s4109_s1 + $0x544] ss:$8 sps:$4 sm:$0xff]   ;;  %v2914_v50 = vld [vmem:[%s4109_s1 + $0x540] ss:$8 sps:$4 sm:$0xff]  }
  0x5d   :  { %1872 = vmatprep.subr.bf16.mxu0 %v2838_v52  ;;  %v2919_v52 = vld [vmem:[%s4109_s1 + $0x254] ss:$8 sps:$4 sm:$0xff]  }
  0x5f   :  { %1750 = vmatpush1.bf16.msra.mxu1 %v2833_v54  ;;  %v2917_v54 = vld [vmem:[%s4109_s1 + $0x250] ss:$8 sps:$4 sm:$0xff]  }
  0x60   :  { %1873 = vmatpush1.bf16.msra.mxu0 %v2836_v55  ;;  %1751 = vmatprep.subr.bf16.mxu1 %v2841_v57  ;;  %v2920_v55 = vld [vmem:[%s4109_s1 + $0x550] ss:$8 sps:$4 sm:$0xff]   ;;  %v2928_v57 = vld [vmem:[%s4109_s1 + $0x564] ss:$8 sps:$4 sm:$0xff]  }
  0x61   :  { %1874 = vmatprep.subr.bf16.mxu0 %v2844_v58  ;;  %v2923_v58 = vld [vmem:[%s4109_s1 + $0x260] ss:$8 sps:$4 sm:$0xff]  }
  0x63   :  { %1752 = vmatpush1.bf16.msra.mxu1 %v2839_v59  ;;  %v2926_v59 = vld [vmem:[%s4109_s1 + $0x560] ss:$8 sps:$4 sm:$0xff]  }
  0x64   :  { %1875 = vmatpush1.bf16.msra.mxu0 %v2842_v60  ;;  %1753 = vmatprep.subr.bf16.mxu1 %v2847_v61  ;;  %v2931_v60 = vld [vmem:[%s4109_s1 + $0x274] ss:$8 sps:$4 sm:$0xff]  }
  0x65   :  { %1876 = vmatprep.subr.bf16.mxu0 %v2850_v62  ;;  %v2934_v61 = vld [vmem:[%s4109_s1 + $0x574] ss:$8 sps:$4 sm:$0xff]   ;;  %v2929_v62 = vld [vmem:[%s4109_s1 + $0x270] ss:$8 sps:$4 sm:$0xff]  }
  0x67   :  { %1754 = vmatpush1.bf16.msra.mxu1 %v2845_v63  ;;  %v2932_v63 = vld [vmem:[%s4109_s1 + $0x570] ss:$8 sps:$4 sm:$0xff]  }
  0x68   :  { %1877 = vmatpush1.bf16.msra.mxu0 %v2848_v0  ;;  %1755 = vmatprep.subr.bf16.mxu1 %v2853_v1  ;;  %v2937_v0 = vld [vmem:[%s4109_s1 + $0x284] ss:$8 sps:$4 sm:$0xff]  }
  0x69   :  { %1878 = vmatprep.subr.bf16.mxu0 %v2856_v2  ;;  %v2940_v1 = vld [vmem:[%s4109_s1 + $0x584] ss:$8 sps:$4 sm:$0xff]   ;;  %v2935_v2 = vld [vmem:[%s4109_s1 + $0x280] ss:$8 sps:$4 sm:$0xff]  }
  0x6b   :  { %1756 = vmatpush1.bf16.msra.mxu1 %v2851_v4  ;;  %v2938_v4 = vld [vmem:[%s4109_s1 + $0x580] ss:$8 sps:$4 sm:$0xff]  }
  0x6c   :  { %1879 = vmatpush1.bf16.msra.mxu0 %v2854_v5  ;;  %1757 = vmatprep.subr.bf16.mxu1 %v2859_v6  ;;  %v2943_v5 = vld [vmem:[%s4109_s1 + $0x294] ss:$8 sps:$4 sm:$0xff]  }
  0x6d   :  { %1880 = vmatprep.subr.bf16.mxu0 %v2862_v7  ;;  %v2946_v6 = vld [vmem:[%s4109_s1 + $0x594] ss:$8 sps:$4 sm:$0xff]   ;;  %v2941_v7 = vld [vmem:[%s4109_s1 + $0x290] ss:$8 sps:$4 sm:$0xff]  }
  0x6f   :  { %1758 = vmatpush1.bf16.msra.mxu1 %v2857_v8  ;;  %v2944_v8 = vld [vmem:[%s4109_s1 + $0x590] ss:$8 sps:$4 sm:$0xff]  }
  0x70   :  { %1881 = vmatpush1.bf16.msra.mxu0 %v2860_v9  ;;  %1759 = vmatprep.subr.bf16.mxu1 %v2865_v10  ;;  %v2949_v9 = vld [vmem:[%s4109_s1 + $0x2a4] ss:$8 sps:$4 sm:$0xff]  }
  0x71   :  { %1882 = vmatprep.subr.bf16.mxu0 %v2868_v11  ;;  %v2952_v10 = vld [vmem:[%s4109_s1 + $0x5a4] ss:$8 sps:$4 sm:$0xff]   ;;  %v2947_v11 = vld [vmem:[%s4109_s1 + $0x2a0] ss:$8 sps:$4 sm:$0xff]  }
  0x73   :  { %1760 = vmatpush1.bf16.msra.mxu1 %v2863_v12  ;;  %v2950_v12 = vld [vmem:[%s4109_s1 + $0x5a0] ss:$8 sps:$4 sm:$0xff]  }
  0x74   :  { %1883 = vmatpush1.bf16.msra.mxu0 %v2866_v13  ;;  %1761 = vmatprep.subr.bf16.mxu1 %v2871_v15  ;;  %v2955_v13 = vld [vmem:[%s4109_s1 + $0x2b4] ss:$8 sps:$4 sm:$0xff]  }
  0x75   :  { %1884 = vmatprep.subr.bf16.mxu0 %v2874_v16  ;;  %v2958_v15 = vld [vmem:[%s4109_s1 + $0x5b4] ss:$8 sps:$4 sm:$0xff]   ;;  %v2953_v16 = vld [vmem:[%s4109_s1 + $0x2b0] ss:$8 sps:$4 sm:$0xff]  }
  0x77   :  { %1762 = vmatpush1.bf16.msra.mxu1 %v2869_v17  ;;  %v2956_v17 = vld [vmem:[%s4109_s1 + $0x5b0] ss:$8 sps:$4 sm:$0xff]  }
  0x78   :  { %1885 = vmatpush1.bf16.msra.mxu0 %v2872_v18  ;;  %1763 = vmatprep.subr.bf16.mxu1 %v2877_v20  ;;  %v2961_v18 = vld [vmem:[%s4109_s1 + $0x2c4] ss:$8 sps:$4 sm:$0xff]  }
  0x79   :  { %1886 = vmatprep.subr.bf16.mxu0 %v2880_v21  ;;  %v2964_v20 = vld [vmem:[%s4109_s1 + $0x5c4] ss:$8 sps:$4 sm:$0xff]   ;;  %v2959_v21 = vld [vmem:[%s4109_s1 + $0x2c0] ss:$8 sps:$4 sm:$0xff]  }
  0x7b   :  { %1764 = vmatpush1.bf16.msra.mxu1 %v2875_v22  ;;  %v2962_v22 = vld [vmem:[%s4109_s1 + $0x5c0] ss:$8 sps:$4 sm:$0xff]  }
  0x7c   :  { %1887 = vmatpush1.bf16.msra.mxu0 %v2878_v23  ;;  %1765 = vmatprep.subr.bf16.mxu1 %v2883_v24  ;;  %v2967_v23 = vld [vmem:[%s4109_s1 + $0x2d4] ss:$8 sps:$4 sm:$0xff]  }
  0x7d   :  { %1888 = vmatprep.subr.bf16.mxu0 %v2886_v25  ;;  %v2970_v24 = vld [vmem:[%s4109_s1 + $0x5d4] ss:$8 sps:$4 sm:$0xff]   ;;  %v2965_v25 = vld [vmem:[%s4109_s1 + $0x2d0] ss:$8 sps:$4 sm:$0xff]  }
  0x7f   :  { %1766 = vmatpush1.bf16.msra.mxu1 %v2881_v26  ;;  %v2968_v26 = vld [vmem:[%s4109_s1 + $0x5d0] ss:$8 sps:$4 sm:$0xff]  }
  0x80   :  { %1889 = vmatpush1.bf16.msra.mxu0 %v2884_v27  ;;  %1776 = vmatprep.subr.bf16.mxu1 %v2889_v28  ;;  %v2973_v27 = vld [vmem:[%s4109_s1 + $0x2e4] ss:$8 sps:$4 sm:$0xff]  }
  0x81   :  { %1899 = vmatprep.subr.bf16.mxu0 %v2892_v29  ;;  %v2976_v28 = vld [vmem:[%s4109_s1 + $0x5e4] ss:$8 sps:$4 sm:$0xff]   ;;  %v349_v29 = vcombine.high %v3470_v46, %v3470_v46  ;;  %v2982_v46 = vld [vmem:[%s4109_s1 + $0x5f4] ss:$8 sps:$4 sm:$0xff]  }
  0x82   :  { %1768 = vmatmul.mubr.bf16.vlgmr.msra.gmra.mrb[0].mxu1 %v345_v30  ;;  %v2971_v30 = vld [vmem:[%s4109_s1 + $0x2e0] ss:$8 sps:$4 sm:$0xff]  }
  0x83   :  { %1891 = vmatmul.mubr.bf16.vlgmr.msra.gmra.mrb[0].mxu0 %v3606_v31  ;;  %1777 = vmatpush1.bf16.msra.mxu1 %v2887_v32  ;;  %v2974_v32 = vld [vmem:[%s4109_s1 + $0x5e0] ss:$8 sps:$4 sm:$0xff]  }
  0x84   :  { %1900 = vmatpush1.bf16.msra.mxu0 %v2890_v33  ;;  %1778 = vmatprep.subr.bf16.mxu1 %v2895_v19  ;;  %v2979_v33 = vld [vmem:[%s4109_s1 + $0x2f4] ss:$8 sps:$4 sm:$0xff]   ;;  %v3795_v19 = vrot.slane %v349_v29, %v3313_v51 }
  0x85   :  { %1901 = vmatprep.subr.bf16.mxu0 %v2898_v34  ;;  %1808 = vmatprep.mubr.bf16.mxu1 %v3346_v3  ;;  %v2910_v3 = vld [vmem:[%s4109_s1 + $0x534] ss:$8 sps:$4 sm:$0xff]  }
  0x86   :  { %1931 = vmatprep.mubr.bf16.mxu0 %v396_v35 }
  0x87   :  { %1779 = vmatpush1.bf16.msra.mxu1 %v2893_v36 }
  0x88   :  { %1902 = vmatpush1.bf16.msra.mxu0 %v2896_v37  ;;  %1780 = vmatprep.subr.bf16.mxu1 %v2901_v38 }
  0x89   :  { %1903 = vmatprep.subr.bf16.mxu0 %v2904_v39 }
  0x8b   :  { %1781 = vmatpush1.bf16.msra.mxu1 %v2899_v40 }
  0x8c   :  { %1904 = vmatpush1.bf16.msra.mxu0 %v2902_v41  ;;  %1782 = vmatprep.subr.bf16.mxu1 %v2907_v42 }
  0x8d   :  { %1905 = vmatprep.subr.bf16.mxu0 %v2910_v3 }
  0x8f   :  { %1783 = vmatpush1.bf16.msra.mxu1 %v2905_v43 }
  0x90   :  { %1906 = vmatpush1.bf16.msra.mxu0 %v2908_v44  ;;  %1784 = vmatprep.subr.bf16.mxu1 %v2913_v47 }
  0x91   :  { %1907 = vmatprep.subr.bf16.mxu0 %v2916_v48 }
  0x93   :  { %1785 = vmatpush1.bf16.msra.mxu1 %v2911_v49 }
  0x94   :  { %1908 = vmatpush1.bf16.msra.mxu0 %v2914_v50  ;;  %1786 = vmatprep.subr.bf16.mxu1 %v2919_v52 }
  0x95   :  { %1909 = vmatprep.subr.bf16.mxu0 %v2922_v53 }
  0x97   :  { %1787 = vmatpush1.bf16.msra.mxu1 %v2917_v54 }
  0x98   :  { %1910 = vmatpush1.bf16.msra.mxu0 %v2920_v55  ;;  %1788 = vmatprep.subr.bf16.mxu1 %v2925_v56 }
  0x99   :  { %1911 = vmatprep.subr.bf16.mxu0 %v2928_v57 }
  0x9b   :  { %1789 = vmatpush1.bf16.msra.mxu1 %v2923_v58 }
  0x9c   :  { %1912 = vmatpush1.bf16.msra.mxu0 %v2926_v59  ;;  %1790 = vmatprep.subr.bf16.mxu1 %v2931_v60 }
  0x9d   :  { %1913 = vmatprep.subr.bf16.mxu0 %v2934_v61 }
  0x9f   :  { %1791 = vmatpush1.bf16.msra.mxu1 %v2929_v62 }
  0xa0   :  { %1914 = vmatpush1.bf16.msra.mxu0 %v2932_v63  ;;  %1792 = vmatprep.subr.bf16.mxu1 %v2937_v0 }
  0xa1   :  { %1915 = vmatprep.subr.bf16.mxu0 %v2940_v1 }
  0xa3   :  { %1793 = vmatpush1.bf16.msra.mxu1 %v2935_v2 }
  0xa4   :  { %1916 = vmatpush1.bf16.msra.mxu0 %v2938_v4  ;;  %1794 = vmatprep.subr.bf16.mxu1 %v2943_v5 }
  0xa5   :  { %1917 = vmatprep.subr.bf16.mxu0 %v2946_v6 }
  0xa7   :  { %1795 = vmatpush1.bf16.msra.mxu1 %v2941_v7 }
  0xa8   :  { %1918 = vmatpush1.bf16.msra.mxu0 %v2944_v8  ;;  %1796 = vmatprep.subr.bf16.mxu1 %v2949_v9 }
  0xa9   :  { %1919 = vmatprep.subr.bf16.mxu0 %v2952_v10 }
  0xab   :  { %1797 = vmatpush1.bf16.msra.mxu1 %v2947_v11 }
  0xac   :  { %1920 = vmatpush1.bf16.msra.mxu0 %v2950_v12  ;;  %1798 = vmatprep.subr.bf16.mxu1 %v2955_v13 }
  0xad   :  { %1921 = vmatprep.subr.bf16.mxu0 %v2958_v15 }
  0xaf   :  { %1799 = vmatpush1.bf16.msra.mxu1 %v2953_v16 }
  0xb0   :  { %1922 = vmatpush1.bf16.msra.mxu0 %v2956_v17  ;;  %1800 = vmatprep.subr.bf16.mxu1 %v2961_v18 }
  0xb1   :  { %1923 = vmatprep.subr.bf16.mxu0 %v2964_v20 }
  0xb3   :  { %1801 = vmatpush1.bf16.msra.mxu1 %v2959_v21 }
  0xb4   :  { %1924 = vmatpush1.bf16.msra.mxu0 %v2962_v22  ;;  %1802 = vmatprep.subr.bf16.mxu1 %v2967_v23 }
  0xb5   :  { %1925 = vmatprep.subr.bf16.mxu0 %v2970_v24 }
  0xb7   :  { %1803 = vmatpush1.bf16.msra.mxu1 %v2965_v25 }
  0xb8   :  { %1926 = vmatpush1.bf16.msra.mxu0 %v2968_v26  ;;  %1804 = vmatprep.subr.bf16.mxu1 %v2973_v27 }
  0xb9   :  { %1927 = vmatprep.subr.bf16.mxu0 %v2976_v28 }
  0xba   :  { %12 = vsyncpa [#allocation3], 0  ;;  %v2977_v34 = vld [vmem:[%s4109_s1 + $0x2f0] ss:$8 sps:$4 sm:$0xff]   ;;  %v365_v36 = vcombine.high %v3795_v19, %v3795_v19  ;;  %v2985_v37 = vld [vmem:[%s4109_s1 + $0x604] ss:$8 sps:$4 sm:$0xff]   ;;  %v394_v38 = vcombine.high %v3606_v31, %v3606_v31  ;;  %v3913_v9 = vrot.slane %v3795_v19, %v3313_v51 }
  0xbb   :  { %1805 = vmatpush1.bf16.msra.mxu1 %v2971_v30  ;;  %v2980_v35 = vld [vmem:[%s4109_s1 + $0x5f0] ss:$8 sps:$4 sm:$0xff]   ;;  %v2983_v39 = vld [vmem:[%s4109_s1 + $0x600] ss:$8 sps:$4 sm:$0xff]   ;;  %v2988_v41 = vld [vmem:[%s4109_s1 + $0x614] ss:$8 sps:$4 sm:$0xff]  }
  0xbc   :  { %1928 = vmatpush1.bf16.msra.mxu0 %v2974_v32  ;;  %1806 = vmatprep.subr.bf16.mxu1 %v2979_v33  ;;  %v3814_v40 = vrot.slane %v365_v36, %v3313_v51  ;;  %v2986_v31 = vld [vmem:[%s4109_s1 + $0x610] ss:$8 sps:$4 sm:$0xff]   ;;  %v2991_v42 = vld [vmem:[%s4109_s1 + $0x624] ss:$8 sps:$4 sm:$0xff]   ;;  %v2989_v3 = vld [vmem:[%s4109_s1 + $0x620] ss:$8 sps:$4 sm:$0xff]  }
  0xbd   :  { %1929 = vmatprep.subr.bf16.mxu0 %v2982_v46  ;;  %v2992_v43 = vld [vmem:[%s4109_s1 + $0x630] ss:$8 sps:$4 sm:$0xff]   ;;  %v2997_v44 = vld [vmem:[%s4109_s1 + $0x644] ss:$8 sps:$4 sm:$0xff]   ;;  %v2995_v47 = vld [vmem:[%s4109_s1 + $0x640] ss:$8 sps:$4 sm:$0xff]  }
  0xbe   :  { %v3000_v48 = vld [vmem:[%s4109_s1 + $0x654] ss:$8 sps:$4 sm:$0xff]   ;;  %v2998_v49 = vld [vmem:[%s4109_s1 + $0x650] ss:$8 sps:$4 sm:$0xff]   ;;  %v3003_v50 = vld [vmem:[%s4109_s1 + $0x664] ss:$8 sps:$4 sm:$0xff]   ;;  %v397_v11 = vcombine.high %v3814_v40, %v3814_v40 }
  0xbf   :  { %1807 = vmatpush1.bf16.msra.mxu1 %v2977_v34  ;;  %v3001_v52 = vld [vmem:[%s4109_s1 + $0x660] ss:$8 sps:$4 sm:$0xff]   ;;  %v3006_v53 = vld [vmem:[%s4109_s1 + $0x674] ss:$8 sps:$4 sm:$0xff]   ;;  %v3004_v54 = vld [vmem:[%s4109_s1 + $0x670] ss:$8 sps:$4 sm:$0xff]  }
  0xc0   :  { %1930 = vmatpush1.bf16.msra.mxu0 %v2980_v35  ;;  %v3009_v55 = vld [vmem:[%s4109_s1 + $0x684] ss:$8 sps:$4 sm:$0xff]   ;;  %v3007_v56 = vld [vmem:[%s4109_s1 + $0x680] ss:$8 sps:$4 sm:$0xff]   ;;  %v3012_v57 = vld [vmem:[%s4109_s1 + $0x694] ss:$8 sps:$4 sm:$0xff]  }
  0xc1   :  { %1940 = vmatprep.subr.bf16.mxu0 %v2985_v37  ;;  %v3010_v58 = vld [vmem:[%s4109_s1 + $0x690] ss:$8 sps:$4 sm:$0xff]   ;;  %v3015_v59 = vld [vmem:[%s4109_s1 + $0x6a4] ss:$8 sps:$4 sm:$0xff]   ;;  %v3013_v60 = vld [vmem:[%s4109_s1 + $0x6a0] ss:$8 sps:$4 sm:$0xff]  }
  0xc2   :  { %1809 = vmatmul.mubr.bf16.vlgmr.msra.gmra.mrb[0].mxu1 %v3378_v14  ;;  %v2994_v14 = vld [vmem:[%s4109_s1 + $0x634] ss:$8 sps:$4 sm:$0xff]   ;;  %v3016_v62 = vld [vmem:[%s4109_s1 + $0x6b0] ss:$8 sps:$4 sm:$0xff]   ;;  %v3021_v63 = vld [vmem:[%s4109_s1 + $0x6c4] ss:$8 sps:$4 sm:$0xff]  }
  0xc3   :  { %1932 = vmatmul.mubr.bf16.vlgmr.msra.gmra.mrb[0].mxu0 %v394_v38  ;;  %v3018_v61 = vld [vmem:[%s4109_s1 + $0x6b4] ss:$8 sps:$4 sm:$0xff]   ;;  %v3019_v0 = vld [vmem:[%s4109_s1 + $0x6c0] ss:$8 sps:$4 sm:$0xff]   ;;  %v3022_v2 = vld [vmem:[%s4109_s1 + $0x6d0] ss:$8 sps:$4 sm:$0xff]  }
  0xc4   :  { %1941 = vmatpush1.bf16.msra.mxu0 %v2983_v39  ;;  %1972 = vmatprep.mubr.bf16.mxu0 %v3814_v40  ;;  %v3024_v1 = vld [vmem:[%s4109_s1 + $0x6d4] ss:$8 sps:$4 sm:$0xff]   ;;  %v3027_v4 = vld [vmem:[%s4109_s1 + $0x6e4] ss:$8 sps:$4 sm:$0xff]   ;;  %v3025_v5 = vld [vmem:[%s4109_s1 + $0x6e0] ss:$8 sps:$4 sm:$0xff]  }
  0xc5   :  { %1942 = vmatprep.subr.bf16.mxu0 %v2988_v41  ;;  %v3030_v6 = vld [vmem:[%s4109_s1 + $0x6f4] ss:$8 sps:$4 sm:$0xff]   ;;  %v3028_v7 = vld [vmem:[%s4109_s1 + $0x6f0] ss:$8 sps:$4 sm:$0xff]   ;;  %v3034_v8 = vld [vmem:[%s4109_s1 + $0x704] ss:$8 sps:$4 sm:$0xff]  }
  0xc6   :  { %v3032_v10 = vld [vmem:[%s4109_s1 + $0x700] ss:$8 sps:$4 sm:$0xff]   ;;  %v3037_v12 = vld [vmem:[%s4109_s1 + $0x714] ss:$8 sps:$4 sm:$0xff]   ;;  %v3035_v51 = vld [vmem:[%s4109_s1 + $0x710] ss:$8 sps:$4 sm:$0xff]  }
  0xc7   :  { %v3040_v13 = vld [vmem:[%s4109_s1 + $0x724] ss:$8 sps:$4 sm:$0xff]   ;;  %v3038_v15 = vld [vmem:[%s4109_s1 + $0x720] ss:$8 sps:$4 sm:$0xff]   ;;  %v3043_v16 = vld [vmem:[%s4109_s1 + $0x734] ss:$8 sps:$4 sm:$0xff]  }
  0xc8   :  { %1943 = vmatpush1.bf16.msra.mxu0 %v2986_v31  ;;  %v3041_v17 = vld [vmem:[%s4109_s1 + $0x730] ss:$8 sps:$4 sm:$0xff]   ;;  %v3046_v18 = vld [vmem:[%s4109_s1 + $0x744] ss:$8 sps:$4 sm:$0xff]   ;;  %v3044_v20 = vld [vmem:[%s4109_s1 + $0x740] ss:$8 sps:$4 sm:$0xff]  }
  0xc9   :  { %1944 = vmatprep.subr.bf16.mxu0 %v2991_v42  ;;  %v3049_v21 = vld [vmem:[%s4109_s1 + $0x754] ss:$8 sps:$4 sm:$0xff]   ;;  %v3047_v22 = vld [vmem:[%s4109_s1 + $0x750] ss:$8 sps:$4 sm:$0xff]   ;;  %v3052_v23 = vld [vmem:[%s4109_s1 + $0x764] ss:$8 sps:$4 sm:$0xff]  }
  0xca   :  { %v3050_v24 = vld [vmem:[%s4109_s1 + $0x760] ss:$8 sps:$4 sm:$0xff]   ;;  %v3055_v25 = vld [vmem:[%s4109_s1 + $0x774] ss:$8 sps:$4 sm:$0xff]   ;;  %v3053_v29 = vld [vmem:[%s4109_s1 + $0x770] ss:$8 sps:$4 sm:$0xff]  }
  0xcb   :  { %v3080_v26 = vld [vmem:[%s4111_s3 + $0x40] sm:$0xff]   ;;  %v3082_v28 = vld [vmem:[%s4111_s3 + $0x48] sm:$0xff]   ;;  %v3084_v33 = vld [vmem:[%s4111_s3 + $0x50] sm:$0xff]   ;;  %vm3130_vm0 = vmmov 0  }
  0xcc   :  { %1945 = vmatpush1.bf16.msra.mxu0 %v2989_v3  ;;  %v3081_v27 = vld [vmem:[%s4111_s3] sm:$0xff]   ;;  %2611 = vmatprep.subr.bf16.mxu1 %v3080_v26  ;;  %v3083_v30 = vld [vmem:[%s4111_s3 + $0x8] sm:$0xff]   ;;  %v3085_v19 = vld [vmem:[%s4111_s3 + $0x10] sm:$0xff]  }
  0xcd   :  { %1946 = vmatprep.subr.bf16.mxu0 %v2994_v14  ;;  %2612 = vmatpush3.bf16.msra.mxu1 %v3081_v27  ;;  %v3058_v32 = vld [vmem:[%s4109_s1 + $0x784] ss:$8 sps:$4 sm:$0xff]   ;;  %v3056_v46 = vld [vmem:[%s4109_s1 + $0x780] ss:$8 sps:$4 sm:$0xff]   ;;  %v3061_v34 = vld [vmem:[%s4109_s1 + $0x794] ss:$8 sps:$4 sm:$0xff]  }
  0xce   :  { %2613 = vmatprep.subr.bf16.mxu1 %v3082_v28  ;;  %v3086_v35 = vld [vmem:[%s4111_s3 + $0x58] sm:$0xff]   ;;  %v3064_v38 = vld [vmem:[%s4109_s1 + $0x7a4] ss:$8 sps:$4 sm:$0xff]   ;;  %v3062_v40 = vld [vmem:[%s4109_s1 + $0x7a0] ss:$8 sps:$4 sm:$0xff]  }
  0xcf   :  { %v3059_v36 = vld [vmem:[%s4109_s1 + $0x790] ss:$8 sps:$4 sm:$0xff]   ;;  %v3088_v39 = vld [vmem:[%s4111_s3 + $0x60] sm:$0xff]   ;;  %v3067_v31 = vld [vmem:[%s4109_s1 + $0x7b4] ss:$8 sps:$4 sm:$0xff]  }
  0xd0   :  { %1947 = vmatpush1.bf16.msra.mxu0 %v2992_v43  ;;  %v3087_v37 = vld [vmem:[%s4111_s3 + $0x18] sm:$0xff]   ;;  %v3089_v41 = vld [vmem:[%s4111_s3 + $0x20] sm:$0xff]   ;;  %v3090_v42 = vld [vmem:[%s4111_s3 + $0x68] sm:$0xff]  }
  0xd1   :  { %1948 = vmatprep.subr.bf16.mxu0 %v2997_v44  ;;  %2614 = vmatpush3.bf16.msra.mxu1 %v3083_v30  ;;  %v3065_v3 = vld [vmem:[%s4109_s1 + $0x7b0] ss:$8 sps:$4 sm:$0xff]   ;;  %v3091_v14 = vld [vmem:[%s4111_s3 + $0x28] sm:$0xff]   ;;  %v2585_v27 = vld [vmem:[%s4112_s4] ss:$0 sm:$0xff] }
  0xd2   :  { %2615 = vmatprep.subr.bf16.mxu1 %v3084_v33  ;;  %v3070_v43 = vld [vmem:[%s4109_s1 + $0x7c4] ss:$8 sps:$4 sm:$0xff]   ;;  %v3068_v44 = vld [vmem:[%s4109_s1 + $0x7c0] ss:$8 sps:$4 sm:$0xff]  }
  0xd4   :  { %1949 = vmatpush1.bf16.msra.mxu0 %v2995_v47  ;;  %v3073_v47 = vld [vmem:[%s4109_s1 + $0x7d4] ss:$8 sps:$4 sm:$0xff]  }
  0xd5   :  { %1950 = vmatprep.subr.bf16.mxu0 %v3000_v48  ;;  %2616 = vmatpush3.bf16.msra.mxu1 %v3085_v19  ;;  %v3071_v48 = vld [vmem:[%s4109_s1 + $0x7d0] ss:$8 sps:$4 sm:$0xff]  }
  0xd6   :  { %2617 = vmatprep.subr.bf16.mxu1 %v3086_v35 }
  0xd8   :  { %1951 = vmatpush1.bf16.msra.mxu0 %v2998_v49  ;;  %v3076_v49 = vld [vmem:[%s4109_s1 + $0x7e4] ss:$8 sps:$4 sm:$0xff]  }
  0xd9   :  { %1952 = vmatprep.subr.bf16.mxu0 %v3003_v50  ;;  %2618 = vmatpush3.bf16.msra.mxu1 %v3087_v37  ;;  %v3074_v50 = vld [vmem:[%s4109_s1 + $0x7e0] ss:$8 sps:$4 sm:$0xff]  }
  0xda   :  { %2619 = vmatprep.subr.bf16.mxu1 %v3088_v39 }
  0xdc   :  { %1953 = vmatpush1.bf16.msra.mxu0 %v3001_v52  ;;  %v3079_v52 = vld [vmem:[%s4109_s1 + $0x7f4] ss:$8 sps:$4 sm:$0xff]  }
  0xdd   :  { %1954 = vmatprep.subr.bf16.mxu0 %v3006_v53  ;;  %2620 = vmatpush3.bf16.msra.mxu1 %v3089_v41  ;;  %v3077_v53 = vld [vmem:[%s4109_s1 + $0x7f0] ss:$8 sps:$4 sm:$0xff]  }
  0xde   :  { %2621 = vmatprep.subr.bf16.mxu1 %v3090_v42 }
  0xe0   :  { %1955 = vmatpush1.bf16.msra.mxu0 %v3004_v54  ;;  %v395_v54 = vcombine.high %v3913_v9, %v3913_v9 }
  0xe1   :  { %1956 = vmatprep.subr.bf16.mxu0 %v3009_v55  ;;  %2622 = vmatpush3.bf16.msra.mxu1 %v3091_v14  ;;  %v3092_v55 = vld [vmem:[%s4111_s3 + $0x70] sm:$0xff]  }
  0xe2   :  { %2623 = vmatprep.subr.bf16.mxu1 %v3092_v55 }
  0xe4   :  { %1957 = vmatpush1.bf16.msra.mxu0 %v3007_v56 }
  0xe5   :  { %1958 = vmatprep.subr.bf16.mxu0 %v3012_v57  ;;  %v3093_v57 = vld [vmem:[%s4111_s3 + $0x30] sm:$0xff]  }
  0xe6   :  { %2624 = vmatpush3.bf16.msra.mxu1 %v3093_v57 }
  0xe8   :  { %1959 = vmatpush1.bf16.msra.mxu0 %v3010_v58 }
  0xe9   :  { %1960 = vmatprep.subr.bf16.mxu0 %v3015_v59 }
  0xec   :  { %1961 = vmatpush1.bf16.msra.mxu0 %v3013_v60 }
  0xed   :  { %1962 = vmatprep.subr.bf16.mxu0 %v3018_v61  ;;  %v3094_v61 = vld [vmem:[%s4111_s3 + $0x78] sm:$0xff]  }
  0xee   :  { %2625 = vmatprep.subr.bf16.mxu1 %v3094_v61 }
  0xf0   :  { %1963 = vmatpush1.bf16.msra.mxu0 %v3016_v62  ;;  %v3095_v62 = vld [vmem:[%s4111_s3 + $0x38] sm:$0xff]  }
  0xf1   :  { %1964 = vmatprep.subr.bf16.mxu0 %v3021_v63  ;;  %2626 = vmatpush3.bf16.msra.mxu1 %v3095_v62  ;;  %v3129_v63 = vmov 0.0  }
  0xf2   :  { %2642 = vmatprep.subr.bf16.mxu1 %v3129_v63 }
  0xf4   :  { %1965 = vmatpush1.bf16.msra.mxu0 %v3019_v0  ;;  %v290_v0 = vsub.s32 0, %v3298_v45 }
  0xf5   :  { %1966 = vmatprep.subr.bf16.mxu0 %v3024_v1  ;;  %v286_v1 = vld [vmem:[%s4110_s2] sm:$0x3] }
  0xf8   :  { %1967 = vmatpush1.bf16.msra.mxu0 %v3022_v2  ;;  %v294_v2 = vsub.s32 1, %v3298_v45  ;;  %v3097_v45 = vld [vmem:[%s4113_s5 + $0x8] sm:$0xff]  }
  0xf9   :  { %1968 = vmatprep.subr.bf16.mxu0 %v3027_v4  ;;  %v291_v4 = vrot.slane %v286_v1, %v290_v0 }
  0xfc   :  { %1969 = vmatpush1.bf16.msra.mxu0 %v3025_v5  ;;  %v295_v5 = vrot.slane %v286_v1, %v294_v2 }
  0xfd   :  { %1970 = vmatprep.subr.bf16.mxu0 %v3030_v6 }
 0x100   :  { %1971 = vmatpush1.bf16.msra.mxu0 %v3028_v7 }
 0x101   :  { %1981 = vmatprep.subr.bf16.mxu0 %v3034_v8 }
 0x103   :  { %1973 = vmatmul.mubr.bf16.vlgmr.msra.gmra.mrb[0].mxu0 %v3913_v9 }
 0x104   :  { %1982 = vmatpush1.bf16.msra.mxu0 %v3032_v10  ;;  %2013 = vmatprep.mubr.bf16.mxu0 %v397_v11 }
 0x105   :  { %1983 = vmatprep.subr.bf16.mxu0 %v3037_v12 }
 0x108   :  { %1984 = vmatpush1.bf16.msra.mxu0 %v3035_v51 }
 0x109   :  { %1985 = vmatprep.subr.bf16.mxu0 %v3040_v13 }
 0x10c   :  { %1986 = vmatpush1.bf16.msra.mxu0 %v3038_v15 }
 0x10d   :  { %1987 = vmatprep.subr.bf16.mxu0 %v3043_v16 }
 0x110   :  { %1988 = vmatpush1.bf16.msra.mxu0 %v3041_v17  ;;  %v3096_v17 = vld [vmem:[%s4113_s5] sm:$0xff]  }
 0x111   :  { %1989 = vmatprep.subr.bf16.mxu0 %v3046_v18 }
 0x114   :  { %1990 = vmatpush1.bf16.msra.mxu0 %v3044_v20  ;;  %v3098_v20 = vld [vmem:[%s4113_s5 + $0x10] sm:$0xff]  }
 0x115   :  { %1991 = vmatprep.subr.bf16.mxu0 %v3049_v21  ;;  %v3099_v21 = vld [vmem:[%s4113_s5 + $0x18] sm:$0xff]  }
 0x118   :  { %1992 = vmatpush1.bf16.msra.mxu0 %v3047_v22  ;;  %v3100_v22 = vld [vmem:[%s4113_s5 + $0x20] sm:$0xff]  }
 0x119   :  { %1993 = vmatprep.subr.bf16.mxu0 %v3052_v23  ;;  %v3101_v23 = vld [vmem:[%s4113_s5 + $0x28] sm:$0xff]  }
 0x11c   :  { %1994 = vmatpush1.bf16.msra.mxu0 %v3050_v24  ;;  %v3102_v24 = vld [vmem:[%s4113_s5 + $0x30] sm:$0xff]  }
 0x11d   :  { %1995 = vmatprep.subr.bf16.mxu0 %v3055_v25  ;;  %v3103_v25 = vld [vmem:[%s4113_s5 + $0x38] sm:$0xff]   ;;  %s3131_s5 = smov [#allocation2]  }
 0x11e   :  { %s2321_s23 = sshll.u32 %s3131_s5, 4  ;;  %s2322_s23 = int_to_ptr.vmem [resolvable:$true] %s2321_s23 }
 0x11f   :  { %s3104_s4 = scalar_lea.vmem %s2322_s23, 32  ;;  %p3109_p1 = scmp.lt.s32.totalorder %s2322_s23, %s2322_s23 }
 0x120   :  { %1996 = vmatpush1.bf16.msra.mxu0 %v3053_v29  ;;  %p3105_p0 = scmp.ne.s32.totalorder %s2322_s23, %s3104_s4  ;;  %p3110_p2 = scmp.lt.s32.totalorder %s3104_s4, %s3104_s4 }
 0x121   :  { %1997 = vmatprep.subr.bf16.mxu0 %v3058_v32 }
 0x122   :  { %p3111_p3 = por %p3110_p2, %p3109_p1 }
 0x124   :  { %1998 = vmatpush1.bf16.msra.mxu0 %v3056_v46  ;;  %p3112_p4 = pnand %p3111_p3, %p3105_p0 }
 0x125   :  { %1999 = vmatprep.subr.bf16.mxu0 %v3061_v34  ;;  %v2602_v34 = vld [vmem:[%s4114_s6] ss:$0 sm:$0xff] }
 0x128   :  { %2000 = vmatpush1.bf16.msra.mxu0 %v3059_v36 }
 0x129   :  { %2001 = vmatprep.subr.bf16.mxu0 %v3064_v38 }
 0x12c   :  { %2002 = vmatpush1.bf16.msra.mxu0 %v3062_v40 }
 0x12d   :  { %2003 = vmatprep.subr.bf16.mxu0 %v3067_v31 }
 0x130   :  { %2004 = vmatpush1.bf16.msra.mxu0 %v3065_v3 }
 0x131   :  { %2005 = vmatprep.subr.bf16.mxu0 %v3070_v43 }
 0x134   :  { %2006 = vmatpush1.bf16.msra.mxu0 %v3068_v44 }
 0x135   :  { %2007 = vmatprep.subr.bf16.mxu0 %v3073_v47 }
 0x138   :  { %2008 = vmatpush1.bf16.msra.mxu0 %v3071_v48 }
 0x139   :  { %2009 = vmatprep.subr.bf16.mxu0 %v3076_v49 }
 0x13c   :  { %2010 = vmatpush1.bf16.msra.mxu0 %v3074_v50 }
 0x13d   :  { %2011 = vmatprep.subr.bf16.mxu0 %v3079_v52 }
 0x140   :  { %2012 = vmatpush1.bf16.msra.mxu0 %v3077_v53 }
 0x143   :  { %2014 = vmatmul.mubr.bf16.vlgmr.msra.gmra.mrb[0].mxu0 %v395_v54 }
 0x195   :  { %v1810_v56 = vpop.f32.mrb[0].mxu1 }
 0x196   :  { %v1812_v58 = vpop.f32.mrb[1].mxu1  ;;  %v2662_v6 = vadd.f32 %v1810_v56, %v291_v4 }
 0x197   :  { %v1814_v59 = vpop.f32.mrb[2].mxu1  ;;  %v2664_v7 = vadd.f32 %v1812_v58, %v295_v5 }
 0x198   :  { %v1815_v60 = vpop.f32.mrb[3].mxu1 }
 0x216   :  { %v2015_v8 = vpop.f32.mrb[0].mxu0 }
 0x217   :  { %v2663_v9 = vadd.f32 %v2662_v6, %v2015_v8  ;;  %v2017_v10 = vpop.f32.mrb[1].mxu0 }
 0x218   :  { %v2665_v11 = vadd.f32 %v2664_v7, %v2017_v10  ;;  %v2019_v12 = vpop.f32.mrb[2].mxu0 }
 0x219   :  { %v2022_v51 = vmax.f32 %v2663_v9, 0.0  ;;  %v2020_v13 = vpop.f32.mrb[3].mxu0 }
 0x21a   :  { %v2023_v15 = vmax.f32 %v2665_v11, 0.0 }
 0x21b   :  { %v2024_v18 = vpack.c.bf16 %v2022_v51, %v2022_v51 }
 0x21c   :  { %v2025_v16 = vpack.c.bf16 %v2023_v15, %v2023_v15 }
 0x21e   :  { %2193 = vmatprep.mubr.bf16.mxu1 %v2025_v16 }
 0x21f   :  { %2194 = vmatmul.mubr.bf16.vlgmr.msra.gmra.mrb[4].mxu1 %v2024_v18 }
 0x220   :  { %2643 = vmatpush3.bf16.msra.mxu1 %v3096_v17  ;;  %2658 = vmatprep.mubr.msk.bf16.mxu1 %vm3130_vm0, %v3129_v63 }
 0x221   :  { %2644 = vmatprep.subr.bf16.mxu1 %v3129_v63 }
 0x224   :  { %2645 = vmatpush3.bf16.msra.mxu1 %v3097_v45 }
 0x225   :  { %2646 = vmatprep.subr.bf16.mxu1 %v3129_v63 }
 0x228   :  { %2647 = vmatpush3.bf16.msra.mxu1 %v3098_v20 }
 0x229   :  { %2648 = vmatprep.subr.bf16.mxu1 %v3129_v63 }
 0x22c   :  { %2649 = vmatpush3.bf16.msra.mxu1 %v3099_v21 }
 0x22d   :  { %2650 = vmatprep.subr.bf16.mxu1 %v3129_v63 }
 0x230   :  { %2651 = vmatpush3.bf16.msra.mxu1 %v3100_v22 }
 0x231   :  { %2652 = vmatprep.subr.bf16.mxu1 %v3129_v63 }
 0x234   :  { %2653 = vmatpush3.bf16.msra.mxu1 %v3101_v23 }
 0x235   :  { %2654 = vmatprep.subr.bf16.mxu1 %v3129_v63 }
 0x238   :  { %2655 = vmatpush3.bf16.msra.mxu1 %v3102_v24 }
 0x239   :  { %2656 = vmatprep.subr.bf16.mxu1 %v3129_v63 }
 0x23c   :  { %2657 = vmatpush3.bf16.msra.mxu1 %v3103_v25 }
 0x2f2   :  { %v2627_v26 = vpop.f32.mrb[4].mxu1 }
 0x2f3   :  { %v2628_v28 = vpop.f32.mrb[5].mxu1 }
 0x2f4   :  { %v2629_v29 = vadd.f32 %v2628_v28, %v2627_v26  ;;  %v2630_v30 = vpop.f32.mrb[6].mxu1 }
 0x2f5   :  { %v2631_v32 = vpop.f32.mrb[7].mxu1 }
 0x2f6   :  { %v2196_v33 = vadd.f32 %v2629_v29, %v2585_v27 }
 0x2f8   :  { %v2201_v46 = vmax.f32 %v2196_v33, 0.0 }
 0x2fa   :  { %v2202_v19 = vpack.c.bf16 %v2201_v46, %v2201_v46 }
 0x2fc   :  { %2659 = vmatmul.mubr.bf16.vlgmr.msra.gmra.mrb[8].mxu1 %v2202_v19 }
 0x3cf   :  { %v2308_v35 = vpop.f32.mrb[8].mxu1 }
 0x3d0   :  { %v2309_v36 = vadd.f32 %v2602_v34, %v2308_v35  ;;  %v2660_v37 = vpop.f32.mrb[9].mxu1 }
 0x3d1   :  { %v2311_v38 = vpop.f32.mrb[10].mxu1 }
 0x3d2   :  { %2314 = vst [vmem:[#allocation2] sm:$0x3] %v2309_v36  ;;  %v2661_v39 = vpop.f32.mrb[11].mxu1 }
 0x3d3   :  { %3115 = shalt.err (!%p3112_p4)
}
 0x3d4   :  { %s3116_s6 = scalar_lea.hbm %s4115_s7, 32 }
 0x3d5   :  { %p3117_p5 = scmp.ne.s32.totalorder %s4115_s7, %s3116_s6  ;;  %p3120_p6 = scmp.lt.u32.totalorder %s3116_s6, %s4115_s7 }
 0x3d7   :  { %p3122_p7 = pnand %p3120_p6, %p3117_p5 }
 0x3d9   :  { %3125 = shalt.err (!%p3122_p7)
}
 0x3da   :  { %2324 = dma.vmem_to_hbm [thread:$0]  %s2322_s23, 32, %s4115_s7, [#allocation3]  }
 0x3db   :  { %3126 = dma.done.wait [#allocation3], 32  }
 0x3dc   :  { %3127 = vsyncadd [#allocation3], 4294967264 }
 0x3dd   :  { %2328 = vsyncpa [#allocation3], 1 }

</bundles_post_ra>
